<compile_context>
chip_gen: v6e
topology: v6e:2x2x1
jax: 0.10.0
libtpu: 0.0.40
codegen_flags: <defaults>
</compile_context>

<pallas_src>
import jax
import jax.numpy as jnp
from jax.experimental import pallas as pl
from jax.experimental.pallas import tpu as pltpu

C = 32
HIDDEN = 1024
KOUT = C * C * 3 * 3  # 9216


def _fused_mlp_kernel(x_ref, w1_ref, b1_ref, w2_ref, b2_ref, out_ref):
    """One output-column tile of the whole MLP.

    Stage 1 (global avg-pool + Linear(C, HIDDEN) + ReLU) is recomputed every
    grid step -- it is ~0.13 MFLOP and hides entirely under the w2 tile DMA --
    so there is no cross-step state and the grid axis can be "parallel".

    x_ref  : (B, C, HW)    f32, constant index_map -> resident across steps
    w1_ref : (C, HIDDEN)   f32, resident
    b1_ref : (1, HIDDEN)   f32, resident
    w2_ref : (HIDDEN, TN)  bf16 column tile (the dominant HBM stream)
    b2_ref : (1, TN)       f32 tile
    out_ref: (B, TN)       f32 tile
    """
    pooled = jnp.mean(x_ref[...], axis=-1)                            # (B, C)
    h = jnp.dot(pooled, w1_ref[...],
                preferred_element_type=jnp.float32) + b1_ref[...]     # (B, HIDDEN)
    h = jnp.maximum(h, 0.0).astype(jnp.bfloat16)                      # ReLU -> bf16
    out_ref[...] = (jnp.dot(h, w2_ref[...],
                            preferred_element_type=jnp.float32)
                    + b2_ref[...]).astype(out_ref.dtype)


def kernel_predictor(x, w1, b1, w2_bf16, b2, *, tn=2304):
    """x: (B, C, H, W) f32; w2_bf16 must already be bf16 (converted at init).

    Returns (B, C, C, 3, 3) f32.
    tn=2304 -> 4 column tiles: fits v5e's 16 MiB default scoped VMEM
    (double-buffered bf16 tile = 9 MiB) and gives an even 2/2 split across
    v7x's two TensorCores.  On v6e tn=4608 is a small optional win.
    """
    B, Cin, H, W = x.shape
    assert Cin == C
    assert KOUT % tn == 0 and tn % 128 == 0
    assert w2_bf16.dtype == jnp.bfloat16, "pre-convert w2 to bf16 once at init"
    HW = H * W
    n_tiles = KOUT // tn

    x_flat = x.reshape(B, C, HW).astype(jnp.float32)
    w1_f32 = w1.astype(jnp.float32)
    b1_2d = b1.reshape(1, HIDDEN).astype(jnp.float32)
    b2_2d = b2.reshape(1, KOUT).astype(jnp.float32)

    bytes_accessed = (B * C * HW * 4          # x (resident, read once)
                      + C * HIDDEN * 4        # w1
                      + HIDDEN * 4            # b1
                      + HIDDEN * KOUT * 2     # w2 bf16 -- dominant stream
                      + KOUT * 4              # b2
                      + B * KOUT * 4)         # out
    flops = (2 * B * HIDDEN * KOUT            # second matmul
             + n_tiles * (B * C * HW + 2 * B * C * HIDDEN))  # recomputed stage 1

    out = pl.pallas_call(
        _fused_mlp_kernel,
        out_shape=jax.ShapeDtypeStruct((B, KOUT), jnp.float32),
        grid_spec=pltpu.PrefetchScalarGridSpec(
            num_scalar_prefetch=0,
            grid=(n_tiles,),
            in_specs=[
                pl.BlockSpec((B, C, HW), lambda j: (0, 0, 0)),    # x (resident)
                pl.BlockSpec((C, HIDDEN), lambda j: (0, 0)),      # w1 (resident)
                pl.BlockSpec((1, HIDDEN), lambda j: (0, 0)),      # b1 (resident)
                pl.BlockSpec((HIDDEN, tn), lambda j: (0, j)),     # w2 column tile
                pl.BlockSpec((1, tn), lambda j: (0, j)),          # b2 tile
            ],
            out_specs=pl.BlockSpec((B, tn), lambda j: (0, j)),
        ),
        compiler_params=pltpu.CompilerParams(
            # Stateless across steps -> parallel (lets v7x use both TCs).
            dimension_semantics=("parallel",)),
        cost_estimate=pl.CostEstimate(
            flops=flops, bytes_accessed=bytes_accessed, transcendentals=0),
    )(x_flat, w1_f32, b1_2d, w2_bf16, b2_2d)

    return out.reshape(B, C, C, 3, 3)


def _reference(x, w1, b1, w2, b2):
    B = x.shape[0]
    pooled = jnp.mean(x, axis=(2, 3))                 # (B, C)
    h = jnp.maximum(pooled @ w1 + b1, 0.0)            # (B, 1024)
    out = h @ w2 + b2                                 # (B, 9216)
    return out.reshape(B, C, C, 3, 3)


if __name__ == "__main__":
    key = jax.random.PRNGKey(0)
    kx, k1, k2, k3, k4 = jax.random.split(key, 5)

    B, H, W = 2, 16, 16
    x = jax.random.normal(kx, (B, C, H, W), dtype=jnp.float32)

    # Deterministic synthetic parameters (shapes from nn.Linear(C, 1024) and
    # nn.Linear(1024, C*C*9)).  Stored (in, out) so the kernel does pooled @ w1
    # (PyTorch stores (out, in) and computes x @ W.T -- same math).
    w1 = jax.random.normal(k1, (C, HIDDEN), dtype=jnp.float32) * (1.0 / jnp.sqrt(C))
    b1 = jax.random.normal(k2, (HIDDEN,), dtype=jnp.float32) * 0.01
    w2 = jax.random.normal(k3, (HIDDEN, KOUT), dtype=jnp.float32) * (1.0 / jnp.sqrt(HIDDEN))
    b2 = jax.random.normal(k4, (KOUT,), dtype=jnp.float32) * 0.01

    # One-time parameter-init conversion (NOT on the per-call hot path).
    w2_bf16 = jax.block_until_ready(w2.astype(jnp.bfloat16))

    out = kernel_predictor(x, w1, b1, w2_bf16, b2)
    out = jax.block_until_ready(out)

    ref = _reference(x, w1, b1, w2, b2)
    assert out.shape == (B, C, C, 3, 3), out.shape
    # bf16 storage of w2 / bf16 h into the second matmul (intentional perf
    # choice) -> slightly looser tolerance than a pure-f32 comparison.
    assert jnp.allclose(out, ref, atol=1e-2, rtol=1e-2), "mismatch vs reference"

    print("KERNEL_OK")
</pallas_src>

<mosaic_0001>
module attributes {stable_mosaic.version = 11 : i64} {
  func.func @_fused_mlp_kernel(%arg0: i32, %arg1: memref<2x32x256xf32, #tpu.memory_space<vmem>>, %arg2: memref<32x1024xf32, #tpu.memory_space<vmem>>, %arg3: memref<1x1024xf32, #tpu.memory_space<vmem>>, %arg4: memref<1024x2304xbf16, #tpu.memory_space<vmem>>, %arg5: memref<1x2304xf32, #tpu.memory_space<vmem>>, %arg6: memref<2x2304xf32, #tpu.memory_space<vmem>>) attributes {dimension_semantics = [#tpu.dimension_semantics<parallel>], iteration_bounds = array<i64: 4>, scalar_prefetch = 0 : i64, scratch_operands = 0 : i64, tpu.core_type = #tpu.core_type<tc>, window_params = [{pipeline_mode = #tpu.pipeline_mode<synchronous>, transform_indices = @transform_0, window_bounds = array<i64: 2, 32, 256>}, {pipeline_mode = #tpu.pipeline_mode<synchronous>, transform_indices = @transform_1, window_bounds = array<i64: 32, 1024>}, {pipeline_mode = #tpu.pipeline_mode<synchronous>, transform_indices = @transform_2, window_bounds = array<i64: 1, 1024>}, {transform_indices = @transform_3, window_bounds = array<i64: 1024, 2304>}, {transform_indices = @transform_4, window_bounds = array<i64: 1, 2304>}, {transform_indices = @transform_5, window_bounds = array<i64: 2, 2304>}]} {
    %c0 = arith.constant 0 : index
    %c0_0 = arith.constant 0 : index
    %c0_1 = arith.constant 0 : index
    %0 = vector.load %arg1[%c0, %c0_0, %c0_1] : memref<2x32x256xf32, #tpu.memory_space<vmem>>, vector<2x32x256xf32>
    %cst = arith.constant dense<0.000000e+00> : vector<2x32xf32>
    %1 = vector.multi_reduction <add>, %0, %cst [2] : vector<2x32x256xf32> to vector<2x32xf32>
    %cst_2 = arith.constant 2.560000e+02 : f32
    %2 = vector.broadcast %cst_2 : f32 to vector<2x32xf32>
    %3 = arith.divf %1, %2 : vector<2x32xf32>
    %c0_3 = arith.constant 0 : index
    %c0_4 = arith.constant 0 : index
    %4 = vector.load %arg2[%c0_3, %c0_4] : memref<32x1024xf32, #tpu.memory_space<vmem>>, vector<32x1024xf32>
    %cst_5 = arith.constant dense<0.000000e+00> : vector<2x1024xf32>
    %5 = tpu.matmul %3, %4, %cst_5 {dimension_numbers = #tpu.dot_dimension_numbers<[1], [0], [0], [1], [0, 0, 1, 1], [], []>} : vector<2x32xf32>, vector<32x1024xf32>, vector<2x1024xf32> -> vector<2x1024xf32>
    %c0_6 = arith.constant 0 : index
    %c0_7 = arith.constant 0 : index
    %6 = vector.load %arg3[%c0_6, %c0_7] : memref<1x1024xf32, #tpu.memory_space<vmem>>, vector<1x1024xf32>
    %7 = vector.broadcast %6 : vector<1x1024xf32> to vector<2x1024xf32>
    %8 = arith.addf %5, %7 : vector<2x1024xf32>
    %cst_8 = arith.constant 0.000000e+00 : f32
    %9 = vector.broadcast %cst_8 : f32 to vector<2x1024xf32>
    %10 = arith.maximumf %8, %9 : vector<2x1024xf32>
    %11 = arith.truncf %10 : vector<2x1024xf32> to vector<2x1024xbf16>
    %c0_9 = arith.constant 0 : index
    %c0_10 = arith.constant 0 : index
    %12 = vector.load %arg4[%c0_9, %c0_10] : memref<1024x2304xbf16, #tpu.memory_space<vmem>>, vector<1024x2304xbf16>
    %cst_11 = arith.constant dense<0.000000e+00> : vector<2x2304xf32>
    %13 = tpu.matmul %11, %12, %cst_11 {dimension_numbers = #tpu.dot_dimension_numbers<[1], [0], [0], [1], [0, 0, 1, 1], [], []>} : vector<2x1024xbf16>, vector<1024x2304xbf16>, vector<2x2304xf32> -> vector<2x2304xf32>
    %c0_12 = arith.constant 0 : index
    %c0_13 = arith.constant 0 : index
    %14 = vector.load %arg5[%c0_12, %c0_13] : memref<1x2304xf32, #tpu.memory_space<vmem>>, vector<1x2304xf32>
    %15 = vector.broadcast %14 : vector<1x2304xf32> to vector<2x2304xf32>
    %16 = arith.addf %13, %15 : vector<2x2304xf32>
    %c0_14 = arith.constant 0 : index
    %c0_15 = arith.constant 0 : index
    %17 = vector.load %arg6[%c0_14, %c0_15] : memref<2x2304xf32, #tpu.memory_space<vmem>>, vector<2x2304xf32>
    tpu.vector_store %arg6[%c0_14, %c0_15], %16 {strides = array<i32>} : memref<2x2304xf32, #tpu.memory_space<vmem>>, vector<2x2304xf32>,
    return
  }
  func.func @transform_0(%arg0: i32) -> (i32, i32, i32) {
    %c0_i32 = arith.constant 0 : i32
    %c0_i32_0 = arith.constant 0 : i32
    %c0_i32_1 = arith.constant 0 : i32
    %c0_i32_2 = arith.constant 0 : i32
    return %c0_i32, %c0_i32_0, %c0_i32_1 : i32, i32, i32
  }
  func.func @transform_1(%arg0: i32) -> (i32, i32) {
    %c0_i32 = arith.constant 0 : i32
    %c0_i32_0 = arith.constant 0 : i32
    %c0_i32_1 = arith.constant 0 : i32
    return %c0_i32, %c0_i32_0 : i32, i32
  }
  func.func @transform_2(%arg0: i32) -> (i32, i32) {
    %c0_i32 = arith.constant 0 : i32
    %c0_i32_0 = arith.constant 0 : i32
    %c0_i32_1 = arith.constant 0 : i32
    return %c0_i32, %c0_i32_0 : i32, i32
  }
  func.func @transform_3(%arg0: i32) -> (i32, i32) {
    %c0_i32 = arith.constant 0 : i32
    %c0_i32_0 = arith.constant 0 : i32
    return %c0_i32, %arg0 : i32, i32
  }
  func.func @transform_4(%arg0: i32) -> (i32, i32) {
    %c0_i32 = arith.constant 0 : i32
    %c0_i32_0 = arith.constant 0 : i32
    return %c0_i32, %arg0 : i32, i32
  }
  func.func @transform_5(%arg0: i32) -> (i32, i32) {
    %c0_i32 = arith.constant 0 : i32
    %c0_i32_0 = arith.constant 0 : i32
    return %c0_i32, %arg0 : i32, i32
  }
}

</mosaic_0001>

<bundles_post_ra>
// kernel: tpu_custom_call.1
= control target key start
LH: loop header
LB: loop body
LE: loop exit
PB: predicated region body
PF: predicated region fallthrough
CT: control target
= control target key end

     0   :  { %s14473_s0 = inlined_call_operand.hbm [shape: f32[2,32,256], index: 0, kind: input, shape index: {}]   ;;  %s14474_s1 = inlined_call_operand.hbm [shape: f32[32,1024], index: 1, kind: input, shape index: {}]   ;;  %s14475_s2 = inlined_call_operand.hbm [shape: f32[1,1024], index: 2, kind: input, shape index: {}]   ;;  %s14476_s3 = inlined_call_operand.hbm [shape: bf16[1024,9216], index: 3, kind: input, shape index: {}]   ;;  %s14477_s4 = inlined_call_operand.hbm [shape: f32[1,9216], index: 4, kind: input, shape index: {}]   ;;  %s14478_s5 = inlined_call_operand.hbm [shape: f32[2,9216], index: 5, kind: output, shape index: {}]  }
   0x1   :  { %14484 = sst [smem:[#allocation17_spill]] %s14473_s0 }
   0x2   :  { %10 = vsyncpa [#allocation3], 0 }
   0x3   :  { %11 = vsyncpa [#allocation6], 0 }
   0x4   :  { %12 = vsyncpa [#allocation9], 0 }
   0x5   :  { %14 = vsyncpa [#allocation9 + $0x1], 0 }
   0x6   :  { %15 = vsyncpa [#allocation4], 0 }
   0x7   :  { %17 = vsyncpa [#allocation4 + $0x1], 0  ;;  %s12783_s18 = smov 0   ;;  %s12785_s19 = smov 0  }
   0x8   :  { %s12787_s20 = smov 0   ;;  %s12789_s21 = smov 0  }
   0x9 LB: > { %s12804_s22 = sadd.s32 4294967295, %s12736_s21   ;;  %s9529_s23 = sadd.s32 4294967294, %s12736_s21   ;;  %s12736_s21 = sphi %s12789_s21, %s14508_s21   ;;  %s12732_s20 = sphi %s12787_s20, %s14507_s20   ;;  %s12728_s19 = sphi %s12785_s19, %s14506_s19   ;;  %s12724_s18 = sphi %s12783_s18, %s14505_s18  }
   0xa   : > { %s12808_s24 = sadd.s32 1, %s12736_s21   ;;  %s93_s25 = sadd.s32 1, %s12732_s20 }
   0xb   : > { %s90_s26 = ssub.s32 %s12736_s21, %s12808_s24  ;;  %p100_p0 = scmp.ne.s32.totalorder %s12732_s20, %s12728_s19 }
   0xc   : > { %p91_p1 = scmp.eq.s32.totalorder %s90_s26, 0  ;;  %p101_p2 = scmp.eq.s32.totalorder %s12736_s21, 0 }
   0xd   : > { %p106_p3 = scmp.ne.s32.totalorder %s12728_s19, %s12724_s18  ;;  %p14481_p4 = scmp.eq.s32.totalorder %s12804_s22, 0 }
   0xe   : > { %s12820_s27 = scalar_select %p91_p1, %s12732_s20, %s93_s25  }
   0xf   : > { %p12822_p5 = por %p101_p2, %p100_p0  ;;  %p12828_p6 = por %p14481_p4, %p106_p3 }
  0x10   : > { %14485 = sst [smem:[#allocation16_spill]] %s12820_s27  ;;  %p156_p7 = scmp.eq.s32.totalorder %s12804_s22, 3 }
  0x11   : > { %s14487_s29 = scalar_select %p12828_p6, 1, 0 }
  0x12   : > { %p162_p8 = scmp.eq.s32.totalorder %s9529_s23, 3  ;;  %p9530_p9 = scmp.ge.s32.totalorder %s12736_s21, 1 }
  0x13   : > { %p169_p10 = scmp.lt.s32.totalorder %s12736_s21, 5  ;;  %p12835_p11 = por %p156_p7, %p100_p0 }
  0x14   : > { %p12839_p12 = por %p162_p8, %p106_p3  ;;  %s12738_s8 = smov [#allocation5]  }
  0x15   : > { %s14488_s30 = scalar_select %p12835_p11, 1, 0 }
  0x16   : > { %s14489_s6 = scalar_select %p12839_p12, 1, 0 }
  0x17   : > { %p12843_p13 = pnand %p9530_p9, %p169_p10  ;;  %s194_s9 = sshll.u32 %s12738_s8, 4  ;;  %s195_s9 = int_to_ptr.vmem [resolvable:$true] %s194_s9 }
  0x18   : > { %p10751_p0 = scmp.lt.s32.totalorder %s12736_s21, 4  ;;  %s219_s11 = sand.u32 1, %s12736_s21  }
  0x19   : > { %s14490_s7 = scalar_select %p12843_p13, 1, 0 }
  0x1a   : > { %p10727_p1 = pneg %p12843_p13  ;;  %s12541_s12 = scalar_lea.vmem %s195_s9, 4096 }
  0x1b   : > { %p12542_p7 = scmp.ne.s32.totalorder %s195_s9, %s12541_s12  ;;  %p12549_p10 = scmp.lt.s32.totalorder %s195_s9, %s195_s9 }
  0x1c   : > { %p12851_p2 = pnand %p10727_p1, %p14481_p4  ;;  %p12550_p12 = scmp.lt.s32.totalorder %s12541_s12, %s12541_s12 }
  0x1e   : > { %p14482_p3 = pneg %p12851_p2  ;;  %p12551_p11 = por %p12550_p12, %p12549_p10 }
  0x20   : > { %p12544_p8 = pnand %p12542_p7, %p14482_p3 }
  0x22   : > { %p12545_p9 = pneg %p12544_p8 }
  0x24   : > { %p12552_p6 = pnand %p12551_p11, %p12545_p9 }
  0x26   : > { %12555 = shalt.err (!%p12552_p6)
}
  0x27   : > { %s12739_s13 = smov 1024   ;;  %s12740_s14 = smov 64  }
  0x28   : > { %10733 = dma.hbm_to_vmem [thread:$0]  (!%p12851_p2), %s14474_s1, 4096, %s195_s9, [#allocation6], %s12739_s13, %s12739_s13, %s12740_s14  }
  0x29   : > { %p12871_p1 = pnand %p10751_p0, %p12822_p5  ;;  %s221_s23 = sand.u32 1, %s12732_s20  }
  0x2a   : > { %s10704_s25 = smul.u32 9216, %s221_s23  ;;  %s12886_s13 = scalar_lea.sflag [#allocation9], %s219_s11 }
  0x2b   : > { %s10701_s26 = smul.u32 1152, %s12736_s21  ;;  %p12558_p6 = pneg %p12871_p1 }
  0x2c   : > { %s223_s28 = scalar_lea.vmem [#allocation8], %s10704_s25 }
  0x2d   : > { %s12882_s27 = scalar_lea.hbm %s14476_s3, %s10701_s26  ;;  %s230_s9 = sshll.u32 %s223_s28, 4  ;;  %s12884_s9 = int_to_ptr.vmem [resolvable:$true] %s230_s9 }
  0x2e   : > { %s12556_s14 = scalar_lea.hbm %s12882_s27, 147456  ;;  %s12561_s26 = scalar_lea.hbm %s14476_s3, 589824 }
  0x2f   : > { %p12557_p5 = scmp.ne.s32.totalorder %s12882_s27, %s12556_s14  ;;  %p12562_p0 = scmp.lt.s32.totalorder %s12882_s27, %s14476_s3 }
  0x30   : > { %p12563_p7 = scmp.lt.s32.totalorder %s12561_s26, %s12556_s14 }
  0x31   : > { %p12559_p11 = pnand %p12558_p6, %p12557_p5 }
  0x32   : > { %p12564_p8 = por %p12563_p7, %p12562_p0 }
  0x33   : > { %p12560_p12 = pneg %p12559_p11 }
  0x35   : > { %p12565_p9 = pnand %p12564_p8, %p12560_p12 }
  0x37   : > { %12568 = shalt.err (!%p12565_p9)
}
  0x38   : > { %s12569_s11 = scalar_lea.vmem %s12884_s9, 147456  ;;  %s12741_s25 = smov [#allocation8]  }
  0x39   : > { %p12570_p10 = scmp.ne.s32.totalorder %s12884_s9, %s12569_s11  ;;  %s12574_s28 = sshll.u32 %s12741_s25, 4  ;;  %s12575_s28 = int_to_ptr.vmem [resolvable:$false] %s12574_s28 }
  0x3a   : > { %s12576_s15 = scalar_lea.vmem %s12575_s28, 294912  ;;  %p12577_p4 = scmp.lt.s32.totalorder %s12884_s9, %s12575_s28 }
  0x3b   : > { %p12572_p5 = pnand %p12570_p10, %p12558_p6  ;;  %p12578_p3 = scmp.lt.s32.totalorder %s12576_s15, %s12569_s11 }
  0x3d   : > { %p12573_p11 = pneg %p12572_p5  ;;  %p12579_p13 = por %p12578_p3, %p12577_p4 }
  0x3f   : > { %p12580_p0 = pnand %p12579_p13, %p12573_p11 }
  0x41   : > { %12583 = shalt.err (!%p12580_p0)
}
  0x42   : > { %s12742_s14 = smov 4608   ;;  %s12743_s16 = smov 1152  }
  0x43   : > { %s12744_s26 = smov 72   ;;  %s12745_s8 = smov [#allocation2]  }
  0x44   : > { %10740 = dma.hbm_to_vmem [thread:$0]  (!%p12871_p1), %s12882_s27, 147456, %s12884_s9, %s12886_s13, %s12742_s14, %s12743_s16, %s12744_s26  }
  0x45   : > { %s181_s12 = sshll.u32 %s12745_s8, 4  ;;  %p14493_p7 = pneg %p12851_p2  ;;  %s182_s12 = int_to_ptr.vmem [resolvable:$true] %s181_s12 }
  0x46   : > { %s12595_s25 = scalar_lea.vmem %s182_s12, 2048  ;;  %p12603_p3 = scmp.lt.s32.totalorder %s182_s12, %s182_s12 }
  0x47   : > { %p12596_p12 = scmp.ne.s32.totalorder %s182_s12, %s12595_s25  ;;  %p12604_p8 = scmp.lt.s32.totalorder %s12595_s25, %s12595_s25 }
  0x49   : > { %p12598_p4 = pnand %p12596_p12, %p14493_p7  ;;  %p12605_p9 = por %p12604_p8, %p12603_p3 }
  0x4b   : > { %p12599_p13 = pneg %p12598_p4 }
  0x4d   : > { %p12606_p10 = pnand %p12605_p9, %p12599_p13 }
  0x4f   : > { %12609 = shalt.err (!%p12606_p10)
}
  0x50   : > { %s12746_s11 = smov 256   ;;  %s12747_s27 = smov 16  }
  0x51   : > { %s14494_s0 = sld [smem:[#allocation17_spill]]  ;;  %s12748_s15 = smov [#allocation7]  }
  0x52   : > { %s208_s14 = sshll.u32 %s12748_s15, 4  ;;  %s10705_s16 = smul.u32 18, %s221_s23  ;;  %s209_s14 = int_to_ptr.vmem [resolvable:$true] %s208_s14 }
  0x53   : > { %s10702_s26 = smul.u32 288, %s12736_s21  ;;  %s12621_s8 = scalar_lea.vmem %s209_s14, 128 }
  0x54   : > { %p12622_p5 = scmp.ne.s32.totalorder %s209_s14, %s12621_s8  ;;  %p14495_p11 = pmov %p14493_p7 }
  0x55   : > { %p12629_p7 = scmp.lt.s32.totalorder %s209_s14, %s209_s14  ;;  %p12630_p4 = scmp.lt.s32.totalorder %s12621_s8, %s12621_s8 }
  0x56   : > { %p12624_p0 = pnand %p12622_p5, %p14495_p11 }
  0x57   : > { %10730 = dma.hbm_to_vmem [thread:$0]  (!%p12851_p2), %s14494_s0, 2048, %s182_s12, [#allocation3], %s12746_s11, %s12746_s11, %s12747_s27  }
  0x58   : > { %p12625_p12 = pneg %p12624_p0  ;;  %p12631_p13 = por %p12630_p4, %p12629_p7 }
  0x5a   : > { %p12632_p3 = pnand %p12631_p13, %p12625_p12 }
  0x5c   : > { %12635 = shalt.err (!%p12632_p3)
}
  0x5d   : > { %10736 = dma.hbm_to_vmem [thread:$0]  (!%p12851_p2), %s14475_s2, 128, %s209_s14, [#allocation6]  }
  0x5e   : > { %s250_s27 = scalar_lea.hbm %s14477_s4, %s10702_s26  ;;  %s244_s9 = scalar_lea.vmem [#allocation10], %s10705_s16 }
  0x5f   : > { %s252_s28 = sshll.u32 %s244_s9, 4  ;;  %s12636_s15 = scalar_lea.hbm %s250_s27, 288  ;;  %s253_s28 = int_to_ptr.vmem [resolvable:$true] %s252_s28 }
  0x60   : > { %p12637_p8 = scmp.ne.s32.totalorder %s250_s27, %s12636_s15  ;;  %s12641_s0 = scalar_lea.hbm %s14477_s4, 1152 }
  0x61   : > { %p12642_p2 = scmp.lt.s32.totalorder %s250_s27, %s14477_s4  ;;  %p12643_p5 = scmp.lt.s32.totalorder %s12641_s0, %s12636_s15 }
  0x62   : > { %p12639_p9 = pnand %p12637_p8, %p12558_p6 }
  0x63   : > { %p12644_p11 = por %p12643_p5, %p12642_p2 }
  0x64   : > { %p12640_p10 = pneg %p12639_p9 }
  0x66   : > { %p12645_p0 = pnand %p12644_p11, %p12640_p10 }
  0x68   : > { %12648 = shalt.err (!%p12645_p0)
}
  0x69   : > { %s12649_s14 = scalar_lea.vmem %s253_s28, 288  ;;  %s12749_s16 = smov [#allocation10]  }
  0x6a   : > { %p12650_p12 = scmp.ne.s32.totalorder %s253_s28, %s12649_s14  ;;  %s12654_s26 = sshll.u32 %s12749_s16, 4  ;;  %s12655_s26 = int_to_ptr.vmem [resolvable:$false] %s12654_s26 }
  0x6b   : > { %s12656_s23 = scalar_lea.vmem %s12655_s26, 576  ;;  %p12657_p13 = scmp.lt.s32.totalorder %s253_s28, %s12655_s26 }
  0x6c   : > { %p12652_p7 = pnand %p12650_p12, %p12558_p6  ;;  %p12658_p3 = scmp.lt.s32.totalorder %s12656_s23, %s12649_s14 }
  0x6e   : > { %p12653_p4 = pneg %p12652_p7  ;;  %p12659_p8 = por %p12658_p3, %p12657_p13 }
  0x70   : > { %p12660_p9 = pnand %p12659_p8, %p12653_p4 }
  0x72   : > { %12663 = shalt.err (!%p12660_p9)
}
  0x73   : > { %10743 = dma.hbm_to_vmem [thread:$0]  (!%p12871_p1), %s250_s27, 288, %s253_s28, %s12886_s13  }
  0x74   : > { %p14496_p10 = scmp.ne.s32.totalorder %s14490_s7, 0 }
  0x75   : > { %p14497_p2 = scmp.eq.s32.totalorder (!%p14496_p10), %s12804_s22, 0 }
  0x76   : > { %261 = sbr.rel (%p14496_p10) target bundleno = 1796 (0x704), region = 40 }
  0x7b   : > { %12707 = dma.done.wait (%p14497_p2), [#allocation3], 2048   ;;  %p14498_p6 = pmov %p14497_p2 }
  0x7c   : > { %p14499_p5 = pmov %p14497_p2 }
  0x7d   : > { %12709 = vsyncadd (%p14498_p6), [#allocation3], 4294965248 }
  0x7e   : > { %12711 = dma.done.wait (%p14499_p5), [#allocation6], 4224   ;;  %p14500_p11 = pmov %p14497_p2 }
  0x7f   : > { %s275_s0 = sand.u32 1, %s12804_s22   ;;  %s12962_s17 = sand.u32 1, %s12728_s19  }
  0x80   : > { %12713 = vsyncadd (%p14500_p11), [#allocation6], 4294963072  ;;  %s10706_s7 = smul.u32 9216, %s12962_s17  ;;  %s276_s13 = scalar_lea.sflag [#allocation9], %s275_s0 }
  0x81   : > { %p14501_p1 = scmp.ne.s32.totalorder %s14487_s29, 0 }
  0x82   : > { %s12965_s11 = scalar_lea.vmem [#allocation8], %s10706_s7 }
  0x83   : > { %12715 = dma.done.wait (%p14501_p1), %s276_s13, 147744  }
  0x84   : > { %12717 = vsyncadd (%p14501_p1), %s276_s13, 4294819552  ;;  %v331_v0 = vld [vmem:[#allocation2 + $0x40] sm:$0xff]  ;;  %v332_v1 = vld [vmem:[#allocation2 + $0x48] sm:$0xff]  ;;  %v12750_v42 = vmov 0.0   ;;  %v406_v43 = vlaneseq  ;;  %vm465_vm0 = vcmask 130112   ;;  %vm472_vm1 = vcmask 195712  }
  0x85   : > { %v323_v2 = vld [vmem:[#allocation2] sm:$0xff]  ;;  %v351_v3 = vadd.f32 %v332_v1, %v331_v0  ;;  %v324_v4 = vld [vmem:[#allocation2 + $0x8] sm:$0xff]  ;;  %v333_v5 = vld [vmem:[#allocation2 + $0x50] sm:$0xff]  ;;  %569 = vmatprep.mubr.f32.mxu0 %v12750_v42  ;;  %640 = vmatprep.mubr.f32.mxu1 %v12750_v42  ;;  %vm479_vm2 = vcmask 261312   ;;  %vm500_vm3 = vcmask 1041409   ;;  %vm502_vm4 = vcmask 261120  }
  0x86   : > { %v334_v6 = vld [vmem:[#allocation2 + $0x58] sm:$0xff]  ;;  %v339_v7 = vadd.f32 %v324_v4, %v323_v2  ;;  %v325_v8 = vld [vmem:[#allocation2 + $0x10] sm:$0xff]  ;;  %v335_v12 = vld [vmem:[#allocation2 + $0x60] sm:$0xff]  ;;  %v455_v45 = vand.u32 127, %v406_v43  ;;  %v12973_v50 = vshrl.u32 %v406_v43, 7  ;;  %s10707_s29 = smul.u32 18, %s12962_s17 }
  0x87   : > { %v326_v9 = vld [vmem:[#allocation2 + $0x18] sm:$0xff]  ;;  %352 = vadd.xlane.f32.xlu1 %v351_v3  ;;  %v354_v10 = vadd.f32 %v334_v6, %v333_v5  ;;  %v336_v13 = vld [vmem:[#allocation2 + $0x68] sm:$0xff]  ;;  %v327_v14 = vld [vmem:[#allocation2 + $0x20] sm:$0xff]  ;;  %s10708_s9 = smul.u32 36, %s12962_s17  ;;  %s9394_s14 = scalar_lea.sflag [#allocation4], %s12962_s17 }
  0x88   : > { %340 = vadd.xlane.f32.xlu0 %v339_v7  ;;  %v342_v11 = vadd.f32 %v326_v9, %v325_v8  ;;  %v328_v15 = vld [vmem:[#allocation2 + $0x28] sm:$0xff]  ;;  %v337_v16 = vld [vmem:[#allocation2 + $0x70] sm:$0xff]  ;;  %v338_v17 = vld [vmem:[#allocation2 + $0x78] sm:$0xff]  ;;  %v357_v18 = vadd.f32 %v336_v13, %v335_v12  ;;  %v460_v47 = vadd.s32 4294967288, %v455_v45  ;;  %v467_v49 = vadd.s32 4294967280, %v455_v45  ;;  %s13321_s27 = scalar_lea.vmem [#allocation10], %s10707_s29 }
  0x89   : > { %v329_v19 = vld [vmem:[#allocation2 + $0x30] sm:$0xff]  ;;  %v330_v20 = vld [vmem:[#allocation2 + $0x38] sm:$0xff]  ;;  %v345_v21 = vadd.f32 %v328_v15, %v327_v14  ;;  %v360_v22 = vadd.f32 %v338_v17, %v337_v16  ;;  %v397_v24 = vld [vmem:[#allocation5 + $0xc8] sm:$0xff]  ;;  %v474_v54 = vadd.s32 4294967272, %v455_v45  ;;  %v458_v58 = vsub.s32 %v455_v45, %v12973_v50  ;;  %s13592_s28 = scalar_lea.vmem [#allocation11], %s10708_s9  ;;  %s10703_s15 = smul.u32 576, %s12804_s22 }
  0x8a   : > { %v348_v23 = vadd.f32 %v330_v20, %v329_v19  ;;  %v399_v25 = vld [vmem:[#allocation5 + $0xd8] sm:$0xff]  ;;  %529 = vmatprep.subr.mxu0 %v397_v24  ;;  %v396_v26 = vld [vmem:[#allocation5 + $0xc0] sm:$0xff]  ;;  %v398_v27 = vld [vmem:[#allocation5 + $0xd0] sm:$0xff]  ;;  %v463_v52 = vsub.s32 %v460_v47, %v12973_v50  ;;  %v470_v56 = vsub.s32 %v467_v49, %v12973_v50  ;;  %s9408_s8 = sshll.u32 %s13592_s28, 4  ;;  %p14502_p12 = scmp.ne.s32.totalorder %s14488_s30, 0  ;;  %s9409_s8 = int_to_ptr.vmem [resolvable:$true] %s9408_s8 }
  0x8b   : > { %355 = vadd.xlane.f32.xlu1 %v354_v10  ;;  %600 = vmatprep.subr.mxu1 %v399_v25  ;;  %v389_v28 = vld [vmem:[#allocation5 + $0x88] sm:$0xff]  ;;  %v391_v29 = vld [vmem:[#allocation5 + $0x98] sm:$0xff]  ;;  %v388_v30 = vld [vmem:[#allocation5 + $0x80] sm:$0xff]  ;;  %v477_v1 = vsub.s32 %v474_v54, %v12973_v50  ;;  %s9406_s25 = scalar_lea.hbm %s14478_s5, %s10703_s15  ;;  %s12664_s16 = scalar_lea.vmem %s9409_s8, 576 }
  0x8c   : > { %343 = vadd.xlane.f32.xlu0 %v342_v11  ;;  %530 = vmatpush1.msra.mxu0 %v396_v26  ;;  %v390_v31 = vld [vmem:[#allocation5 + $0x90] sm:$0xff]  ;;  %v381_v32 = vld [vmem:[#allocation5 + $0x48] sm:$0xff]  ;;  %v383_v33 = vld [vmem:[#allocation5 + $0x58] sm:$0xff]  ;;  %p12665_p0 = scmp.ne.s32.totalorder %s9409_s8, %s12664_s16  ;;  %s12752_s22 = smov [#allocation11]  }
  0x8d   : > { %601 = vmatpush1.msra.mxu1 %v398_v27  ;;  %531 = vmatprep.subr.mxu0 %v389_v28  ;;  %v380_v34 = vld [vmem:[#allocation5 + $0x40] sm:$0xff]  ;;  %v382_v35 = vld [vmem:[#allocation5 + $0x50] sm:$0xff]  ;;  %v373_v36 = vld [vmem:[#allocation5 + $0x8] sm:$0xff]  ;;  %s12668_s26 = sshll.u32 %s12752_s22, 4  ;;  %s12669_s26 = int_to_ptr.vmem [resolvable:$false] %s12668_s26 }
  0x8e   : > { %602 = vmatprep.subr.mxu1 %v391_v29  ;;  %532 = vmatpush1.msra.mxu0 %v388_v30  ;;  %v375_v37 = vld [vmem:[#allocation5 + $0x18] sm:$0xff]  ;;  %v372_v38 = vld [vmem:[#allocation5] sm:$0xff]  ;;  %v374_v39 = vld [vmem:[#allocation5 + $0x10] sm:$0xff]  ;;  %p12666_p7 = pnand %p12665_p0, %p14502_p12  ;;  %s12670_s23 = scalar_lea.vmem %s12669_s26, 1152 }
  0x8f   : > { %358 = vadd.xlane.f32.xlu1 %v357_v18  ;;  %603 = vmatpush1.msra.mxu1 %v390_v31  ;;  %v401_v40 = vld [vmem:[#allocation5 + $0xe8] sm:$0xff]  ;;  %v403_v41 = vld [vmem:[#allocation5 + $0xf8] sm:$0xff]  ;;  %v400_v16 = vld [vmem:[#allocation5 + $0xe0] sm:$0xff]  ;;  %p12671_p13 = scmp.lt.s32.totalorder %s9409_s8, %s12669_s26  ;;  %p12672_p3 = scmp.lt.s32.totalorder %s12670_s23, %s12664_s16 }
  0x90   : > { %346 = vadd.xlane.f32.xlu0 %v345_v21  ;;  %533 = vmatprep.subr.mxu0 %v381_v32  ;;  %v402_v17 = vld [vmem:[#allocation5 + $0xf0] sm:$0xff]  ;;  %v393_v20 = vld [vmem:[#allocation5 + $0xa8] sm:$0xff]  ;;  %v395_v21 = vld [vmem:[#allocation5 + $0xb8] sm:$0xff]  ;;  %p12667_p4 = pneg %p12666_p7 }
  0x91   : > { %604 = vmatprep.subr.mxu1 %v383_v33  ;;  %534 = vmatpush1.msra.mxu0 %v380_v34  ;;  %v394_v24 = vld [vmem:[#allocation5 + $0xb0] sm:$0xff]  ;;  %v385_v26 = vld [vmem:[#allocation5 + $0x68] sm:$0xff]  ;;  %v387_v27 = vld [vmem:[#allocation5 + $0x78] sm:$0xff]  ;;  %p12673_p8 = por %p12672_p3, %p12671_p13 }
  0x92   : > { %605 = vmatpush1.msra.mxu1 %v382_v35  ;;  %535 = vmatprep.subr.mxu0 %v373_v36  ;;  %v384_v28 = vld [vmem:[#allocation5 + $0x60] sm:$0xff]  ;;  %v386_v29 = vld [vmem:[#allocation5 + $0x70] sm:$0xff]  ;;  %v377_v30 = vld [vmem:[#allocation5 + $0x28] sm:$0xff] }
  0x93   : > { %361 = vadd.xlane.f32.xlu1 %v360_v22  ;;  %606 = vmatprep.subr.mxu1 %v375_v37  ;;  %v379_v31 = vld [vmem:[#allocation5 + $0x38] sm:$0xff]  ;;  %v376_v32 = vld [vmem:[#allocation5 + $0x20] sm:$0xff]  ;;  %v378_v33 = vld [vmem:[#allocation5 + $0x30] sm:$0xff]  ;;  %p12674_p9 = pnand %p12673_p8, %p12667_p4 }
  0x94   : > { %349 = vadd.xlane.f32.xlu0 %v348_v23  ;;  %536 = vmatpush1.msra.mxu0 %v372_v38  ;;  %v392_v23 = vld [vmem:[#allocation5 + $0xa0] sm:$0xff]  ;;  %v10808_v38 = vld [vmem:[%s12965_s11 + $0x364] ss:$72 sps:$4 sm:$0xff]   ;;  %v10821_v49 = vld [vmem:[%s12965_s11 + $0xb40] ss:$72 sps:$4 sm:$0xff]  }
  0x95   : > { %607 = vmatpush1.msra.mxu1 %v374_v39  ;;  %671 = vmatprep.subr.mxu0 %v401_v40  ;;  %v10802_v34 = vld [vmem:[%s12965_s11 + $0x3f4] ss:$72 sps:$4 sm:$0xff]   ;;  %v10800_v36 = vld [vmem:[%s12965_s11 + $0x3f0] ss:$72 sps:$4 sm:$0xff]   ;;  %v10811_v39 = vld [vmem:[%s12965_s11 + $0xc64] ss:$72 sps:$4 sm:$0xff]  }
  0x96   : > { %742 = vmatprep.subr.mxu1 %v403_v41  ;;  %v10805_v35 = vld [vmem:[%s12965_s11 + $0xcf4] ss:$72 sps:$4 sm:$0xff]   ;;  %v10803_v37 = vld [vmem:[%s12965_s11 + $0xcf0] ss:$72 sps:$4 sm:$0xff]   ;;  %v10806_v40 = vld [vmem:[%s12965_s11 + $0x360] ss:$72 sps:$4 sm:$0xff]  }
  0x97   : > { %v10809_v41 = vld [vmem:[%s12965_s11 + $0xc60] ss:$72 sps:$4 sm:$0xff]   ;;  %v10814_v43 = vld [vmem:[%s12965_s11 + $0x2d4] ss:$72 sps:$4 sm:$0xff]   ;;  %v10815_v45 = vld [vmem:[%s12965_s11 + $0xbd0] ss:$72 sps:$4 sm:$0xff]  }
  0x98   : > { %v10823_v47 = vld [vmem:[%s12965_s11 + $0xb44] ss:$72 sps:$4 sm:$0xff]   ;;  %v10827_v54 = vld [vmem:[%s12965_s11 + $0xab0] ss:$72 sps:$4 sm:$0xff]  }
 0x110   : > { %v353_v44 = vpop.xlane.xlu1 %352 }
 0x111   : > { %v341_v46 = vpop.xlane.xlu0 %340  ;;  %v368_v59 = vmul.f32 0.00390625, %v353_v44  ;;  %v10817_v44 = vld [vmem:[%s12965_s11 + $0xbd4] ss:$72 sps:$4 sm:$0xff]  }
 0x112   : > { %v364_v62 = vmul.f32 0.00390625, %v341_v46  ;;  %v10820_v46 = vld [vmem:[%s12965_s11 + $0x244] ss:$72 sps:$4 sm:$0xff]  }
 0x113   : > { %v484_v5 = vrot.slane %v368_v59, %v458_v58  ;;  %v10838_v59 = vld [vmem:[%s12965_s11 + $0x94] ss:$72 sps:$4 sm:$0xff]  }
 0x114   : > { %v356_v48 = vpop.xlane.xlu1 %355  ;;  %v459_v9 = vrot.slane %v364_v62, %v458_v58  ;;  %v10833_v58 = vld [vmem:[%s12965_s11 + $0xa20] ss:$72 sps:$4 sm:$0xff]   ;;  %v10839_v62 = vld [vmem:[%s12965_s11 + $0x990] ss:$72 sps:$4 sm:$0xff]  }
 0x115   : > { %v344_v51 = vpop.xlane.xlu0 %343  ;;  %v369_v53 = vmul.f32 0.00390625, %v356_v48  ;;  %v10818_v48 = vld [vmem:[%s12965_s11 + $0x240] ss:$72 sps:$4 sm:$0xff]  }
 0x116   : > { %v365_v55 = vmul.f32 0.00390625, %v344_v51  ;;  %v10826_v51 = vld [vmem:[%s12965_s11 + $0x1b4] ss:$72 sps:$4 sm:$0xff]  }
 0x117   : > { %v488_v0 = vrot.slane %v369_v53, %v463_v52  ;;  %v10824_v53 = vld [vmem:[%s12965_s11 + $0x1b0] ss:$72 sps:$4 sm:$0xff]  }
 0x118   : > { %v359_v57 = vpop.xlane.xlu1 %358  ;;  %v464_v2 = vrot.slane %v365_v55, %v463_v52  ;;  %v10829_v52 = vld [vmem:[%s12965_s11 + $0xab4] ss:$72 sps:$4 sm:$0xff]   ;;  %v10832_v55 = vld [vmem:[%s12965_s11 + $0x124] ss:$72 sps:$4 sm:$0xff]  }
 0x119   : > { %v370_v60 = vmul.f32 0.00390625, %v359_v57  ;;  %v347_v61 = vpop.xlane.xlu0 %346  ;;  %v489_v11 = vsel %vm465_vm0, %v488_v0, %v484_v5  ;;  %v10830_v57 = vld [vmem:[%s12965_s11 + $0x120] ss:$72 sps:$4 sm:$0xff]   ;;  %v10847_v0 = vld [vmem:[%s12965_s11 + $0x904] ss:$72 sps:$4 sm:$0xff]  }
 0x11a   : > { %v366_v63 = vmul.f32 0.00390625, %v347_v61  ;;  %v466_v13 = vsel %vm465_vm0, %v464_v2, %v459_v9  ;;  %v10836_v61 = vld [vmem:[%s12965_s11 + $0x90] ss:$72 sps:$4 sm:$0xff]   ;;  %v10845_v2 = vld [vmem:[%s12965_s11 + $0x900] ss:$72 sps:$4 sm:$0xff]  }
 0x11b   : > { %v493_v3 = vrot.slane %v370_v60, %v470_v56  ;;  %v10841_v60 = vld [vmem:[%s12965_s11 + $0x994] ss:$72 sps:$4 sm:$0xff]   ;;  %v10848_v5 = vld [vmem:[%s12965_s11 + $0x870] ss:$72 sps:$4 sm:$0xff]   ;;  %v10854_v9 = vld [vmem:[%s12965_s11 + $0x7e0] ss:$72 sps:$4 sm:$0xff]  }
 0x11c   : > { %v362_v4 = vpop.xlane.xlu1 %361  ;;  %v471_v6 = vrot.slane %v366_v63, %v470_v56  ;;  %v10835_v56 = vld [vmem:[%s12965_s11 + $0xa24] ss:$72 sps:$4 sm:$0xff]  }
 0x11d   : > { %v371_v7 = vmul.f32 0.00390625, %v362_v4  ;;  %v350_v8 = vpop.xlane.xlu0 %349  ;;  %v494_v14 = vsel %vm472_vm1, %v493_v3, %v489_v11  ;;  %v10844_v63 = vld [vmem:[%s12965_s11 + $0x4] ss:$72 sps:$4 sm:$0xff]   ;;  %v10850_v3 = vld [vmem:[%s12965_s11 + $0x874] ss:$72 sps:$4 sm:$0xff]  }
 0x11e   : > { %v367_v10 = vmul.f32 0.00390625, %v350_v8  ;;  %v473_v18 = vsel %vm472_vm1, %v471_v6, %v466_v13  ;;  %v10853_v4 = vld [vmem:[%s12965_s11 + $0x1174] ss:$72 sps:$4 sm:$0xff]   ;;  %v10851_v6 = vld [vmem:[%s12965_s11 + $0x1170] ss:$72 sps:$4 sm:$0xff]  }
 0x11f   : > { %v498_v12 = vrot.slane %v371_v7, %v477_v1  ;;  %v10856_v7 = vld [vmem:[%s12965_s11 + $0x7e4] ss:$72 sps:$4 sm:$0xff]   ;;  %v10862_v11 = vld [vmem:[%s12965_s11 + $0x754] ss:$72 sps:$4 sm:$0xff]   ;;  %v10860_v13 = vld [vmem:[%s12965_s11 + $0x750] ss:$72 sps:$4 sm:$0xff]  }
 0x120   : > { %v478_v15 = vrot.slane %v367_v10, %v477_v1  ;;  %v10842_v1 = vld [vmem:[%s12965_s11] ss:$72 sps:$4 sm:$0xff]   ;;  %v10859_v8 = vld [vmem:[%s12965_s11 + $0x10e4] ss:$72 sps:$4 sm:$0xff]  }
 0x121   : > { %v499_v19 = vsel %vm479_vm2, %v498_v12, %v494_v14  ;;  %v10857_v10 = vld [vmem:[%s12965_s11 + $0x10e0] ss:$72 sps:$4 sm:$0xff]   ;;  %v10865_v12 = vld [vmem:[%s12965_s11 + $0x1054] ss:$72 sps:$4 sm:$0xff]   ;;  %v10863_v14 = vld [vmem:[%s12965_s11 + $0x1050] ss:$72 sps:$4 sm:$0xff]  }
 0x122   : > { %v480_v22 = vsel %vm479_vm2, %v478_v15, %v473_v18  ;;  %v10868_v15 = vld [vmem:[%s12965_s11 + $0x6c4] ss:$72 sps:$4 sm:$0xff]   ;;  %v10869_v18 = vld [vmem:[%s12965_s11 + $0xfc0] ss:$72 sps:$4 sm:$0xff]  }
 0x123   : > { %v501_v25 = vsel %vm500_vm3, %v499_v19, %v480_v22  ;;  %v10874_v19 = vld [vmem:[%s12965_s11 + $0x634] ss:$72 sps:$4 sm:$0xff]   ;;  %v10875_v22 = vld [vmem:[%s12965_s11 + $0xf30] ss:$72 sps:$4 sm:$0xff]  }
 0x124   : > { %9541 = vmatmul.mubr.msk.f32.vlgmr.msra.gmra.mxu0 %vm502_vm4, %v501_v25  ;;  %9542 = vmatmul.mubr.msk.f32.vlgmr.msra.gmra.mxu1 %vm502_vm4, %v501_v25 }
 0x125   : > { %672 = vmatpush1.msra.mxu0 %v400_v16  ;;  %743 = vmatpush1.msra.mxu1 %v402_v17  ;;  %v10871_v16 = vld [vmem:[%s12965_s11 + $0xfc4] ss:$72 sps:$4 sm:$0xff]   ;;  %v10866_v17 = vld [vmem:[%s12965_s11 + $0x6c0] ss:$72 sps:$4 sm:$0xff]  }
 0x126   : > { %673 = vmatprep.subr.mxu0 %v393_v20  ;;  %744 = vmatprep.subr.mxu1 %v395_v21  ;;  %v10877_v20 = vld [vmem:[%s12965_s11 + $0xf34] ss:$72 sps:$4 sm:$0xff]   ;;  %v10872_v21 = vld [vmem:[%s12965_s11 + $0x630] ss:$72 sps:$4 sm:$0xff]  }
 0x127   : > { %674 = vmatpush1.msra.mxu0 %v392_v23  ;;  %745 = vmatpush1.msra.mxu1 %v394_v24  ;;  %v10880_v23 = vld [vmem:[%s12965_s11 + $0x5a4] ss:$72 sps:$4 sm:$0xff]  }
 0x128   : > { %675 = vmatprep.subr.mxu0 %v385_v26  ;;  %746 = vmatprep.subr.mxu1 %v387_v27  ;;  %v10883_v24 = vld [vmem:[%s12965_s11 + $0xea4] ss:$72 sps:$4 sm:$0xff]   ;;  %v10881_v26 = vld [vmem:[%s12965_s11 + $0xea0] ss:$72 sps:$4 sm:$0xff]   ;;  %v10886_v27 = vld [vmem:[%s12965_s11 + $0x514] ss:$72 sps:$4 sm:$0xff]  }
 0x129   : > { %676 = vmatpush1.msra.mxu0 %v384_v28  ;;  %747 = vmatpush1.msra.mxu1 %v386_v29  ;;  %v10889_v28 = vld [vmem:[%s12965_s11 + $0xe14] ss:$72 sps:$4 sm:$0xff]   ;;  %v10884_v29 = vld [vmem:[%s12965_s11 + $0x510] ss:$72 sps:$4 sm:$0xff]  }
 0x12a   : > { %677 = vmatprep.subr.mxu0 %v377_v30  ;;  %748 = vmatprep.subr.mxu1 %v379_v31  ;;  %v10887_v30 = vld [vmem:[%s12965_s11 + $0xe10] ss:$72 sps:$4 sm:$0xff]   ;;  %v10892_v31 = vld [vmem:[%s12965_s11 + $0x484] ss:$72 sps:$4 sm:$0xff]  }
 0x12b   : > { %678 = vmatpush1.msra.mxu0 %v376_v32  ;;  %711 = vmatprep.mubr.f32.mxu0 %v12750_v42  ;;  %v10895_v32 = vld [vmem:[%s12965_s11 + $0xd84] ss:$72 sps:$4 sm:$0xff]  }
 0x12c   : > { %749 = vmatpush1.msra.mxu1 %v378_v33  ;;  %782 = vmatprep.mubr.f32.mxu1 %v12750_v42  ;;  %v10812_v42 = vld [vmem:[%s12965_s11 + $0x2d0] ss:$72 sps:$4 sm:$0xff]   ;;  %v10890_v33 = vld [vmem:[%s12965_s11 + $0x480] ss:$72 sps:$4 sm:$0xff]  }
 0x12d   : > { %9543 = vmatmul.mubr.msk.f32.vlgmr.msra.gmra.mxu0 %vm502_vm4, %v501_v25  ;;  %9544 = vmatmul.mubr.msk.f32.vlgmr.msra.gmra.mxu1 %vm502_vm4, %v501_v25  ;;  %v10878_v25 = vld [vmem:[%s12965_s11 + $0x5a0] ss:$72 sps:$4 sm:$0xff]  }
 0x12e   : > { %7813 = vmatprep.subr.bf16.mxu0 %v10802_v34  ;;  %7854 = vmatprep.subr.bf16.mxu1 %v10805_v35  ;;  %v10893_v34 = vld [vmem:[%s12965_s11 + $0xd80] ss:$72 sps:$4 sm:$0xff]   ;;  %v10898_v35 = vld [vmem:[%s12965_s11 + $0x15f4] ss:$72 sps:$4 sm:$0xff]  }
 0x12f   : > { %7814 = vmatpush1.bf16.msra.mxu0 %v10800_v36  ;;  %7855 = vmatpush1.bf16.msra.mxu1 %v10803_v37  ;;  %v10901_v36 = vld [vmem:[%s12965_s11 + $0x1ef4] ss:$72 sps:$4 sm:$0xff]  }
 0x130   : > { %7815 = vmatprep.subr.bf16.mxu0 %v10808_v38  ;;  %7856 = vmatprep.subr.bf16.mxu1 %v10811_v39  ;;  %v13051_v37 = vld [vmem:[#allocation7] sm:$0xff]  ;;  %v13054_v38 = vsub.s32 0, %v12973_v50  ;;  %v13057_v39 = vsub.s32 2, %v12973_v50 }
 0x133   : > { %7816 = vmatpush1.bf16.msra.mxu0 %v10806_v40  ;;  %7857 = vmatpush1.bf16.msra.mxu1 %v10809_v41  ;;  %v13060_v40 = vsub.s32 1, %v12973_v50  ;;  %v13063_v41 = vsub.s32 3, %v12973_v50 }
 0x134   : > { %7817 = vmatprep.subr.bf16.mxu0 %v10814_v43  ;;  %7858 = vmatprep.subr.bf16.mxu1 %v10817_v44  ;;  %v409_v43 = vrot.slane %v13051_v37, %v13054_v38  ;;  %v417_v44 = vrot.slane %v13051_v37, %v13057_v39 }
 0x137   : > { %7818 = vmatpush1.bf16.msra.mxu0 %v10812_v42  ;;  %7859 = vmatpush1.bf16.msra.mxu1 %v10815_v45  ;;  %v413_v42 = vrot.slane %v13051_v37, %v13060_v40  ;;  %v421_v45 = vrot.slane %v13051_v37, %v13063_v41 }
 0x138   : > { %7819 = vmatprep.subr.bf16.mxu0 %v10820_v46  ;;  %7860 = vmatprep.subr.bf16.mxu1 %v10823_v47 }
 0x13b   : > { %7820 = vmatpush1.bf16.msra.mxu0 %v10818_v48  ;;  %7861 = vmatpush1.bf16.msra.mxu1 %v10821_v49 }
 0x13c   : > { %7821 = vmatprep.subr.bf16.mxu0 %v10826_v51  ;;  %7862 = vmatprep.subr.bf16.mxu1 %v10829_v52 }
 0x13f   : > { %7822 = vmatpush1.bf16.msra.mxu0 %v10824_v53  ;;  %7863 = vmatpush1.bf16.msra.mxu1 %v10827_v54 }
 0x140   : > { %7823 = vmatprep.subr.bf16.mxu0 %v10832_v55  ;;  %7864 = vmatprep.subr.bf16.mxu1 %v10835_v56 }
 0x143   : > { %7824 = vmatpush1.bf16.msra.mxu0 %v10830_v57  ;;  %7865 = vmatpush1.bf16.msra.mxu1 %v10833_v58  ;;  %v13074_v57 = vsub.s32 5, %v12973_v50  ;;  %v13077_v58 = vsub.s32 7, %v12973_v50 }
 0x144   : > { %7825 = vmatprep.subr.bf16.mxu0 %v10838_v59  ;;  %7866 = vmatprep.subr.bf16.mxu1 %v10841_v60 }
 0x147   : > { %7826 = vmatpush1.bf16.msra.mxu0 %v10836_v61  ;;  %7867 = vmatpush1.bf16.msra.mxu1 %v10839_v62  ;;  %v10896_v61 = vld [vmem:[%s12965_s11 + $0x15f0] ss:$72 sps:$4 sm:$0xff]  }
 0x148   : > { %7827 = vmatprep.subr.bf16.mxu0 %v10844_v63  ;;  %7868 = vmatprep.subr.bf16.mxu1 %v10847_v0  ;;  %v10899_v62 = vld [vmem:[%s12965_s11 + $0x1ef0] ss:$72 sps:$4 sm:$0xff]   ;;  %v10904_v63 = vld [vmem:[%s12965_s11 + $0x1564] ss:$72 sps:$4 sm:$0xff]  }
 0x149   : > { %v10907_v0 = vld [vmem:[%s12965_s11 + $0x1e64] ss:$72 sps:$4 sm:$0xff]  }
 0x14b   : > { %7828 = vmatpush1.bf16.msra.mxu0 %v10842_v1  ;;  %7869 = vmatpush1.bf16.msra.mxu1 %v10845_v2 }
 0x14c   : > { %7829 = vmatprep.subr.bf16.mxu0 %v10850_v3  ;;  %7870 = vmatprep.subr.bf16.mxu1 %v10853_v4 }
 0x14f   : > { %7830 = vmatpush2.bf16.msra.mxu0 %v10848_v5  ;;  %7871 = vmatpush2.bf16.msra.mxu1 %v10851_v6  ;;  %v429_v5 = vrot.slane %v13051_v37, %v13074_v57  ;;  %v437_v6 = vrot.slane %v13051_v37, %v13077_v58 }
 0x150   : > { %7831 = vmatprep.subr.bf16.mxu0 %v10856_v7  ;;  %7872 = vmatprep.subr.bf16.mxu1 %v10859_v8 }
 0x153   : > { %7832 = vmatpush2.bf16.msra.mxu0 %v10854_v9  ;;  %7873 = vmatpush2.bf16.msra.mxu1 %v10857_v10  ;;  %v10902_v9 = vld [vmem:[%s12965_s11 + $0x1560] ss:$72 sps:$4 sm:$0xff]  }
 0x154   : > { %7833 = vmatprep.subr.bf16.mxu0 %v10862_v11  ;;  %7874 = vmatprep.subr.bf16.mxu1 %v10865_v12  ;;  %v10905_v10 = vld [vmem:[%s12965_s11 + $0x1e60] ss:$72 sps:$4 sm:$0xff]   ;;  %v10910_v11 = vld [vmem:[%s12965_s11 + $0x14d4] ss:$72 sps:$4 sm:$0xff]  }
 0x155   : > { %v10913_v12 = vld [vmem:[%s12965_s11 + $0x1dd4] ss:$72 sps:$4 sm:$0xff]  }
 0x157   : > { %7834 = vmatpush2.bf16.msra.mxu0 %v10860_v13  ;;  %7875 = vmatpush2.bf16.msra.mxu1 %v10863_v14 }
 0x158   : > { %7835 = vmatprep.subr.bf16.mxu0 %v10868_v15  ;;  %7876 = vmatprep.subr.bf16.mxu1 %v10871_v16 }
 0x15b   : > { %7836 = vmatpush2.bf16.msra.mxu0 %v10866_v17  ;;  %7877 = vmatpush2.bf16.msra.mxu1 %v10869_v18  ;;  %v10908_v17 = vld [vmem:[%s12965_s11 + $0x14d0] ss:$72 sps:$4 sm:$0xff]  }
 0x15c   : > { %7837 = vmatprep.subr.bf16.mxu0 %v10874_v19  ;;  %7878 = vmatprep.subr.bf16.mxu1 %v10877_v20  ;;  %v10911_v20 = vld [vmem:[%s12965_s11 + $0x1dd0] ss:$72 sps:$4 sm:$0xff]  }
 0x15f   : > { %7838 = vmatpush2.bf16.msra.mxu0 %v10872_v21  ;;  %7879 = vmatpush2.bf16.msra.mxu1 %v10875_v22 }
 0x160   : > { %7839 = vmatprep.subr.bf16.mxu0 %v10880_v23  ;;  %7880 = vmatprep.subr.bf16.mxu1 %v10883_v24  ;;  %v10916_v23 = vld [vmem:[%s12965_s11 + $0x1444] ss:$72 sps:$4 sm:$0xff]  }
 0x161   : > { %v10919_v24 = vld [vmem:[%s12965_s11 + $0x1d44] ss:$72 sps:$4 sm:$0xff]  }
 0x163   : > { %7840 = vmatpush2.bf16.msra.mxu0 %v10878_v25  ;;  %7881 = vmatpush2.bf16.msra.mxu1 %v10881_v26  ;;  %v10914_v25 = vld [vmem:[%s12965_s11 + $0x1440] ss:$72 sps:$4 sm:$0xff]  }
 0x164   : > { %7841 = vmatprep.subr.bf16.mxu0 %v10886_v27  ;;  %7882 = vmatprep.subr.bf16.mxu1 %v10889_v28  ;;  %v10917_v26 = vld [vmem:[%s12965_s11 + $0x1d40] ss:$72 sps:$4 sm:$0xff]   ;;  %v10922_v27 = vld [vmem:[%s12965_s11 + $0x13b4] ss:$72 sps:$4 sm:$0xff]  }
 0x165   : > { %v10925_v28 = vld [vmem:[%s12965_s11 + $0x1cb4] ss:$72 sps:$4 sm:$0xff]  }
 0x167   : > { %7842 = vmatpush2.bf16.msra.mxu0 %v10884_v29  ;;  %7883 = vmatpush2.bf16.msra.mxu1 %v10887_v30  ;;  %v10920_v29 = vld [vmem:[%s12965_s11 + $0x13b0] ss:$72 sps:$4 sm:$0xff]  }
 0x168   : > { %7843 = vmatprep.subr.bf16.mxu0 %v10892_v31  ;;  %7884 = vmatprep.subr.bf16.mxu1 %v10895_v32  ;;  %v10923_v30 = vld [vmem:[%s12965_s11 + $0x1cb0] ss:$72 sps:$4 sm:$0xff]   ;;  %v10928_v31 = vld [vmem:[%s12965_s11 + $0x1324] ss:$72 sps:$4 sm:$0xff]  }
 0x169   : > { %v10931_v32 = vld [vmem:[%s12965_s11 + $0x1c24] ss:$72 sps:$4 sm:$0xff]  }
 0x16b   : > { %7844 = vmatpush2.bf16.msra.mxu0 %v10890_v33  ;;  %7885 = vmatpush2.bf16.msra.mxu1 %v10893_v34  ;;  %v10926_v33 = vld [vmem:[%s12965_s11 + $0x1320] ss:$72 sps:$4 sm:$0xff]  }
 0x16c   : > { %7895 = vmatprep.subr.bf16.mxu0 %v10898_v35  ;;  %7936 = vmatprep.subr.bf16.mxu1 %v10901_v36  ;;  %v10929_v34 = vld [vmem:[%s12965_s11 + $0x1c20] ss:$72 sps:$4 sm:$0xff]   ;;  %v10934_v35 = vld [vmem:[%s12965_s11 + $0x1294] ss:$72 sps:$4 sm:$0xff]  }
 0x16d   : > { %v10937_v36 = vld [vmem:[%s12965_s11 + $0x1b94] ss:$72 sps:$4 sm:$0xff]  }
 0x1e4   : > { %v571_v46 = vpop.f32.mrf.mxu0  ;;  %v642_v47 = vpop.f32.mrf.mxu1 }
 0x1e5   : > { %v572_v48 = vadd.f32 %v571_v46, %v409_v43  ;;  %v643_v49 = vadd.f32 %v642_v47, %v417_v44  ;;  %v10932_v43 = vld [vmem:[%s12965_s11 + $0x1290] ss:$72 sps:$4 sm:$0xff]   ;;  %v10938_v46 = vld [vmem:[%s12965_s11 + $0x1200] ss:$72 sps:$4 sm:$0xff]  }
 0x1e6   : > { %v573_v51 = vpop.f32.mrf.mxu0  ;;  %v644_v52 = vpop.f32.mrf.mxu1  ;;  %v10935_v44 = vld [vmem:[%s12965_s11 + $0x1b90] ss:$72 sps:$4 sm:$0xff]   ;;  %v10941_v47 = vld [vmem:[%s12965_s11 + $0x1b00] ss:$72 sps:$4 sm:$0xff]  }
 0x1e7   : > { %v574_v53 = vadd.f32 %v573_v51, %v413_v42  ;;  %v645_v54 = vadd.f32 %v644_v52, %v421_v45  ;;  %v789_v55 = vmax.f32 %v572_v48, 0.0  ;;  %v791_v56 = vmax.f32 %v643_v49, 0.0  ;;  %v10940_v42 = vld [vmem:[%s12965_s11 + $0x1204] ss:$72 sps:$4 sm:$0xff]   ;;  %v10946_v48 = vld [vmem:[%s12965_s11 + $0x1a74] ss:$72 sps:$4 sm:$0xff]  }
 0x1e8   : > { %v10943_v45 = vld [vmem:[%s12965_s11 + $0x1b04] ss:$72 sps:$4 sm:$0xff]   ;;  %v10949_v49 = vld [vmem:[%s12965_s11 + $0x2374] ss:$72 sps:$4 sm:$0xff]   ;;  %v10944_v51 = vld [vmem:[%s12965_s11 + $0x1a70] ss:$72 sps:$4 sm:$0xff]  }
 0x1e9   : > { %v790_v59 = vmax.f32 %v574_v53, 0.0  ;;  %v792_v60 = vmax.f32 %v645_v54, 0.0  ;;  %v13087_v3 = vpack.c.bf16 %v789_v55, %v789_v55  ;;  %v13089_v4 = vpack.c.bf16 %v791_v56, %v791_v56  ;;  %v10947_v52 = vld [vmem:[%s12965_s11 + $0x2370] ss:$72 sps:$4 sm:$0xff]   ;;  %v10952_v53 = vld [vmem:[%s12965_s11 + $0x19e4] ss:$72 sps:$4 sm:$0xff]  }
 0x1ea   : > { %v10955_v54 = vld [vmem:[%s12965_s11 + $0x22e4] ss:$72 sps:$4 sm:$0xff]   ;;  %v10950_v55 = vld [vmem:[%s12965_s11 + $0x19e0] ss:$72 sps:$4 sm:$0xff]  }
 0x1eb   : > { %v13083_v1 = vpack.c.bf16 %v790_v59, %v790_v59  ;;  %v13085_v2 = vpack.c.bf16 %v792_v60, %v792_v60  ;;  %v10953_v56 = vld [vmem:[%s12965_s11 + $0x22e0] ss:$72 sps:$4 sm:$0xff]   ;;  %v10958_v59 = vld [vmem:[%s12965_s11 + $0x1954] ss:$72 sps:$4 sm:$0xff]  }
 0x1ec   : > { %v10961_v60 = vld [vmem:[%s12965_s11 + $0x2254] ss:$72 sps:$4 sm:$0xff]  }
 0x1ed   : > { %v13095_v7 = vpop.f32.mrf.mxu0  ;;  %v13097_v8 = vpop.f32.mrf.mxu1  ;;  %7845 = vmatprep.mubr.bf16.mxu0 %v13083_v1  ;;  %7886 = vmatprep.mubr.bf16.mxu1 %v13085_v2 }
 0x1ee   : > { %7846 = vmatmul.mubr.bf16.vlgmr.msra.gmra.mxu0 %v13087_v3  ;;  %7887 = vmatmul.mubr.bf16.vlgmr.msra.gmra.mxu1 %v13089_v4 }
 0x1ef   : > { %v715_v13 = vpop.f32.mrf.mxu0  ;;  %v786_v14 = vpop.f32.mrf.mxu1  ;;  %7896 = vmatpush1.bf16.msra.mxu0 %v10896_v61  ;;  %7937 = vmatpush1.bf16.msra.mxu1 %v10899_v62  ;;  %v10956_v61 = vld [vmem:[%s12965_s11 + $0x1950] ss:$72 sps:$4 sm:$0xff]  }
 0x1f0   : > { %v716_v15 = vadd.f32 %v715_v13, %v429_v5  ;;  %v787_v16 = vadd.f32 %v786_v14, %v437_v6  ;;  %7897 = vmatprep.subr.bf16.mxu0 %v10904_v63  ;;  %7938 = vmatprep.subr.bf16.mxu1 %v10907_v0  ;;  %v10959_v62 = vld [vmem:[%s12965_s11 + $0x2250] ss:$72 sps:$4 sm:$0xff]   ;;  %v10964_v63 = vld [vmem:[%s12965_s11 + $0x18c4] ss:$72 sps:$4 sm:$0xff]   ;;  %v10962_v5 = vld [vmem:[%s12965_s11 + $0x18c0] ss:$72 sps:$4 sm:$0xff]  }
 0x1f1   : > { %v10967_v0 = vld [vmem:[%s12965_s11 + $0x21c4] ss:$72 sps:$4 sm:$0xff]   ;;  %v10965_v6 = vld [vmem:[%s12965_s11 + $0x21c0] ss:$72 sps:$4 sm:$0xff]   ;;  %v13156_v13 = vsub.s32 4, %v12973_v50  ;;  %v13159_v14 = vsub.s32 6, %v12973_v50 }
 0x1f2   : > { %v794_v18 = vmax.f32 %v716_v15, 0.0  ;;  %v796_v19 = vmax.f32 %v787_v16, 0.0  ;;  %v10976_v15 = vld [vmem:[%s12965_s11 + $0x17a4] ss:$72 sps:$4 sm:$0xff]  }
 0x1f3   : > { %7898 = vmatpush1.bf16.msra.mxu0 %v10902_v9  ;;  %7939 = vmatpush1.bf16.msra.mxu1 %v10905_v10  ;;  %v10970_v9 = vld [vmem:[%s12965_s11 + $0x1834] ss:$72 sps:$4 sm:$0xff]   ;;  %v10979_v16 = vld [vmem:[%s12965_s11 + $0x20a4] ss:$72 sps:$4 sm:$0xff]  }
 0x1f4   : > { %v13109_v21 = vpack.c.bf16 %v794_v18, %v794_v18  ;;  %v13111_v22 = vpack.c.bf16 %v796_v19, %v796_v19  ;;  %7899 = vmatprep.subr.bf16.mxu0 %v10910_v11  ;;  %7940 = vmatprep.subr.bf16.mxu1 %v10913_v12  ;;  %v10973_v10 = vld [vmem:[%s12965_s11 + $0x2134] ss:$72 sps:$4 sm:$0xff]   ;;  %v10968_v11 = vld [vmem:[%s12965_s11 + $0x1830] ss:$72 sps:$4 sm:$0xff]   ;;  %v10977_v18 = vld [vmem:[%s12965_s11 + $0x20a0] ss:$72 sps:$4 sm:$0xff]   ;;  %v425_v19 = vrot.slane %v13051_v37, %v13156_v13 }
 0x1f5   : > { %v10971_v12 = vld [vmem:[%s12965_s11 + $0x2130] ss:$72 sps:$4 sm:$0xff]  }
 0x1f6   : > { %7927 = vmatprep.mubr.bf16.mxu0 %v13109_v21  ;;  %7968 = vmatprep.mubr.bf16.mxu1 %v13111_v22 }
 0x1f7   : > { %7900 = vmatpush1.bf16.msra.mxu0 %v10908_v17  ;;  %7941 = vmatpush1.bf16.msra.mxu1 %v10911_v20  ;;  %v10974_v17 = vld [vmem:[%s12965_s11 + $0x17a0] ss:$72 sps:$4 sm:$0xff]   ;;  %v433_v20 = vrot.slane %v13051_v37, %v13159_v14  ;;  %v10988_v37 = vld [vmem:[%s12965_s11 + $0x1684] ss:$72 sps:$4 sm:$0xff]  }
 0x1f8   : > { %7901 = vmatprep.subr.bf16.mxu0 %v10916_v23  ;;  %7942 = vmatprep.subr.bf16.mxu1 %v10919_v24  ;;  %v10982_v23 = vld [vmem:[%s12965_s11 + $0x1714] ss:$72 sps:$4 sm:$0xff]  }
 0x1f9   : > { %v10985_v24 = vld [vmem:[%s12965_s11 + $0x2014] ss:$72 sps:$4 sm:$0xff]  }
 0x1fb   : > { %7902 = vmatpush1.bf16.msra.mxu0 %v10914_v25  ;;  %7943 = vmatpush1.bf16.msra.mxu1 %v10917_v26  ;;  %v10980_v25 = vld [vmem:[%s12965_s11 + $0x1710] ss:$72 sps:$4 sm:$0xff]  }
 0x1fc   : > { %7903 = vmatprep.subr.bf16.mxu0 %v10922_v27  ;;  %7944 = vmatprep.subr.bf16.mxu1 %v10925_v28  ;;  %v10983_v26 = vld [vmem:[%s12965_s11 + $0x2010] ss:$72 sps:$4 sm:$0xff]   ;;  %v714_v27 = vadd.f32 %v13095_v7, %v425_v19  ;;  %v785_v28 = vadd.f32 %v13097_v8, %v433_v20  ;;  %v10994_v7 = vld [vmem:[%s12965_s11 + $0x3fc] ss:$72 sps:$4 sm:$0xff]  }
 0x1fd   : > { %v10992_v8 = vld [vmem:[%s12965_s11 + $0x3f8] ss:$72 sps:$4 sm:$0xff]   ;;  %v11045_v20 = vld [vmem:[%s12965_s11 + $0x117c] ss:$72 sps:$4 sm:$0xff]  }
 0x1fe   : > { %v11040_v19 = vld [vmem:[%s12965_s11 + $0x878] ss:$72 sps:$4 sm:$0xff]  }
 0x1ff   : > { %7904 = vmatpush1.bf16.msra.mxu0 %v10920_v29  ;;  %7945 = vmatpush1.bf16.msra.mxu1 %v10923_v30  ;;  %v10991_v29 = vld [vmem:[%s12965_s11 + $0x1f84] ss:$72 sps:$4 sm:$0xff]   ;;  %v10986_v30 = vld [vmem:[%s12965_s11 + $0x1680] ss:$72 sps:$4 sm:$0xff]  }
 0x200   : > { %7905 = vmatprep.subr.bf16.mxu0 %v10928_v31  ;;  %7946 = vmatprep.subr.bf16.mxu1 %v10931_v32  ;;  %v10989_v31 = vld [vmem:[%s12965_s11 + $0x1f80] ss:$72 sps:$4 sm:$0xff]   ;;  %v793_v32 = vmax.f32 %v714_v27, 0.0 }
 0x201   : > { %v11049_v27 = vld [vmem:[%s12965_s11 + $0x10e8] ss:$72 sps:$4 sm:$0xff]  }
 0x203   : > { %7906 = vmatpush1.bf16.msra.mxu0 %v10926_v33  ;;  %7947 = vmatpush1.bf16.msra.mxu1 %v10929_v34  ;;  %v795_v33 = vmax.f32 %v785_v28, 0.0  ;;  %v10997_v34 = vld [vmem:[%s12965_s11 + $0xcfc] ss:$72 sps:$4 sm:$0xff]  }
 0x204   : > { %7907 = vmatprep.subr.bf16.mxu0 %v10934_v35  ;;  %7948 = vmatprep.subr.bf16.mxu1 %v10937_v36  ;;  %v10995_v35 = vld [vmem:[%s12965_s11 + $0xcf8] ss:$72 sps:$4 sm:$0xff]   ;;  %v11000_v36 = vld [vmem:[%s12965_s11 + $0x36c] ss:$72 sps:$4 sm:$0xff]   ;;  %v11054_v28 = vld [vmem:[%s12965_s11 + $0x75c] ss:$72 sps:$4 sm:$0xff]  }
 0x207   : > { %7908 = vmatpush1.bf16.msra.mxu0 %v10932_v43  ;;  %7949 = vmatpush1.bf16.msra.mxu1 %v10935_v44  ;;  %v11003_v43 = vld [vmem:[%s12965_s11 + $0xc6c] ss:$72 sps:$4 sm:$0xff]   ;;  %v13185_v44 = vpack.c.bf16 %v793_v32, %v793_v32  ;;  %v11058_v32 = vld [vmem:[%s12965_s11 + $0x6c8] ss:$72 sps:$4 sm:$0xff]  }
 0x208   : > { %7909 = vmatprep.subr.bf16.mxu0 %v10940_v42  ;;  %7950 = vmatprep.subr.bf16.mxu1 %v10943_v45  ;;  %v13187_v42 = vpack.c.bf16 %v795_v33, %v795_v33  ;;  %v10998_v45 = vld [vmem:[%s12965_s11 + $0x368] ss:$72 sps:$4 sm:$0xff]   ;;  %v11063_v33 = vld [vmem:[%s12965_s11 + $0xfcc] ss:$72 sps:$4 sm:$0xff]  }
 0x20b   : > { %7910 = vmatpush1.bf16.msra.mxu0 %v10938_v46  ;;  %7951 = vmatpush1.bf16.msra.mxu1 %v10941_v47  ;;  %v11001_v46 = vld [vmem:[%s12965_s11 + $0xc68] ss:$72 sps:$4 sm:$0xff]   ;;  %v11006_v47 = vld [vmem:[%s12965_s11 + $0x2dc] ss:$72 sps:$4 sm:$0xff]  }
 0x20c   : > { %7911 = vmatprep.subr.bf16.mxu0 %v10946_v48  ;;  %7952 = vmatprep.subr.bf16.mxu1 %v10949_v49  ;;  %v11009_v48 = vld [vmem:[%s12965_s11 + $0xbdc] ss:$72 sps:$4 sm:$0xff]   ;;  %v11004_v49 = vld [vmem:[%s12965_s11 + $0x2d8] ss:$72 sps:$4 sm:$0xff]  }
 0x20f   : > { %7912 = vmatpush2.bf16.msra.mxu0 %v10944_v51  ;;  %7953 = vmatpush2.bf16.msra.mxu1 %v10947_v52  ;;  %v11007_v51 = vld [vmem:[%s12965_s11 + $0xbd8] ss:$72 sps:$4 sm:$0xff]   ;;  %v11012_v52 = vld [vmem:[%s12965_s11 + $0x24c] ss:$72 sps:$4 sm:$0xff]  }
 0x210   : > { %7913 = vmatprep.subr.bf16.mxu0 %v10952_v53  ;;  %7954 = vmatprep.subr.bf16.mxu1 %v10955_v54  ;;  %v11010_v53 = vld [vmem:[%s12965_s11 + $0x248] ss:$72 sps:$4 sm:$0xff]   ;;  %v11015_v54 = vld [vmem:[%s12965_s11 + $0xb4c] ss:$72 sps:$4 sm:$0xff]  }
 0x213   : > { %7914 = vmatpush2.bf16.msra.mxu0 %v10950_v55  ;;  %7955 = vmatpush2.bf16.msra.mxu1 %v10953_v56  ;;  %v11013_v55 = vld [vmem:[%s12965_s11 + $0xb48] ss:$72 sps:$4 sm:$0xff]   ;;  %v11018_v56 = vld [vmem:[%s12965_s11 + $0x1bc] ss:$72 sps:$4 sm:$0xff]  }
 0x214   : > { %7915 = vmatprep.subr.bf16.mxu0 %v10958_v59  ;;  %7956 = vmatprep.subr.bf16.mxu1 %v10961_v60  ;;  %v11016_v59 = vld [vmem:[%s12965_s11 + $0x1b8] ss:$72 sps:$4 sm:$0xff]   ;;  %v11021_v60 = vld [vmem:[%s12965_s11 + $0xabc] ss:$72 sps:$4 sm:$0xff]  }
 0x217   : > { %7916 = vmatpush2.bf16.msra.mxu0 %v10956_v61  ;;  %7957 = vmatpush2.bf16.msra.mxu1 %v10959_v62  ;;  %v11019_v61 = vld [vmem:[%s12965_s11 + $0xab8] ss:$72 sps:$4 sm:$0xff]   ;;  %v11024_v62 = vld [vmem:[%s12965_s11 + $0x12c] ss:$72 sps:$4 sm:$0xff]  }
 0x218   : > { %7917 = vmatprep.subr.bf16.mxu0 %v10964_v63  ;;  %7958 = vmatprep.subr.bf16.mxu1 %v10967_v0  ;;  %v11022_v63 = vld [vmem:[%s12965_s11 + $0x128] ss:$72 sps:$4 sm:$0xff]   ;;  %v11027_v0 = vld [vmem:[%s12965_s11 + $0xa2c] ss:$72 sps:$4 sm:$0xff]  }
 0x21b   : > { %7918 = vmatpush2.bf16.msra.mxu0 %v10962_v5  ;;  %7959 = vmatpush2.bf16.msra.mxu1 %v10965_v6  ;;  %v11025_v5 = vld [vmem:[%s12965_s11 + $0xa28] ss:$72 sps:$4 sm:$0xff]   ;;  %v11030_v6 = vld [vmem:[%s12965_s11 + $0x9c] ss:$72 sps:$4 sm:$0xff]  }
 0x21c   : > { %7919 = vmatprep.subr.bf16.mxu0 %v10970_v9  ;;  %7960 = vmatprep.subr.bf16.mxu1 %v10973_v10  ;;  %v11028_v9 = vld [vmem:[%s12965_s11 + $0x98] ss:$72 sps:$4 sm:$0xff]   ;;  %v11033_v10 = vld [vmem:[%s12965_s11 + $0x99c] ss:$72 sps:$4 sm:$0xff]  }
 0x21f   : > { %7920 = vmatpush2.bf16.msra.mxu0 %v10968_v11  ;;  %7961 = vmatpush2.bf16.msra.mxu1 %v10971_v12  ;;  %v11031_v11 = vld [vmem:[%s12965_s11 + $0x998] ss:$72 sps:$4 sm:$0xff]   ;;  %v11036_v12 = vld [vmem:[%s12965_s11 + $0xc] ss:$72 sps:$4 sm:$0xff]  }
 0x220   : > { %7921 = vmatprep.subr.bf16.mxu0 %v10976_v15  ;;  %7962 = vmatprep.subr.bf16.mxu1 %v10979_v16  ;;  %v11034_v15 = vld [vmem:[%s12965_s11 + $0x8] ss:$72 sps:$4 sm:$0xff]   ;;  %v11039_v16 = vld [vmem:[%s12965_s11 + $0x90c] ss:$72 sps:$4 sm:$0xff]  }
 0x223   : > { %7922 = vmatpush2.bf16.msra.mxu0 %v10974_v17  ;;  %7963 = vmatpush2.bf16.msra.mxu1 %v10977_v18  ;;  %v11037_v17 = vld [vmem:[%s12965_s11 + $0x908] ss:$72 sps:$4 sm:$0xff]   ;;  %v11042_v18 = vld [vmem:[%s12965_s11 + $0x87c] ss:$72 sps:$4 sm:$0xff]  }
 0x224   : > { %7923 = vmatprep.subr.bf16.mxu0 %v10982_v23  ;;  %7964 = vmatprep.subr.bf16.mxu1 %v10985_v24  ;;  %v11043_v23 = vld [vmem:[%s12965_s11 + $0x1178] ss:$72 sps:$4 sm:$0xff]   ;;  %v11048_v24 = vld [vmem:[%s12965_s11 + $0x7ec] ss:$72 sps:$4 sm:$0xff]  }
 0x227   : > { %7924 = vmatpush2.bf16.msra.mxu0 %v10980_v25  ;;  %7965 = vmatpush2.bf16.msra.mxu1 %v10983_v26  ;;  %v11046_v25 = vld [vmem:[%s12965_s11 + $0x7e8] ss:$72 sps:$4 sm:$0xff]   ;;  %v11051_v26 = vld [vmem:[%s12965_s11 + $0x10ec] ss:$72 sps:$4 sm:$0xff]  }
 0x228   : > { %7925 = vmatprep.subr.bf16.mxu0 %v10988_v37  ;;  %7966 = vmatprep.subr.bf16.mxu1 %v10991_v29  ;;  %v11052_v37 = vld [vmem:[%s12965_s11 + $0x758] ss:$72 sps:$4 sm:$0xff]   ;;  %v11057_v29 = vld [vmem:[%s12965_s11 + $0x105c] ss:$72 sps:$4 sm:$0xff]  }
 0x22b   : > { %7926 = vmatpush2.bf16.msra.mxu0 %v10986_v30  ;;  %7967 = vmatpush2.bf16.msra.mxu1 %v10989_v31  ;;  %v11055_v30 = vld [vmem:[%s12965_s11 + $0x1058] ss:$72 sps:$4 sm:$0xff]   ;;  %v11060_v31 = vld [vmem:[%s12965_s11 + $0x6cc] ss:$72 sps:$4 sm:$0xff]  }
 0x22c   : > { %7977 = vmatprep.subr.bf16.mxu0 %v10994_v7  ;;  %8018 = vmatprep.subr.bf16.mxu1 %v10997_v34  ;;  %v11061_v7 = vld [vmem:[%s12965_s11 + $0xfc8] ss:$72 sps:$4 sm:$0xff]   ;;  %v11066_v34 = vld [vmem:[%s12965_s11 + $0x63c] ss:$72 sps:$4 sm:$0xff]  }
 0x22e   : > { %7928 = vmatmul.mubr.bf16.vlgmr.msra.gmra.mxu0 %v13185_v44  ;;  %7969 = vmatmul.mubr.bf16.vlgmr.msra.gmra.mxu1 %v13187_v42 }
 0x22f   : > { %7978 = vmatpush1.bf16.msra.mxu0 %v10992_v8  ;;  %8009 = vmatprep.mubr.bf16.mxu0 %v13083_v1  ;;  %v11064_v8 = vld [vmem:[%s12965_s11 + $0x638] ss:$72 sps:$4 sm:$0xff]  }
 0x230   : > { %8019 = vmatpush1.bf16.msra.mxu1 %v10995_v35  ;;  %8050 = vmatprep.mubr.bf16.mxu1 %v13085_v2  ;;  %v11069_v35 = vld [vmem:[%s12965_s11 + $0xf3c] ss:$72 sps:$4 sm:$0xff]  }
 0x231   : > { %7979 = vmatprep.subr.bf16.mxu0 %v11000_v36  ;;  %8020 = vmatprep.subr.bf16.mxu1 %v11003_v43  ;;  %v11067_v36 = vld [vmem:[%s12965_s11 + $0xf38] ss:$72 sps:$4 sm:$0xff]   ;;  %v11072_v43 = vld [vmem:[%s12965_s11 + $0x5ac] ss:$72 sps:$4 sm:$0xff]  }
 0x233   : > { %7980 = vmatpush1.bf16.msra.mxu0 %v10998_v45  ;;  %v11070_v45 = vld [vmem:[%s12965_s11 + $0x5a8] ss:$72 sps:$4 sm:$0xff]  }
 0x234   : > { %8021 = vmatpush1.bf16.msra.mxu1 %v11001_v46  ;;  %7981 = vmatprep.subr.bf16.mxu0 %v11006_v47  ;;  %v11075_v46 = vld [vmem:[%s12965_s11 + $0xeac] ss:$72 sps:$4 sm:$0xff]   ;;  %v11073_v47 = vld [vmem:[%s12965_s11 + $0xea8] ss:$72 sps:$4 sm:$0xff]  }
 0x235   : > { %8022 = vmatprep.subr.bf16.mxu1 %v11009_v48  ;;  %v11078_v48 = vld [vmem:[%s12965_s11 + $0x51c] ss:$72 sps:$4 sm:$0xff]  }
 0x237   : > { %7982 = vmatpush1.bf16.msra.mxu0 %v11004_v49  ;;  %v11076_v49 = vld [vmem:[%s12965_s11 + $0x518] ss:$72 sps:$4 sm:$0xff]  }
 0x238   : > { %8023 = vmatpush1.bf16.msra.mxu1 %v11007_v51  ;;  %7983 = vmatprep.subr.bf16.mxu0 %v11012_v52  ;;  %v11081_v51 = vld [vmem:[%s12965_s11 + $0xe1c] ss:$72 sps:$4 sm:$0xff]   ;;  %v11079_v52 = vld [vmem:[%s12965_s11 + $0xe18] ss:$72 sps:$4 sm:$0xff]  }
 0x239   : > { %8024 = vmatprep.subr.bf16.mxu1 %v11015_v54  ;;  %v11082_v54 = vld [vmem:[%s12965_s11 + $0x488] ss:$72 sps:$4 sm:$0xff]  }
 0x23b   : > { %7984 = vmatpush1.bf16.msra.mxu0 %v11010_v53  ;;  %v11084_v53 = vld [vmem:[%s12965_s11 + $0x48c] ss:$72 sps:$4 sm:$0xff]  }
 0x23c   : > { %8025 = vmatpush1.bf16.msra.mxu1 %v11013_v55  ;;  %7985 = vmatprep.subr.bf16.mxu0 %v11018_v56  ;;  %v11087_v55 = vld [vmem:[%s12965_s11 + $0xd8c] ss:$72 sps:$4 sm:$0xff]   ;;  %v11085_v56 = vld [vmem:[%s12965_s11 + $0xd88] ss:$72 sps:$4 sm:$0xff]  }
 0x23d   : > { %8026 = vmatprep.subr.bf16.mxu1 %v11021_v60  ;;  %v11093_v60 = vld [vmem:[%s12965_s11 + $0x1efc] ss:$72 sps:$4 sm:$0xff]  }
 0x23f   : > { %7986 = vmatpush1.bf16.msra.mxu0 %v11016_v59  ;;  %v11090_v59 = vld [vmem:[%s12965_s11 + $0x15fc] ss:$72 sps:$4 sm:$0xff]  }
 0x240   : > { %8027 = vmatpush1.bf16.msra.mxu1 %v11019_v61  ;;  %7987 = vmatprep.subr.bf16.mxu0 %v11024_v62  ;;  %v11088_v61 = vld [vmem:[%s12965_s11 + $0x15f8] ss:$72 sps:$4 sm:$0xff]  }
 0x241   : > { %8028 = vmatprep.subr.bf16.mxu1 %v11027_v0  ;;  %v11091_v62 = vld [vmem:[%s12965_s11 + $0x1ef8] ss:$72 sps:$4 sm:$0xff]   ;;  %v11094_v0 = vld [vmem:[%s12965_s11 + $0x1568] ss:$72 sps:$4 sm:$0xff]  }
 0x243   : > { %7988 = vmatpush1.bf16.msra.mxu0 %v11022_v63  ;;  %v11096_v63 = vld [vmem:[%s12965_s11 + $0x156c] ss:$72 sps:$4 sm:$0xff]  }
 0x244   : > { %8029 = vmatpush1.bf16.msra.mxu1 %v11025_v5  ;;  %7989 = vmatprep.subr.bf16.mxu0 %v11030_v6  ;;  %v11097_v5 = vld [vmem:[%s12965_s11 + $0x1e68] ss:$72 sps:$4 sm:$0xff]   ;;  %v11099_v6 = vld [vmem:[%s12965_s11 + $0x1e6c] ss:$72 sps:$4 sm:$0xff]  }
 0x245   : > { %8030 = vmatprep.subr.bf16.mxu1 %v11033_v10  ;;  %v11105_v10 = vld [vmem:[%s12965_s11 + $0x1ddc] ss:$72 sps:$4 sm:$0xff]  }
 0x247   : > { %7990 = vmatpush1.bf16.msra.mxu0 %v11028_v9  ;;  %v11102_v9 = vld [vmem:[%s12965_s11 + $0x14dc] ss:$72 sps:$4 sm:$0xff]  }
 0x248   : > { %8031 = vmatpush1.bf16.msra.mxu1 %v11031_v11  ;;  %7991 = vmatprep.subr.bf16.mxu0 %v11036_v12  ;;  %v11100_v11 = vld [vmem:[%s12965_s11 + $0x14d8] ss:$72 sps:$4 sm:$0xff]  }
 0x249   : > { %8032 = vmatprep.subr.bf16.mxu1 %v11039_v16  ;;  %v11103_v12 = vld [vmem:[%s12965_s11 + $0x1dd8] ss:$72 sps:$4 sm:$0xff]   ;;  %v11111_v16 = vld [vmem:[%s12965_s11 + $0x1d4c] ss:$72 sps:$4 sm:$0xff]  }
 0x24b   : > { %7992 = vmatpush1.bf16.msra.mxu0 %v11034_v15  ;;  %v11108_v15 = vld [vmem:[%s12965_s11 + $0x144c] ss:$72 sps:$4 sm:$0xff]  }
 0x24c   : > { %8033 = vmatpush1.bf16.msra.mxu1 %v11037_v17  ;;  %7993 = vmatprep.subr.bf16.mxu0 %v11042_v18  ;;  %v11106_v17 = vld [vmem:[%s12965_s11 + $0x1448] ss:$72 sps:$4 sm:$0xff]  }
 0x24d   : > { %8034 = vmatprep.subr.bf16.mxu1 %v11045_v20  ;;  %v11109_v18 = vld [vmem:[%s12965_s11 + $0x1d48] ss:$72 sps:$4 sm:$0xff]   ;;  %v11112_v20 = vld [vmem:[%s12965_s11 + $0x13b8] ss:$72 sps:$4 sm:$0xff]  }
 0x24f   : > { %7994 = vmatpush2.bf16.msra.mxu0 %v11040_v19  ;;  %v11114_v19 = vld [vmem:[%s12965_s11 + $0x13bc] ss:$72 sps:$4 sm:$0xff]  }
 0x250   : > { %8035 = vmatpush2.bf16.msra.mxu1 %v11043_v23  ;;  %7995 = vmatprep.subr.bf16.mxu0 %v11048_v24  ;;  %v11117_v23 = vld [vmem:[%s12965_s11 + $0x1cbc] ss:$72 sps:$4 sm:$0xff]   ;;  %v11115_v24 = vld [vmem:[%s12965_s11 + $0x1cb8] ss:$72 sps:$4 sm:$0xff]  }
 0x251   : > { %8036 = vmatprep.subr.bf16.mxu1 %v11051_v26  ;;  %v11118_v26 = vld [vmem:[%s12965_s11 + $0x1328] ss:$72 sps:$4 sm:$0xff]  }
 0x253   : > { %7996 = vmatpush2.bf16.msra.mxu0 %v11046_v25  ;;  %v11120_v25 = vld [vmem:[%s12965_s11 + $0x132c] ss:$72 sps:$4 sm:$0xff]  }
 0x254   : > { %8037 = vmatpush2.bf16.msra.mxu1 %v11049_v27  ;;  %7997 = vmatprep.subr.bf16.mxu0 %v11054_v28  ;;  %v11123_v27 = vld [vmem:[%s12965_s11 + $0x1c2c] ss:$72 sps:$4 sm:$0xff]   ;;  %v11121_v28 = vld [vmem:[%s12965_s11 + $0x1c28] ss:$72 sps:$4 sm:$0xff]  }
 0x255   : > { %8038 = vmatprep.subr.bf16.mxu1 %v11057_v29  ;;  %v11124_v29 = vld [vmem:[%s12965_s11 + $0x1298] ss:$72 sps:$4 sm:$0xff]  }
 0x257   : > { %7998 = vmatpush2.bf16.msra.mxu0 %v11052_v37  ;;  %v11126_v37 = vld [vmem:[%s12965_s11 + $0x129c] ss:$72 sps:$4 sm:$0xff]  }
 0x258   : > { %8039 = vmatpush2.bf16.msra.mxu1 %v11055_v30  ;;  %7999 = vmatprep.subr.bf16.mxu0 %v11060_v31  ;;  %v11129_v30 = vld [vmem:[%s12965_s11 + $0x1b9c] ss:$72 sps:$4 sm:$0xff]   ;;  %v11127_v31 = vld [vmem:[%s12965_s11 + $0x1b98] ss:$72 sps:$4 sm:$0xff]  }
 0x259   : > { %8040 = vmatprep.subr.bf16.mxu1 %v11063_v33  ;;  %v11130_v33 = vld [vmem:[%s12965_s11 + $0x1208] ss:$72 sps:$4 sm:$0xff]  }
 0x25b   : > { %8000 = vmatpush2.bf16.msra.mxu0 %v11058_v32  ;;  %v11132_v32 = vld [vmem:[%s12965_s11 + $0x120c] ss:$72 sps:$4 sm:$0xff]  }
 0x25c   : > { %8041 = vmatpush2.bf16.msra.mxu1 %v11061_v7  ;;  %8001 = vmatprep.subr.bf16.mxu0 %v11066_v34  ;;  %v11135_v7 = vld [vmem:[%s12965_s11 + $0x1b0c] ss:$72 sps:$4 sm:$0xff]   ;;  %v11133_v34 = vld [vmem:[%s12965_s11 + $0x1b08] ss:$72 sps:$4 sm:$0xff]  }
 0x25d   : > { %8042 = vmatprep.subr.bf16.mxu1 %v11069_v35  ;;  %v11141_v35 = vld [vmem:[%s12965_s11 + $0x237c] ss:$72 sps:$4 sm:$0xff]  }
 0x25f   : > { %8002 = vmatpush2.bf16.msra.mxu0 %v11064_v8  ;;  %v11138_v8 = vld [vmem:[%s12965_s11 + $0x1a7c] ss:$72 sps:$4 sm:$0xff]  }
 0x260   : > { %8043 = vmatpush2.bf16.msra.mxu1 %v11067_v36  ;;  %8003 = vmatprep.subr.bf16.mxu0 %v11072_v43  ;;  %v11136_v36 = vld [vmem:[%s12965_s11 + $0x1a78] ss:$72 sps:$4 sm:$0xff]  }
 0x261   : > { %8044 = vmatprep.subr.bf16.mxu1 %v11075_v46  ;;  %v11139_v43 = vld [vmem:[%s12965_s11 + $0x2378] ss:$72 sps:$4 sm:$0xff]   ;;  %v11147_v46 = vld [vmem:[%s12965_s11 + $0x22ec] ss:$72 sps:$4 sm:$0xff]  }
 0x263   : > { %8004 = vmatpush2.bf16.msra.mxu0 %v11070_v45  ;;  %v11144_v45 = vld [vmem:[%s12965_s11 + $0x19ec] ss:$72 sps:$4 sm:$0xff]  }
 0x264   : > { %8045 = vmatpush2.bf16.msra.mxu1 %v11073_v47  ;;  %8005 = vmatprep.subr.bf16.mxu0 %v11078_v48  ;;  %v11142_v47 = vld [vmem:[%s12965_s11 + $0x19e8] ss:$72 sps:$4 sm:$0xff]  }
 0x265   : > { %8046 = vmatprep.subr.bf16.mxu1 %v11081_v51  ;;  %v11145_v48 = vld [vmem:[%s12965_s11 + $0x22e8] ss:$72 sps:$4 sm:$0xff]   ;;  %v11153_v51 = vld [vmem:[%s12965_s11 + $0x225c] ss:$72 sps:$4 sm:$0xff]  }
 0x267   : > { %8006 = vmatpush2.bf16.msra.mxu0 %v11076_v49  ;;  %v11150_v49 = vld [vmem:[%s12965_s11 + $0x195c] ss:$72 sps:$4 sm:$0xff]  }
 0x268   : > { %8047 = vmatpush2.bf16.msra.mxu1 %v11079_v52  ;;  %8007 = vmatprep.subr.bf16.mxu0 %v11084_v53  ;;  %v11148_v52 = vld [vmem:[%s12965_s11 + $0x1958] ss:$72 sps:$4 sm:$0xff]  }
 0x269   : > { %8048 = vmatprep.subr.bf16.mxu1 %v11087_v55  ;;  %v11151_v53 = vld [vmem:[%s12965_s11 + $0x2258] ss:$72 sps:$4 sm:$0xff]   ;;  %v11159_v55 = vld [vmem:[%s12965_s11 + $0x21cc] ss:$72 sps:$4 sm:$0xff]  }
 0x26b   : > { %8008 = vmatpush2.bf16.msra.mxu0 %v11082_v54  ;;  %v11156_v54 = vld [vmem:[%s12965_s11 + $0x18cc] ss:$72 sps:$4 sm:$0xff]  }
 0x26c   : > { %8049 = vmatpush2.bf16.msra.mxu1 %v11085_v56  ;;  %8059 = vmatprep.subr.bf16.mxu0 %v11090_v59  ;;  %v11154_v56 = vld [vmem:[%s12965_s11 + $0x18c8] ss:$72 sps:$4 sm:$0xff]  }
 0x26d   : > { %8100 = vmatprep.subr.bf16.mxu1 %v11093_v60  ;;  %v11157_v59 = vld [vmem:[%s12965_s11 + $0x21c8] ss:$72 sps:$4 sm:$0xff]   ;;  %v11162_v60 = vld [vmem:[%s12965_s11 + $0x183c] ss:$72 sps:$4 sm:$0xff]  }
 0x26e   : > { %8010 = vmatmul.mubr.bf16.vlgmr.msra.gmra.mxu0 %v13087_v3 }
 0x26f   : > { %8051 = vmatmul.mubr.bf16.vlgmr.msra.gmra.mxu1 %v13089_v4  ;;  %8060 = vmatpush1.bf16.msra.mxu0 %v11088_v61  ;;  %v11165_v61 = vld [vmem:[%s12965_s11 + $0x213c] ss:$72 sps:$4 sm:$0xff]  }
 0x270   : > { %8091 = vmatprep.mubr.bf16.mxu0 %v13109_v21  ;;  %8101 = vmatpush1.bf16.msra.mxu1 %v11091_v62  ;;  %v11160_v62 = vld [vmem:[%s12965_s11 + $0x1838] ss:$72 sps:$4 sm:$0xff]  }
 0x271   : > { %8132 = vmatprep.mubr.bf16.mxu1 %v13111_v22  ;;  %8061 = vmatprep.subr.bf16.mxu0 %v11096_v63  ;;  %v11163_v63 = vld [vmem:[%s12965_s11 + $0x2138] ss:$72 sps:$4 sm:$0xff]  }
 0x272   : > { %8102 = vmatprep.subr.bf16.mxu1 %v11099_v6  ;;  %v11166_v6 = vld [vmem:[%s12965_s11 + $0x17a8] ss:$72 sps:$4 sm:$0xff]  }
 0x273   : > { %8062 = vmatpush1.bf16.msra.mxu0 %v11094_v0  ;;  %v11168_v0 = vld [vmem:[%s12965_s11 + $0x17ac] ss:$72 sps:$4 sm:$0xff]  }
 0x274   : > { %8103 = vmatpush1.bf16.msra.mxu1 %v11097_v5  ;;  %8063 = vmatprep.subr.bf16.mxu0 %v11102_v9  ;;  %v11171_v5 = vld [vmem:[%s12965_s11 + $0x20ac] ss:$72 sps:$4 sm:$0xff]   ;;  %v11169_v9 = vld [vmem:[%s12965_s11 + $0x20a8] ss:$72 sps:$4 sm:$0xff]  }
 0x275   : > { %8104 = vmatprep.subr.bf16.mxu1 %v11105_v10  ;;  %v11174_v10 = vld [vmem:[%s12965_s11 + $0x171c] ss:$72 sps:$4 sm:$0xff]  }
 0x277   : > { %8064 = vmatpush1.bf16.msra.mxu0 %v11100_v11  ;;  %v11177_v11 = vld [vmem:[%s12965_s11 + $0x201c] ss:$72 sps:$4 sm:$0xff]  }
 0x278   : > { %8105 = vmatpush1.bf16.msra.mxu1 %v11103_v12  ;;  %8065 = vmatprep.subr.bf16.mxu0 %v11108_v15  ;;  %v11172_v12 = vld [vmem:[%s12965_s11 + $0x1718] ss:$72 sps:$4 sm:$0xff]  }
 0x279   : > { %8106 = vmatprep.subr.bf16.mxu1 %v11111_v16  ;;  %v11175_v15 = vld [vmem:[%s12965_s11 + $0x2018] ss:$72 sps:$4 sm:$0xff]   ;;  %v11180_v16 = vld [vmem:[%s12965_s11 + $0x168c] ss:$72 sps:$4 sm:$0xff]  }
 0x27b   : > { %8066 = vmatpush1.bf16.msra.mxu0 %v11106_v17  ;;  %v11183_v17 = vld [vmem:[%s12965_s11 + $0x1f8c] ss:$72 sps:$4 sm:$0xff]  }
 0x27c   : > { %8107 = vmatpush1.bf16.msra.mxu1 %v11109_v18  ;;  %8067 = vmatprep.subr.bf16.mxu0 %v11114_v19  ;;  %v11178_v18 = vld [vmem:[%s12965_s11 + $0x1688] ss:$72 sps:$4 sm:$0xff]  }
 0x27d   : > { %8108 = vmatprep.subr.bf16.mxu1 %v11117_v23  ;;  %v11181_v19 = vld [vmem:[%s12965_s11 + $0x1f88] ss:$72 sps:$4 sm:$0xff]  }
 0x27e   : > { %v13324_v23 = vld [vmem:[%s13321_s27] sm:$0xff] }
 0x27f   : > { %8068 = vmatpush1.bf16.msra.mxu0 %v11112_v20  ;;  %v11186_v20 = vld [vmem:[%s12965_s11 + $0x404] ss:$72 sps:$4 sm:$0xff]  }
 0x280   : > { %8109 = vmatpush1.bf16.msra.mxu1 %v11115_v24  ;;  %8069 = vmatprep.subr.bf16.mxu0 %v11120_v25  ;;  %v11189_v24 = vld [vmem:[%s12965_s11 + $0xd04] ss:$72 sps:$4 sm:$0xff]   ;;  %v11184_v25 = vld [vmem:[%s12965_s11 + $0x400] ss:$72 sps:$4 sm:$0xff]  }
 0x281   : > { %8110 = vmatprep.subr.bf16.mxu1 %v11123_v27  ;;  %v11187_v27 = vld [vmem:[%s12965_s11 + $0xd00] ss:$72 sps:$4 sm:$0xff]  }
 0x283   : > { %8070 = vmatpush1.bf16.msra.mxu0 %v11118_v26  ;;  %v1966_v26 = vrot.slane %v13324_v23, %v13054_v38 }
 0x284   : > { %8111 = vmatpush1.bf16.msra.mxu1 %v11121_v28  ;;  %8071 = vmatprep.subr.bf16.mxu0 %v11126_v37  ;;  %v1970_v28 = vrot.slane %v13324_v23, %v13060_v40  ;;  %v11192_v37 = vld [vmem:[%s12965_s11 + $0x374] ss:$72 sps:$4 sm:$0xff]  }
 0x285   : > { %8112 = vmatprep.subr.bf16.mxu1 %v11129_v30 }
 0x287   : > { %8072 = vmatpush1.bf16.msra.mxu0 %v11124_v29 }
 0x288   : > { %8113 = vmatpush1.bf16.msra.mxu1 %v11127_v31  ;;  %8073 = vmatprep.subr.bf16.mxu0 %v11132_v32  ;;  %v11195_v31 = vld [vmem:[%s12965_s11 + $0xc74] ss:$72 sps:$4 sm:$0xff]  }
 0x289   : > { %8114 = vmatprep.subr.bf16.mxu1 %v11135_v7 }
 0x28b   : > { %8074 = vmatpush1.bf16.msra.mxu0 %v11130_v33  ;;  %v11190_v33 = vld [vmem:[%s12965_s11 + $0x370] ss:$72 sps:$4 sm:$0xff]  }
 0x28c   : > { %8115 = vmatpush1.bf16.msra.mxu1 %v11133_v34  ;;  %8075 = vmatprep.subr.bf16.mxu0 %v11138_v8  ;;  %v11193_v8 = vld [vmem:[%s12965_s11 + $0xc70] ss:$72 sps:$4 sm:$0xff]  }
 0x28d   : > { %8116 = vmatprep.subr.bf16.mxu1 %v11141_v35  ;;  %v11198_v35 = vld [vmem:[%s12965_s11 + $0x2e4] ss:$72 sps:$4 sm:$0xff]  }
 0x28f   : > { %8076 = vmatpush2.bf16.msra.mxu0 %v11136_v36 }
 0x290   : > { %8117 = vmatpush2.bf16.msra.mxu1 %v11139_v43  ;;  %8077 = vmatprep.subr.bf16.mxu0 %v11144_v45  ;;  %v11201_v45 = vld [vmem:[%s12965_s11 + $0xbe4] ss:$72 sps:$4 sm:$0xff]  }
 0x291   : > { %8118 = vmatprep.subr.bf16.mxu1 %v11147_v46 }
 0x293   : > { %8078 = vmatpush2.bf16.msra.mxu0 %v11142_v47 }
 0x294   : > { %8119 = vmatpush2.bf16.msra.mxu1 %v11145_v48  ;;  %8079 = vmatprep.subr.bf16.mxu0 %v11150_v49  ;;  %v11196_v49 = vld [vmem:[%s12965_s11 + $0x2e0] ss:$72 sps:$4 sm:$0xff]  }
 0x295   : > { %8120 = vmatprep.subr.bf16.mxu1 %v11153_v51 }
 0x297   : > { %8080 = vmatpush2.bf16.msra.mxu0 %v11148_v52 }
 0x298   : > { %8121 = vmatpush2.bf16.msra.mxu1 %v11151_v53  ;;  %8081 = vmatprep.subr.bf16.mxu0 %v11156_v54  ;;  %v11199_v53 = vld [vmem:[%s12965_s11 + $0xbe0] ss:$72 sps:$4 sm:$0xff]   ;;  %v11204_v54 = vld [vmem:[%s12965_s11 + $0x254] ss:$72 sps:$4 sm:$0xff]  }
 0x299   : > { %8122 = vmatprep.subr.bf16.mxu1 %v11159_v55  ;;  %v11207_v55 = vld [vmem:[%s12965_s11 + $0xb54] ss:$72 sps:$4 sm:$0xff]  }
 0x29b   : > { %8082 = vmatpush2.bf16.msra.mxu0 %v11154_v56  ;;  %v11202_v56 = vld [vmem:[%s12965_s11 + $0x250] ss:$72 sps:$4 sm:$0xff]  }
 0x29c   : > { %8123 = vmatpush2.bf16.msra.mxu1 %v11157_v59  ;;  %8083 = vmatprep.subr.bf16.mxu0 %v11162_v60  ;;  %v11205_v59 = vld [vmem:[%s12965_s11 + $0xb50] ss:$72 sps:$4 sm:$0xff]   ;;  %v11210_v60 = vld [vmem:[%s12965_s11 + $0x1c4] ss:$72 sps:$4 sm:$0xff]  }
 0x29d   : > { %8124 = vmatprep.subr.bf16.mxu1 %v11165_v61  ;;  %v11213_v61 = vld [vmem:[%s12965_s11 + $0xac4] ss:$72 sps:$4 sm:$0xff]  }
 0x29f   : > { %8084 = vmatpush2.bf16.msra.mxu0 %v11160_v62  ;;  %v11208_v62 = vld [vmem:[%s12965_s11 + $0x1c0] ss:$72 sps:$4 sm:$0xff]  }
 0x2a0   : > { %8125 = vmatpush2.bf16.msra.mxu1 %v11163_v63  ;;  %8085 = vmatprep.subr.bf16.mxu0 %v11168_v0  ;;  %v11211_v63 = vld [vmem:[%s12965_s11 + $0xac0] ss:$72 sps:$4 sm:$0xff]   ;;  %v11216_v0 = vld [vmem:[%s12965_s11 + $0x134] ss:$72 sps:$4 sm:$0xff]  }
 0x2a1   : > { %8126 = vmatprep.subr.bf16.mxu1 %v11171_v5  ;;  %v11219_v5 = vld [vmem:[%s12965_s11 + $0xa34] ss:$72 sps:$4 sm:$0xff]  }
 0x2a3   : > { %8086 = vmatpush2.bf16.msra.mxu0 %v11166_v6  ;;  %v11214_v6 = vld [vmem:[%s12965_s11 + $0x130] ss:$72 sps:$4 sm:$0xff]  }
 0x2a4   : > { %8127 = vmatpush2.bf16.msra.mxu1 %v11169_v9  ;;  %8087 = vmatprep.subr.bf16.mxu0 %v11174_v10  ;;  %v11217_v9 = vld [vmem:[%s12965_s11 + $0xa30] ss:$72 sps:$4 sm:$0xff]   ;;  %v11222_v10 = vld [vmem:[%s12965_s11 + $0xa4] ss:$72 sps:$4 sm:$0xff]  }
 0x2a5   : > { %8128 = vmatprep.subr.bf16.mxu1 %v11177_v11  ;;  %v11225_v11 = vld [vmem:[%s12965_s11 + $0x9a4] ss:$72 sps:$4 sm:$0xff]  }
 0x2a7   : > { %8088 = vmatpush2.bf16.msra.mxu0 %v11172_v12  ;;  %v11220_v12 = vld [vmem:[%s12965_s11 + $0xa0] ss:$72 sps:$4 sm:$0xff]  }
 0x2a8   : > { %8129 = vmatpush2.bf16.msra.mxu1 %v11175_v15  ;;  %8089 = vmatprep.subr.bf16.mxu0 %v11180_v16  ;;  %v11223_v15 = vld [vmem:[%s12965_s11 + $0x9a0] ss:$72 sps:$4 sm:$0xff]   ;;  %v11228_v16 = vld [vmem:[%s12965_s11 + $0x14] ss:$72 sps:$4 sm:$0xff]  }
 0x2a9   : > { %8130 = vmatprep.subr.bf16.mxu1 %v11183_v17  ;;  %v11231_v17 = vld [vmem:[%s12965_s11 + $0x914] ss:$72 sps:$4 sm:$0xff]  }
 0x2ab   : > { %8090 = vmatpush2.bf16.msra.mxu0 %v11178_v18  ;;  %v11226_v18 = vld [vmem:[%s12965_s11 + $0x10] ss:$72 sps:$4 sm:$0xff]  }
 0x2ac   : > { %8131 = vmatpush2.bf16.msra.mxu1 %v11181_v19  ;;  %8141 = vmatprep.subr.bf16.mxu0 %v11186_v20  ;;  %v11229_v19 = vld [vmem:[%s12965_s11 + $0x910] ss:$72 sps:$4 sm:$0xff]   ;;  %v11234_v20 = vld [vmem:[%s12965_s11 + $0x884] ss:$72 sps:$4 sm:$0xff]  }
 0x2ad   : > { %8182 = vmatprep.subr.bf16.mxu1 %v11189_v24  ;;  %v11237_v24 = vld [vmem:[%s12965_s11 + $0x1184] ss:$72 sps:$4 sm:$0xff]  }
 0x2ae   : > { %8092 = vmatmul.mubr.bf16.vlgmr.msra.gmra.mxu0 %v13185_v44  ;;  %v7847_v29 = vpop.f32.mrf.mxu0  ;;  %v7888_v30 = vpop.f32.mrf.mxu1 }
 0x2af   : > { %8133 = vmatmul.mubr.bf16.vlgmr.msra.gmra.mxu1 %v13187_v42  ;;  %v7848_v32 = vadd.f32 %v7847_v29, %v1966_v26  ;;  %8142 = vmatpush1.bf16.msra.mxu0 %v11184_v25  ;;  %v11232_v25 = vld [vmem:[%s12965_s11 + $0x880] ss:$72 sps:$4 sm:$0xff]   ;;  %v11241_v29 = vld [vmem:[%s12965_s11 + $0x10f0] ss:$72 sps:$4 sm:$0xff]  }
 0x2b0   : > { %8173 = vmatprep.mubr.bf16.mxu0 %v13083_v1  ;;  %8183 = vmatpush1.bf16.msra.mxu1 %v11187_v27  ;;  %v7849_v7 = vpop.f32.mrf.mxu0  ;;  %v7890_v34 = vpop.f32.mrf.mxu1  ;;  %v11235_v26 = vld [vmem:[%s12965_s11 + $0x1180] ss:$72 sps:$4 sm:$0xff]   ;;  %v11240_v27 = vld [vmem:[%s12965_s11 + $0x7f4] ss:$72 sps:$4 sm:$0xff]  }
 0x2b1   : > { %v13341_v36 = vadd.f32 %v7888_v30, %v7848_v32  ;;  %8214 = vmatprep.mubr.bf16.mxu1 %v13085_v2  ;;  %v7850_v43 = vadd.f32 %v7849_v7, %v1970_v28  ;;  %8143 = vmatprep.subr.bf16.mxu0 %v11192_v37  ;;  %v11243_v28 = vld [vmem:[%s12965_s11 + $0x10f4] ss:$72 sps:$4 sm:$0xff]   ;;  %v11238_v37 = vld [vmem:[%s12965_s11 + $0x7f0] ss:$72 sps:$4 sm:$0xff]   ;;  %v11246_v30 = vld [vmem:[%s12965_s11 + $0x764] ss:$72 sps:$4 sm:$0xff]  }
 0x2b2   : > { %8184 = vmatprep.subr.bf16.mxu1 %v11195_v31  ;;  %v7851_v46 = vpop.f32.mrf.mxu0  ;;  %v7892_v47 = vpop.f32.mrf.mxu1  ;;  %v11249_v31 = vld [vmem:[%s12965_s11 + $0x1064] ss:$72 sps:$4 sm:$0xff]   ;;  %v11244_v32 = vld [vmem:[%s12965_s11 + $0x760] ss:$72 sps:$4 sm:$0xff]   ;;  %v11252_v7 = vld [vmem:[%s12965_s11 + $0x6d4] ss:$72 sps:$4 sm:$0xff]  }
 0x2b3   : > { %v13345_v48 = vadd.f32 %v7890_v34, %v7850_v43  ;;  %8144 = vmatpush1.bf16.msra.mxu0 %v11190_v33  ;;  %v11247_v33 = vld [vmem:[%s12965_s11 + $0x1060] ss:$72 sps:$4 sm:$0xff]   ;;  %v11255_v34 = vld [vmem:[%s12965_s11 + $0xfd4] ss:$72 sps:$4 sm:$0xff]   ;;  %v11258_v43 = vld [vmem:[%s12965_s11 + $0x644] ss:$72 sps:$4 sm:$0xff]  }
 0x2b4   : > { %8185 = vmatpush1.bf16.msra.mxu1 %v11193_v8  ;;  %v7852_v51 = vpop.f32.mrf.mxu0  ;;  %v7893_v52 = vpop.f32.mrf.mxu1  ;;  %8145 = vmatprep.subr.bf16.mxu0 %v11198_v35  ;;  %v11250_v8 = vld [vmem:[%s12965_s11 + $0x6d0] ss:$72 sps:$4 sm:$0xff]   ;;  %v11256_v46 = vld [vmem:[%s12965_s11 + $0x640] ss:$72 sps:$4 sm:$0xff]  }
 0x2b5   : > { %8186 = vmatprep.subr.bf16.mxu1 %v11201_v45  ;;  %v11253_v35 = vld [vmem:[%s12965_s11 + $0xfd0] ss:$72 sps:$4 sm:$0xff]   ;;  %v11261_v45 = vld [vmem:[%s12965_s11 + $0xf44] ss:$72 sps:$4 sm:$0xff]   ;;  %v11259_v47 = vld [vmem:[%s12965_s11 + $0xf40] ss:$72 sps:$4 sm:$0xff]  }
 0x2b6   : > { %v11267_v51 = vld [vmem:[%s12965_s11 + $0xeb4] ss:$72 sps:$4 sm:$0xff]   ;;  %v11262_v52 = vld [vmem:[%s12965_s11 + $0x5b0] ss:$72 sps:$4 sm:$0xff]  }
 0x2b7   : > { %8146 = vmatpush1.bf16.msra.mxu0 %v11196_v49  ;;  %v11264_v49 = vld [vmem:[%s12965_s11 + $0x5b4] ss:$72 sps:$4 sm:$0xff]  }
 0x2b8   : > { %8187 = vmatpush1.bf16.msra.mxu1 %v11199_v53  ;;  %8147 = vmatprep.subr.bf16.mxu0 %v11204_v54  ;;  %v11265_v53 = vld [vmem:[%s12965_s11 + $0xeb0] ss:$72 sps:$4 sm:$0xff]   ;;  %v11270_v54 = vld [vmem:[%s12965_s11 + $0x524] ss:$72 sps:$4 sm:$0xff]  }
 0x2b9   : > { %8188 = vmatprep.subr.bf16.mxu1 %v11207_v55  ;;  %v11273_v55 = vld [vmem:[%s12965_s11 + $0xe24] ss:$72 sps:$4 sm:$0xff]  }
 0x2bb   : > { %8148 = vmatpush1.bf16.msra.mxu0 %v11202_v56  ;;  %v11268_v56 = vld [vmem:[%s12965_s11 + $0x520] ss:$72 sps:$4 sm:$0xff]  }
 0x2bc   : > { %8189 = vmatpush1.bf16.msra.mxu1 %v11205_v59  ;;  %8149 = vmatprep.subr.bf16.mxu0 %v11210_v60  ;;  %v11271_v59 = vld [vmem:[%s12965_s11 + $0xe20] ss:$72 sps:$4 sm:$0xff]   ;;  %v11276_v60 = vld [vmem:[%s12965_s11 + $0x494] ss:$72 sps:$4 sm:$0xff]  }
 0x2bd   : > { %8190 = vmatprep.subr.bf16.mxu1 %v11213_v61  ;;  %v11279_v61 = vld [vmem:[%s12965_s11 + $0xd94] ss:$72 sps:$4 sm:$0xff]  }
 0x2bf   : > { %8150 = vmatpush1.bf16.msra.mxu0 %v11208_v62  ;;  %v11274_v62 = vld [vmem:[%s12965_s11 + $0x490] ss:$72 sps:$4 sm:$0xff]  }
 0x2c0   : > { %8191 = vmatpush1.bf16.msra.mxu1 %v11211_v63  ;;  %8151 = vmatprep.subr.bf16.mxu0 %v11216_v0  ;;  %v11277_v63 = vld [vmem:[%s12965_s11 + $0xd90] ss:$72 sps:$4 sm:$0xff]   ;;  %v11282_v0 = vld [vmem:[%s12965_s11 + $0x1604] ss:$72 sps:$4 sm:$0xff]  }
 0x2c1   : > { %8192 = vmatprep.subr.bf16.mxu1 %v11219_v5  ;;  %v11285_v5 = vld [vmem:[%s12965_s11 + $0x1f04] ss:$72 sps:$4 sm:$0xff]  }
 0x2c3   : > { %8152 = vmatpush1.bf16.msra.mxu0 %v11214_v6  ;;  %v11280_v6 = vld [vmem:[%s12965_s11 + $0x1600] ss:$72 sps:$4 sm:$0xff]  }
 0x2c4   : > { %8193 = vmatpush1.bf16.msra.mxu1 %v11217_v9  ;;  %8153 = vmatprep.subr.bf16.mxu0 %v11222_v10  ;;  %v11283_v9 = vld [vmem:[%s12965_s11 + $0x1f00] ss:$72 sps:$4 sm:$0xff]   ;;  %v11288_v10 = vld [vmem:[%s12965_s11 + $0x1574] ss:$72 sps:$4 sm:$0xff]  }
 0x2c5   : > { %8194 = vmatprep.subr.bf16.mxu1 %v11225_v11 }
 0x2c7   : > { %8154 = vmatpush1.bf16.msra.mxu0 %v11220_v12 }
 0x2c8   : > { %8195 = vmatpush1.bf16.msra.mxu1 %v11223_v15  ;;  %8155 = vmatprep.subr.bf16.mxu0 %v11228_v16  ;;  %v11291_v15 = vld [vmem:[%s12965_s11 + $0x1e74] ss:$72 sps:$4 sm:$0xff]  }
 0x2c9   : > { %8196 = vmatprep.subr.bf16.mxu1 %v11231_v17  ;;  %v11286_v17 = vld [vmem:[%s12965_s11 + $0x1570] ss:$72 sps:$4 sm:$0xff]  }
 0x2cb   : > { %8156 = vmatpush1.bf16.msra.mxu0 %v11226_v18 }
 0x2cc   : > { %8197 = vmatpush1.bf16.msra.mxu1 %v11229_v19  ;;  %8157 = vmatprep.subr.bf16.mxu0 %v11234_v20  ;;  %v11289_v20 = vld [vmem:[%s12965_s11 + $0x1e70] ss:$72 sps:$4 sm:$0xff]  }
 0x2cd   : > { %8198 = vmatprep.subr.bf16.mxu1 %v11237_v24  ;;  %v11294_v24 = vld [vmem:[%s12965_s11 + $0x14e4] ss:$72 sps:$4 sm:$0xff]  }
 0x2cf   : > { %8158 = vmatpush2.bf16.msra.mxu0 %v11232_v25 }
 0x2d0   : > { %8199 = vmatpush2.bf16.msra.mxu1 %v11235_v26  ;;  %8159 = vmatprep.subr.bf16.mxu0 %v11240_v27  ;;  %v11297_v26 = vld [vmem:[%s12965_s11 + $0x1de4] ss:$72 sps:$4 sm:$0xff]  }
 0x2d1   : > { %8200 = vmatprep.subr.bf16.mxu1 %v11243_v28 }
 0x2d3   : > { %8160 = vmatpush2.bf16.msra.mxu0 %v11238_v37 }
 0x2d4   : > { %8201 = vmatpush2.bf16.msra.mxu1 %v11241_v29  ;;  %8161 = vmatprep.subr.bf16.mxu0 %v11246_v30  ;;  %v11292_v29 = vld [vmem:[%s12965_s11 + $0x14e0] ss:$72 sps:$4 sm:$0xff]  }
 0x2d5   : > { %8202 = vmatprep.subr.bf16.mxu1 %v11249_v31 }
 0x2d7   : > { %8162 = vmatpush2.bf16.msra.mxu0 %v11244_v32  ;;  %v11300_v32 = vld [vmem:[%s12965_s11 + $0x1454] ss:$72 sps:$4 sm:$0xff]  }
 0x2d8   : > { %8203 = vmatpush2.bf16.msra.mxu1 %v11247_v33  ;;  %8163 = vmatprep.subr.bf16.mxu0 %v11252_v7  ;;  %v11303_v7 = vld [vmem:[%s12965_s11 + $0x1d54] ss:$72 sps:$4 sm:$0xff]  }
 0x2d9   : > { %8204 = vmatprep.subr.bf16.mxu1 %v11255_v34  ;;  %v11298_v34 = vld [vmem:[%s12965_s11 + $0x1450] ss:$72 sps:$4 sm:$0xff]  }
 0x2db   : > { %8164 = vmatpush2.bf16.msra.mxu0 %v11250_v8  ;;  %v11301_v8 = vld [vmem:[%s12965_s11 + $0x1d50] ss:$72 sps:$4 sm:$0xff]  }
 0x2dc   : > { %8205 = vmatpush2.bf16.msra.mxu1 %v11253_v35  ;;  %8165 = vmatprep.subr.bf16.mxu0 %v11258_v43  ;;  %v11306_v35 = vld [vmem:[%s12965_s11 + $0x13c4] ss:$72 sps:$4 sm:$0xff]  }
 0x2dd   : > { %8206 = vmatprep.subr.bf16.mxu1 %v11261_v45  ;;  %v11309_v43 = vld [vmem:[%s12965_s11 + $0x1cc4] ss:$72 sps:$4 sm:$0xff]   ;;  %v11304_v45 = vld [vmem:[%s12965_s11 + $0x13c0] ss:$72 sps:$4 sm:$0xff]  }
 0x2df   : > { %8166 = vmatpush2.bf16.msra.mxu0 %v11256_v46  ;;  %v11307_v46 = vld [vmem:[%s12965_s11 + $0x1cc0] ss:$72 sps:$4 sm:$0xff]  }
 0x2e0   : > { %8207 = vmatpush2.bf16.msra.mxu1 %v11259_v47  ;;  %8167 = vmatprep.subr.bf16.mxu0 %v11264_v49  ;;  %v11312_v47 = vld [vmem:[%s12965_s11 + $0x1334] ss:$72 sps:$4 sm:$0xff]  }
 0x2e1   : > { %8208 = vmatprep.subr.bf16.mxu1 %v11267_v51  ;;  %v11315_v49 = vld [vmem:[%s12965_s11 + $0x1c34] ss:$72 sps:$4 sm:$0xff]   ;;  %v11310_v51 = vld [vmem:[%s12965_s11 + $0x1330] ss:$72 sps:$4 sm:$0xff]  }
 0x2e3   : > { %8168 = vmatpush2.bf16.msra.mxu0 %v11262_v52  ;;  %v11313_v52 = vld [vmem:[%s12965_s11 + $0x1c30] ss:$72 sps:$4 sm:$0xff]  }
 0x2e4   : > { %8209 = vmatpush2.bf16.msra.mxu1 %v11265_v53  ;;  %8169 = vmatprep.subr.bf16.mxu0 %v11270_v54  ;;  %v11318_v53 = vld [vmem:[%s12965_s11 + $0x12a4] ss:$72 sps:$4 sm:$0xff]  }
 0x2e5   : > { %8210 = vmatprep.subr.bf16.mxu1 %v11273_v55  ;;  %v11321_v54 = vld [vmem:[%s12965_s11 + $0x1ba4] ss:$72 sps:$4 sm:$0xff]   ;;  %v11316_v55 = vld [vmem:[%s12965_s11 + $0x12a0] ss:$72 sps:$4 sm:$0xff]  }
 0x2e7   : > { %8170 = vmatpush2.bf16.msra.mxu0 %v11268_v56  ;;  %v11319_v56 = vld [vmem:[%s12965_s11 + $0x1ba0] ss:$72 sps:$4 sm:$0xff]  }
 0x2e8   : > { %8211 = vmatpush2.bf16.msra.mxu1 %v11271_v59  ;;  %8171 = vmatprep.subr.bf16.mxu0 %v11276_v60  ;;  %v11324_v59 = vld [vmem:[%s12965_s11 + $0x1214] ss:$72 sps:$4 sm:$0xff]  }
 0x2e9   : > { %8212 = vmatprep.subr.bf16.mxu1 %v11279_v61  ;;  %v11327_v60 = vld [vmem:[%s12965_s11 + $0x1b14] ss:$72 sps:$4 sm:$0xff]   ;;  %v11322_v61 = vld [vmem:[%s12965_s11 + $0x1210] ss:$72 sps:$4 sm:$0xff]  }
 0x2eb   : > { %8172 = vmatpush2.bf16.msra.mxu0 %v11274_v62  ;;  %v11325_v62 = vld [vmem:[%s12965_s11 + $0x1b10] ss:$72 sps:$4 sm:$0xff]  }
 0x2ec   : > { %8213 = vmatpush2.bf16.msra.mxu1 %v11277_v63  ;;  %8223 = vmatprep.subr.bf16.mxu0 %v11282_v0  ;;  %v11330_v63 = vld [vmem:[%s12965_s11 + $0x1a84] ss:$72 sps:$4 sm:$0xff]  }
 0x2ed   : > { %8264 = vmatprep.subr.bf16.mxu1 %v11285_v5  ;;  %v11333_v0 = vld [vmem:[%s12965_s11 + $0x2384] ss:$72 sps:$4 sm:$0xff]   ;;  %v11328_v5 = vld [vmem:[%s12965_s11 + $0x1a80] ss:$72 sps:$4 sm:$0xff]  }
 0x2ee   : > { %v7929_v11 = vpop.f32.mrf.mxu0  ;;  %v7970_v12 = vpop.f32.mrf.mxu1  ;;  %8174 = vmatmul.mubr.bf16.vlgmr.msra.gmra.mxu0 %v13087_v3 }
 0x2ef   : > { %v7930_v16 = vadd.f32 %v7929_v11, %v13341_v36  ;;  %8215 = vmatmul.mubr.bf16.vlgmr.msra.gmra.mxu1 %v13089_v4  ;;  %8224 = vmatpush1.bf16.msra.mxu0 %v11280_v6  ;;  %v11331_v6 = vld [vmem:[%s12965_s11 + $0x2380] ss:$72 sps:$4 sm:$0xff]   ;;  %v11334_v11 = vld [vmem:[%s12965_s11 + $0x19f0] ss:$72 sps:$4 sm:$0xff]  }
 0x2f0   : > { %8255 = vmatprep.mubr.bf16.mxu0 %v13109_v21  ;;  %8265 = vmatpush1.bf16.msra.mxu1 %v11283_v9  ;;  %v7931_v18 = vpop.f32.mrf.mxu0  ;;  %v7972_v19 = vpop.f32.mrf.mxu1  ;;  %v11336_v9 = vld [vmem:[%s12965_s11 + $0x19f4] ss:$72 sps:$4 sm:$0xff]  }
 0x2f1   : > { %v13414_v25 = vadd.f32 %v7970_v12, %v7930_v16  ;;  %8296 = vmatprep.mubr.bf16.mxu1 %v13111_v22  ;;  %v7932_v36 = vadd.f32 %v7931_v18, %v13345_v48  ;;  %8225 = vmatprep.subr.bf16.mxu0 %v11288_v10  ;;  %v11295_v48 = vld [vmem:[%s12965_s11 + $0x1de0] ss:$72 sps:$4 sm:$0xff]   ;;  %v11339_v10 = vld [vmem:[%s12965_s11 + $0x22f4] ss:$72 sps:$4 sm:$0xff]   ;;  %v11337_v12 = vld [vmem:[%s12965_s11 + $0x22f0] ss:$72 sps:$4 sm:$0xff]  }
 0x2f2   : > { %v7933_v27 = vpop.f32.mrf.mxu0  ;;  %v7974_v28 = vpop.f32.mrf.mxu1  ;;  %8266 = vmatprep.subr.bf16.mxu1 %v11291_v15  ;;  %v11342_v15 = vld [vmem:[%s12965_s11 + $0x1964] ss:$72 sps:$4 sm:$0xff]   ;;  %v11343_v18 = vld [vmem:[%s12965_s11 + $0x2260] ss:$72 sps:$4 sm:$0xff]  }
 0x2f3   : > { %v13419_v37 = vadd.f32 %v7972_v19, %v7932_v36  ;;  %8226 = vmatpush1.bf16.msra.mxu0 %v11286_v17  ;;  %v11345_v16 = vld [vmem:[%s12965_s11 + $0x2264] ss:$72 sps:$4 sm:$0xff]   ;;  %v11340_v17 = vld [vmem:[%s12965_s11 + $0x1960] ss:$72 sps:$4 sm:$0xff]   ;;  %v11348_v19 = vld [vmem:[%s12965_s11 + $0x18d4] ss:$72 sps:$4 sm:$0xff]  }
 0x2f4   : > { %8267 = vmatpush1.bf16.msra.mxu1 %v11289_v20  ;;  %v7934_v30 = vpop.f32.mrf.mxu0  ;;  %v7975_v31 = vpop.f32.mrf.mxu1  ;;  %8227 = vmatprep.subr.bf16.mxu0 %v11294_v24  ;;  %v11351_v20 = vld [vmem:[%s12965_s11 + $0x21d4] ss:$72 sps:$4 sm:$0xff]   ;;  %v11346_v24 = vld [vmem:[%s12965_s11 + $0x18d0] ss:$72 sps:$4 sm:$0xff]   ;;  %v11357_v27 = vld [vmem:[%s12965_s11 + $0x2144] ss:$72 sps:$4 sm:$0xff]  }
 0x2f5   : > { %v9307_v33 = vcombine.low %v13414_v25, %v13419_v37  ;;  %8268 = vmatprep.subr.bf16.mxu1 %v11297_v26  ;;  %v11349_v36 = vld [vmem:[%s12965_s11 + $0x21d0] ss:$72 sps:$4 sm:$0xff]   ;;  %v11354_v26 = vld [vmem:[%s12965_s11 + $0x1844] ss:$72 sps:$4 sm:$0xff]   ;;  %v11352_v28 = vld [vmem:[%s12965_s11 + $0x1840] ss:$72 sps:$4 sm:$0xff]  }
 0x2f6   : > { %v11360_v30 = vld [vmem:[%s12965_s11 + $0x17b4] ss:$72 sps:$4 sm:$0xff]   ;;  %v11496_v25 = vld [vmem:[%s12965_s11 + $0x13c8] ss:$72 sps:$4 sm:$0xff]  }
 0x2f7   : > { %8228 = vmatpush1.bf16.msra.mxu0 %v11292_v29  ;;  %v11355_v29 = vld [vmem:[%s12965_s11 + $0x2140] ss:$72 sps:$4 sm:$0xff]   ;;  %v11363_v31 = vld [vmem:[%s12965_s11 + $0x20b4] ss:$72 sps:$4 sm:$0xff]  }
 0x2f8   : > { %8269 = vmatpush1.bf16.msra.mxu1 %v11295_v48  ;;  %8229 = vmatprep.subr.bf16.mxu0 %v11300_v32  ;;  %v11358_v48 = vld [vmem:[%s12965_s11 + $0x17b0] ss:$72 sps:$4 sm:$0xff]  }
 0x2f9   : > { %8270 = vmatprep.subr.bf16.mxu1 %v11303_v7  ;;  %v11361_v32 = vld [vmem:[%s12965_s11 + $0x20b0] ss:$72 sps:$4 sm:$0xff]   ;;  %v11366_v7 = vld [vmem:[%s12965_s11 + $0x1724] ss:$72 sps:$4 sm:$0xff]  }
 0x2fa   : > { %v11499_v37 = vld [vmem:[%s12965_s11 + $0x1cc8] ss:$72 sps:$4 sm:$0xff]  }
 0x2fb   : > { %8230 = vmatpush1.bf16.msra.mxu0 %v11298_v34  ;;  %v11369_v34 = vld [vmem:[%s12965_s11 + $0x2024] ss:$72 sps:$4 sm:$0xff]  }
 0x2fc   : > { %8271 = vmatpush1.bf16.msra.mxu1 %v11301_v8  ;;  %8231 = vmatprep.subr.bf16.mxu0 %v11306_v35  ;;  %v11364_v8 = vld [vmem:[%s12965_s11 + $0x1720] ss:$72 sps:$4 sm:$0xff]  }
 0x2fd   : > { %8272 = vmatprep.subr.bf16.mxu1 %v11309_v43  ;;  %v11367_v35 = vld [vmem:[%s12965_s11 + $0x2020] ss:$72 sps:$4 sm:$0xff]   ;;  %v11372_v43 = vld [vmem:[%s12965_s11 + $0x1694] ss:$72 sps:$4 sm:$0xff]  }
 0x2ff   : > { %8232 = vmatpush1.bf16.msra.mxu0 %v11304_v45  ;;  %v11375_v45 = vld [vmem:[%s12965_s11 + $0x1f94] ss:$72 sps:$4 sm:$0xff]  }
 0x300   : > { %8273 = vmatpush1.bf16.msra.mxu1 %v11307_v46  ;;  %8233 = vmatprep.subr.bf16.mxu0 %v11312_v47  ;;  %v11370_v46 = vld [vmem:[%s12965_s11 + $0x1690] ss:$72 sps:$4 sm:$0xff]  }
 0x301   : > { %8274 = vmatprep.subr.bf16.mxu1 %v11315_v49  ;;  %v11373_v47 = vld [vmem:[%s12965_s11 + $0x1f90] ss:$72 sps:$4 sm:$0xff]   ;;  %v11378_v49 = vld [vmem:[%s12965_s11 + $0x40c] ss:$72 sps:$4 sm:$0xff]  }
 0x303   : > { %8234 = vmatpush1.bf16.msra.mxu0 %v11310_v51  ;;  %v11381_v51 = vld [vmem:[%s12965_s11 + $0xd0c] ss:$72 sps:$4 sm:$0xff]  }
 0x304   : > { %8275 = vmatpush1.bf16.msra.mxu1 %v11313_v52  ;;  %8235 = vmatprep.subr.bf16.mxu0 %v11318_v53  ;;  %v11376_v52 = vld [vmem:[%s12965_s11 + $0x408] ss:$72 sps:$4 sm:$0xff]  }
 0x305   : > { %8276 = vmatprep.subr.bf16.mxu1 %v11321_v54  ;;  %v11379_v53 = vld [vmem:[%s12965_s11 + $0xd08] ss:$72 sps:$4 sm:$0xff]   ;;  %v11384_v54 = vld [vmem:[%s12965_s11 + $0x37c] ss:$72 sps:$4 sm:$0xff]  }
 0x307   : > { %8236 = vmatpush1.bf16.msra.mxu0 %v11316_v55 }
 0x308   : > { %8277 = vmatpush1.bf16.msra.mxu1 %v11319_v56  ;;  %8237 = vmatprep.subr.bf16.mxu0 %v11324_v59  ;;  %v11387_v56 = vld [vmem:[%s12965_s11 + $0xc7c] ss:$72 sps:$4 sm:$0xff]  }
 0x309   : > { %8278 = vmatprep.subr.bf16.mxu1 %v11327_v60  ;;  %v11382_v60 = vld [vmem:[%s12965_s11 + $0x378] ss:$72 sps:$4 sm:$0xff]  }
 0x30b   : > { %8238 = vmatpush1.bf16.msra.mxu0 %v11322_v61 }
 0x30c   : > { %8279 = vmatpush1.bf16.msra.mxu1 %v11325_v62  ;;  %8239 = vmatprep.subr.bf16.mxu0 %v11330_v63  ;;  %v11385_v62 = vld [vmem:[%s12965_s11 + $0xc78] ss:$72 sps:$4 sm:$0xff]   ;;  %v11390_v63 = vld [vmem:[%s12965_s11 + $0x2ec] ss:$72 sps:$4 sm:$0xff]  }
 0x30d   : > { %8280 = vmatprep.subr.bf16.mxu1 %v11333_v0 }
 0x30f   : > { %8240 = vmatpush2.bf16.msra.mxu0 %v11328_v5  ;;  %v11393_v5 = vld [vmem:[%s12965_s11 + $0xbec] ss:$72 sps:$4 sm:$0xff]  }
 0x310   : > { %8281 = vmatpush2.bf16.msra.mxu1 %v11331_v6  ;;  %8241 = vmatprep.subr.bf16.mxu0 %v11336_v9 }
 0x311   : > { %8282 = vmatprep.subr.bf16.mxu1 %v11339_v10  ;;  %v11388_v10 = vld [vmem:[%s12965_s11 + $0x2e8] ss:$72 sps:$4 sm:$0xff]  }
 0x313   : > { %8242 = vmatpush2.bf16.msra.mxu0 %v11334_v11 }
 0x314   : > { %8283 = vmatpush2.bf16.msra.mxu1 %v11337_v12  ;;  %8243 = vmatprep.subr.bf16.mxu0 %v11342_v15  ;;  %v11391_v12 = vld [vmem:[%s12965_s11 + $0xbe8] ss:$72 sps:$4 sm:$0xff]   ;;  %v11396_v15 = vld [vmem:[%s12965_s11 + $0x25c] ss:$72 sps:$4 sm:$0xff]  }
 0x315   : > { %8284 = vmatprep.subr.bf16.mxu1 %v11345_v16 }
 0x317   : > { %8244 = vmatpush2.bf16.msra.mxu0 %v11340_v17  ;;  %v11399_v17 = vld [vmem:[%s12965_s11 + $0xb5c] ss:$72 sps:$4 sm:$0xff]  }
 0x318   : > { %8285 = vmatpush2.bf16.msra.mxu1 %v11343_v18  ;;  %8245 = vmatprep.subr.bf16.mxu0 %v11348_v19  ;;  %v11394_v18 = vld [vmem:[%s12965_s11 + $0x258] ss:$72 sps:$4 sm:$0xff]  }
 0x319   : > { %8286 = vmatprep.subr.bf16.mxu1 %v11351_v20  ;;  %v11397_v19 = vld [vmem:[%s12965_s11 + $0xb58] ss:$72 sps:$4 sm:$0xff]   ;;  %v11402_v20 = vld [vmem:[%s12965_s11 + $0x1cc] ss:$72 sps:$4 sm:$0xff]  }
 0x31b   : > { %8246 = vmatpush2.bf16.msra.mxu0 %v11346_v24  ;;  %v11405_v24 = vld [vmem:[%s12965_s11 + $0xacc] ss:$72 sps:$4 sm:$0xff]  }
 0x31c   : > { %8287 = vmatpush2.bf16.msra.mxu1 %v11349_v36  ;;  %8247 = vmatprep.subr.bf16.mxu0 %v11354_v26  ;;  %v11400_v36 = vld [vmem:[%s12965_s11 + $0x1c8] ss:$72 sps:$4 sm:$0xff]  }
 0x31d   : > { %8288 = vmatprep.subr.bf16.mxu1 %v11357_v27  ;;  %v11403_v26 = vld [vmem:[%s12965_s11 + $0xac8] ss:$72 sps:$4 sm:$0xff]   ;;  %v11408_v27 = vld [vmem:[%s12965_s11 + $0x13c] ss:$72 sps:$4 sm:$0xff]  }
 0x31f   : > { %8248 = vmatpush2.bf16.msra.mxu0 %v11352_v28  ;;  %v11411_v28 = vld [vmem:[%s12965_s11 + $0xa3c] ss:$72 sps:$4 sm:$0xff]  }
 0x320   : > { %8289 = vmatpush2.bf16.msra.mxu1 %v11355_v29  ;;  %8249 = vmatprep.subr.bf16.mxu0 %v11360_v30  ;;  %v11406_v29 = vld [vmem:[%s12965_s11 + $0x138] ss:$72 sps:$4 sm:$0xff]  }
 0x321   : > { %8290 = vmatprep.subr.bf16.mxu1 %v11363_v31  ;;  %v11409_v30 = vld [vmem:[%s12965_s11 + $0xa38] ss:$72 sps:$4 sm:$0xff]   ;;  %v11414_v31 = vld [vmem:[%s12965_s11 + $0xac] ss:$72 sps:$4 sm:$0xff]  }
 0x323   : > { %8250 = vmatpush2.bf16.msra.mxu0 %v11358_v48  ;;  %v11417_v48 = vld [vmem:[%s12965_s11 + $0x9ac] ss:$72 sps:$4 sm:$0xff]  }
 0x324   : > { %8291 = vmatpush2.bf16.msra.mxu1 %v11361_v32  ;;  %8251 = vmatprep.subr.bf16.mxu0 %v11366_v7  ;;  %v11412_v32 = vld [vmem:[%s12965_s11 + $0xa8] ss:$72 sps:$4 sm:$0xff]  }
 0x325   : > { %8292 = vmatprep.subr.bf16.mxu1 %v11369_v34  ;;  %v11415_v7 = vld [vmem:[%s12965_s11 + $0x9a8] ss:$72 sps:$4 sm:$0xff]   ;;  %v11420_v34 = vld [vmem:[%s12965_s11 + $0x1c] ss:$72 sps:$4 sm:$0xff]  }
 0x327   : > { %8252 = vmatpush2.bf16.msra.mxu0 %v11364_v8  ;;  %v11423_v8 = vld [vmem:[%s12965_s11 + $0x91c] ss:$72 sps:$4 sm:$0xff]  }
 0x328   : > { %8293 = vmatpush2.bf16.msra.mxu1 %v11367_v35  ;;  %8253 = vmatprep.subr.bf16.mxu0 %v11372_v43  ;;  %v11418_v35 = vld [vmem:[%s12965_s11 + $0x18] ss:$72 sps:$4 sm:$0xff]  }
 0x329   : > { %8294 = vmatprep.subr.bf16.mxu1 %v11375_v45  ;;  %v11421_v43 = vld [vmem:[%s12965_s11 + $0x918] ss:$72 sps:$4 sm:$0xff]   ;;  %v11426_v45 = vld [vmem:[%s12965_s11 + $0x88c] ss:$72 sps:$4 sm:$0xff]  }
 0x32b   : > { %8254 = vmatpush2.bf16.msra.mxu0 %v11370_v46  ;;  %v11429_v46 = vld [vmem:[%s12965_s11 + $0x118c] ss:$72 sps:$4 sm:$0xff]  }
 0x32c   : > { %8295 = vmatpush2.bf16.msra.mxu1 %v11373_v47  ;;  %8305 = vmatprep.subr.bf16.mxu0 %v11378_v49  ;;  %v11424_v47 = vld [vmem:[%s12965_s11 + $0x888] ss:$72 sps:$4 sm:$0xff]  }
 0x32d   : > { %8346 = vmatprep.subr.bf16.mxu1 %v11381_v51  ;;  %v11427_v49 = vld [vmem:[%s12965_s11 + $0x1188] ss:$72 sps:$4 sm:$0xff]   ;;  %v11432_v51 = vld [vmem:[%s12965_s11 + $0x7fc] ss:$72 sps:$4 sm:$0xff]  }
 0x32e   : > { %v13482_v55 = vpop.f32.mrf.mxu0  ;;  %8256 = vmatmul.mubr.bf16.vlgmr.msra.gmra.mxu0 %v13185_v44 }
 0x32f   : > { %v13486_v59 = vpop.f32.mrf.mxu1  ;;  %8297 = vmatmul.mubr.bf16.vlgmr.msra.gmra.mxu1 %v13187_v42  ;;  %8306 = vmatpush1.bf16.msra.mxu0 %v11376_v52  ;;  %v11435_v52 = vld [vmem:[%s12965_s11 + $0x10fc] ss:$72 sps:$4 sm:$0xff]  }
 0x330   : > { %8337 = vmatprep.mubr.bf16.mxu0 %v13083_v1  ;;  %8347 = vmatpush1.bf16.msra.mxu1 %v11379_v53  ;;  %v13491_v61 = vpop.f32.mrf.mxu0  ;;  %v11430_v53 = vld [vmem:[%s12965_s11 + $0x7f8] ss:$72 sps:$4 sm:$0xff]  }
 0x331   : > { %8378 = vmatprep.mubr.bf16.mxu1 %v13085_v2  ;;  %v13496_v0 = vpop.f32.mrf.mxu1  ;;  %8307 = vmatprep.subr.bf16.mxu0 %v11384_v54  ;;  %v11433_v54 = vld [vmem:[%s12965_s11 + $0x10f8] ss:$72 sps:$4 sm:$0xff]  }
 0x332   : > { %v8015_v6 = vpop.f32.mrf.mxu0  ;;  %8348 = vmatprep.subr.bf16.mxu1 %v11387_v56  ;;  %v11438_v56 = vld [vmem:[%s12965_s11 + $0x76c] ss:$72 sps:$4 sm:$0xff]  }
 0x333   : > { %v8056_v9 = vpop.f32.mrf.mxu1  ;;  %8308 = vmatpush1.bf16.msra.mxu0 %v11382_v60  ;;  %v11441_v60 = vld [vmem:[%s12965_s11 + $0x106c] ss:$72 sps:$4 sm:$0xff]   ;;  %v11447_v6 = vld [vmem:[%s12965_s11 + $0xfdc] ss:$72 sps:$4 sm:$0xff]  }
 0x334   : > { %8349 = vmatpush1.bf16.msra.mxu1 %v11385_v62  ;;  %v8016_v11 = vpop.f32.mrf.mxu0  ;;  %8309 = vmatprep.subr.bf16.mxu0 %v11390_v63  ;;  %v11436_v62 = vld [vmem:[%s12965_s11 + $0x768] ss:$72 sps:$4 sm:$0xff]   ;;  %v11442_v9 = vld [vmem:[%s12965_s11 + $0x6d8] ss:$72 sps:$4 sm:$0xff]  }
 0x335   : > { %v8057_v16 = vpop.f32.mrf.mxu1  ;;  %8350 = vmatprep.subr.bf16.mxu1 %v11393_v5  ;;  %v11439_v63 = vld [vmem:[%s12965_s11 + $0x1068] ss:$72 sps:$4 sm:$0xff]   ;;  %v11444_v5 = vld [vmem:[%s12965_s11 + $0x6dc] ss:$72 sps:$4 sm:$0xff]   ;;  %v11450_v11 = vld [vmem:[%s12965_s11 + $0x64c] ss:$72 sps:$4 sm:$0xff]  }
 0x336   : > { %v11451_v16 = vld [vmem:[%s12965_s11 + $0xf48] ss:$72 sps:$4 sm:$0xff]  }
 0x337   : > { %8310 = vmatpush1.bf16.msra.mxu0 %v11388_v10  ;;  %v11445_v10 = vld [vmem:[%s12965_s11 + $0xfd8] ss:$72 sps:$4 sm:$0xff]  }
 0x338   : > { %8351 = vmatpush1.bf16.msra.mxu1 %v11391_v12  ;;  %8311 = vmatprep.subr.bf16.mxu0 %v11396_v15  ;;  %v11453_v12 = vld [vmem:[%s12965_s11 + $0xf4c] ss:$72 sps:$4 sm:$0xff]   ;;  %v11448_v15 = vld [vmem:[%s12965_s11 + $0x648] ss:$72 sps:$4 sm:$0xff]  }
 0x339   : > { %8352 = vmatprep.subr.bf16.mxu1 %v11399_v17  ;;  %v11456_v17 = vld [vmem:[%s12965_s11 + $0x5bc] ss:$72 sps:$4 sm:$0xff]  }
 0x33b   : > { %8312 = vmatpush1.bf16.msra.mxu0 %v11394_v18  ;;  %v11459_v18 = vld [vmem:[%s12965_s11 + $0xebc] ss:$72 sps:$4 sm:$0xff]  }
 0x33c   : > { %8353 = vmatpush1.bf16.msra.mxu1 %v11397_v19  ;;  %8313 = vmatprep.subr.bf16.mxu0 %v11402_v20  ;;  %v11454_v19 = vld [vmem:[%s12965_s11 + $0x5b8] ss:$72 sps:$4 sm:$0xff]  }
 0x33d   : > { %8354 = vmatprep.subr.bf16.mxu1 %v11405_v24  ;;  %v11457_v20 = vld [vmem:[%s12965_s11 + $0xeb8] ss:$72 sps:$4 sm:$0xff]   ;;  %v11462_v24 = vld [vmem:[%s12965_s11 + $0x52c] ss:$72 sps:$4 sm:$0xff]  }
 0x33f   : > { %8314 = vmatpush1.bf16.msra.mxu0 %v11400_v36  ;;  %v11465_v36 = vld [vmem:[%s12965_s11 + $0xe2c] ss:$72 sps:$4 sm:$0xff]  }
 0x340   : > { %8355 = vmatpush1.bf16.msra.mxu1 %v11403_v26  ;;  %8315 = vmatprep.subr.bf16.mxu0 %v11408_v27  ;;  %v11460_v26 = vld [vmem:[%s12965_s11 + $0x528] ss:$72 sps:$4 sm:$0xff]  }
 0x341   : > { %8356 = vmatprep.subr.bf16.mxu1 %v11411_v28  ;;  %v11463_v27 = vld [vmem:[%s12965_s11 + $0xe28] ss:$72 sps:$4 sm:$0xff]   ;;  %v11468_v28 = vld [vmem:[%s12965_s11 + $0x49c] ss:$72 sps:$4 sm:$0xff]  }
 0x343   : > { %8316 = vmatpush1.bf16.msra.mxu0 %v11406_v29  ;;  %v1974_v29 = vrot.slane %v13324_v23, %v13057_v39 }
 0x344   : > { %8357 = vmatpush1.bf16.msra.mxu1 %v11409_v30  ;;  %8317 = vmatprep.subr.bf16.mxu0 %v11414_v31  ;;  %v11471_v30 = vld [vmem:[%s12965_s11 + $0xd9c] ss:$72 sps:$4 sm:$0xff]   ;;  %v1978_v31 = vrot.slane %v13324_v23, %v13063_v41  ;;  %v11475_v23 = vld [vmem:[%s12965_s11 + $0x1f08] ss:$72 sps:$4 sm:$0xff]  }
 0x345   : > { %8358 = vmatprep.subr.bf16.mxu1 %v11417_v48  ;;  %v11466_v48 = vld [vmem:[%s12965_s11 + $0x498] ss:$72 sps:$4 sm:$0xff]  }
 0x347   : > { %8318 = vmatpush1.bf16.msra.mxu0 %v11412_v32  ;;  %v11469_v32 = vld [vmem:[%s12965_s11 + $0xd98] ss:$72 sps:$4 sm:$0xff]  }
 0x348   : > { %8359 = vmatpush1.bf16.msra.mxu1 %v11415_v7  ;;  %8319 = vmatprep.subr.bf16.mxu0 %v11420_v34  ;;  %v11474_v7 = vld [vmem:[%s12965_s11 + $0x160c] ss:$72 sps:$4 sm:$0xff]   ;;  %v8012_v34 = vadd.f32 %v13482_v55, %v1974_v29 }
 0x349   : > { %8360 = vmatprep.subr.bf16.mxu1 %v11423_v8  ;;  %v11477_v8 = vld [vmem:[%s12965_s11 + $0x1f0c] ss:$72 sps:$4 sm:$0xff]  }
 0x34b   : > { %8320 = vmatpush1.bf16.msra.mxu0 %v11418_v35  ;;  %v12751_v35 = vmov 1983009808  }
 0x34c   : > { %8361 = vmatpush1.bf16.msra.mxu1 %v11421_v43  ;;  %8321 = vmatprep.subr.bf16.mxu0 %v11426_v45  ;;  %v9310_v43 = vunpack.c.l.s4 %v12751_v35  ;;  %v8014_v45 = vadd.f32 %v13491_v61, %v1978_v31  ;;  %v11507_v31 = vld [vmem:[%s12965_s11 + $0x1c3c] ss:$72 sps:$4 sm:$0xff]   ;;  %v11511_v35 = vld [vmem:[%s12965_s11 + $0x1ba8] ss:$72 sps:$4 sm:$0xff]  }
 0x34d   : > { %8362 = vmatprep.subr.bf16.mxu1 %v11429_v46  ;;  %v11472_v46 = vld [vmem:[%s12965_s11 + $0x1608] ss:$72 sps:$4 sm:$0xff]  }
 0x34e   : > { %v8055_v61 = vadd.f32 %v13496_v0, %v8014_v45  ;;  %v11489_v0 = vld [vmem:[%s12965_s11 + $0x1dec] ss:$72 sps:$4 sm:$0xff]   ;;  %v11519_v45 = vld [vmem:[%s12965_s11 + $0x1b1c] ss:$72 sps:$4 sm:$0xff]  }
 0x34f   : > { %8322 = vmatpush2.bf16.msra.mxu0 %v11424_v47  ;;  %v8053_v47 = vadd.f32 %v13486_v59, %v8012_v34  ;;  %v11513_v34 = vld [vmem:[%s12965_s11 + $0x1bac] ss:$72 sps:$4 sm:$0xff]  }
 0x350   : > { %8363 = vmatpush2.bf16.msra.mxu1 %v11427_v49  ;;  %8323 = vmatprep.subr.bf16.mxu0 %v11432_v51  ;;  %v11480_v49 = vld [vmem:[%s12965_s11 + $0x157c] ss:$72 sps:$4 sm:$0xff]  }
 0x351   : > { %8364 = vmatprep.subr.bf16.mxu1 %v11435_v52  ;;  %v11483_v51 = vld [vmem:[%s12965_s11 + $0x1e7c] ss:$72 sps:$4 sm:$0xff]   ;;  %v9311_v52 = vunpack.c.0.s8 %v9310_v43 }
 0x352   : > { %v11516_v43 = vld [vmem:[%s12965_s11 + $0x121c] ss:$72 sps:$4 sm:$0xff]  }
 0x353   : > { %8324 = vmatpush2.bf16.msra.mxu0 %v11430_v53 }
 0x354   : > { %8365 = vmatpush2.bf16.msra.mxu1 %v11433_v54  ;;  %8325 = vmatprep.subr.bf16.mxu0 %v11438_v56  ;;  %v11478_v56 = vld [vmem:[%s12965_s11 + $0x1578] ss:$72 sps:$4 sm:$0xff]  }
 0x355   : > { %8366 = vmatprep.subr.bf16.mxu1 %v11441_v60  ;;  %v11481_v60 = vld [vmem:[%s12965_s11 + $0x1e78] ss:$72 sps:$4 sm:$0xff]  }
 0x357   : > { %8326 = vmatpush2.bf16.msra.mxu0 %v11436_v62  ;;  %v11486_v62 = vld [vmem:[%s12965_s11 + $0x14ec] ss:$72 sps:$4 sm:$0xff]  }
 0x358   : > { %8367 = vmatpush2.bf16.msra.mxu1 %v11439_v63  ;;  %8327 = vmatprep.subr.bf16.mxu0 %v11444_v5 }
 0x359   : > { %8368 = vmatprep.subr.bf16.mxu1 %v11447_v6 }
 0x35b   : > { %8328 = vmatpush2.bf16.msra.mxu0 %v11442_v9  ;;  %v13576_v9 = vsub.s32 %v9311_v52, %v12973_v50  ;;  %v11495_v50 = vld [vmem:[%s12965_s11 + $0x1d5c] ss:$72 sps:$4 sm:$0xff]  }
 0x35c   : > { %8369 = vmatpush2.bf16.msra.mxu1 %v11445_v10  ;;  %8329 = vmatprep.subr.bf16.mxu0 %v11450_v11  ;;  %v11528_v52 = vld [vmem:[%s12965_s11 + $0x19fc] ss:$72 sps:$4 sm:$0xff]  }
 0x35d   : > { %8370 = vmatprep.subr.bf16.mxu1 %v11453_v12 }
 0x35f   : > { %8330 = vmatpush2.bf16.msra.mxu0 %v11448_v15  ;;  %v11484_v15 = vld [vmem:[%s12965_s11 + $0x14e8] ss:$72 sps:$4 sm:$0xff]  }
 0x360   : > { %8371 = vmatpush2.bf16.msra.mxu1 %v11451_v16  ;;  %8331 = vmatprep.subr.bf16.mxu0 %v11456_v17  ;;  %v11487_v17 = vld [vmem:[%s12965_s11 + $0x1de8] ss:$72 sps:$4 sm:$0xff]  }
 0x361   : > { %8372 = vmatprep.subr.bf16.mxu1 %v11459_v18  ;;  %v11492_v18 = vld [vmem:[%s12965_s11 + $0x145c] ss:$72 sps:$4 sm:$0xff]  }
 0x363   : > { %8332 = vmatpush2.bf16.msra.mxu0 %v11454_v19 }
 0x364   : > { %8373 = vmatpush2.bf16.msra.mxu1 %v11457_v20  ;;  %8333 = vmatprep.subr.bf16.mxu0 %v11462_v24  ;;  %v9315_v24 = vrot.slane %v9307_v33, %v13576_v9  ;;  %v11504_v33 = vld [vmem:[%s12965_s11 + $0x133c] ss:$72 sps:$4 sm:$0xff]  }
 0x365   : > { %8374 = vmatprep.subr.bf16.mxu1 %v11465_v36 }
 0x367   : > { %8334 = vmatpush2.bf16.msra.mxu0 %v11460_v26  ;;  %v11490_v26 = vld [vmem:[%s12965_s11 + $0x1458] ss:$72 sps:$4 sm:$0xff]  }
 0x368   : > { %8375 = vmatpush2.bf16.msra.mxu1 %v11463_v27  ;;  %8335 = vmatprep.subr.bf16.mxu0 %v11468_v28  ;;  %v11493_v27 = vld [vmem:[%s12965_s11 + $0x1d58] ss:$72 sps:$4 sm:$0xff]   ;;  %v11498_v28 = vld [vmem:[%s12965_s11 + $0x13cc] ss:$72 sps:$4 sm:$0xff]  }
 0x369   : > { %8376 = vmatprep.subr.bf16.mxu1 %v11471_v30  ;;  %v11501_v30 = vld [vmem:[%s12965_s11 + $0x1ccc] ss:$72 sps:$4 sm:$0xff]  }
 0x36b   : > { %8336 = vmatpush2.bf16.msra.mxu0 %v11466_v48  ;;  %v11502_v48 = vld [vmem:[%s12965_s11 + $0x1338] ss:$72 sps:$4 sm:$0xff]  }
 0x36c   : > { %8377 = vmatpush2.bf16.msra.mxu1 %v11469_v32  ;;  %8387 = vmatprep.subr.bf16.mxu0 %v11474_v7  ;;  %v11505_v32 = vld [vmem:[%s12965_s11 + $0x1c38] ss:$72 sps:$4 sm:$0xff]   ;;  %v11510_v7 = vld [vmem:[%s12965_s11 + $0x12ac] ss:$72 sps:$4 sm:$0xff]  }
 0x36d   : > { %8428 = vmatprep.subr.bf16.mxu1 %v11477_v8  ;;  %v11508_v8 = vld [vmem:[%s12965_s11 + $0x12a8] ss:$72 sps:$4 sm:$0xff]  }
 0x36e   : > { %v8093_v55 = vpop.f32.mrf.mxu0  ;;  %8338 = vmatmul.mubr.bf16.vlgmr.msra.gmra.mxu0 %v13087_v3 }
 0x36f   : > { %v8094_v53 = vadd.f32 %v8093_v55, %v8053_v47  ;;  %v8134_v54 = vpop.f32.mrf.mxu1  ;;  %8379 = vmatmul.mubr.bf16.vlgmr.msra.gmra.mxu1 %v13089_v4  ;;  %8388 = vmatpush1.bf16.msra.mxu0 %v11472_v46  ;;  %v11514_v46 = vld [vmem:[%s12965_s11 + $0x1218] ss:$72 sps:$4 sm:$0xff]   ;;  %v11522_v47 = vld [vmem:[%s12965_s11 + $0x1a8c] ss:$72 sps:$4 sm:$0xff]   ;;  %v11520_v55 = vld [vmem:[%s12965_s11 + $0x1a88] ss:$72 sps:$4 sm:$0xff]  }
 0x370   : > { %8419 = vmatprep.mubr.bf16.mxu0 %v13109_v21  ;;  %8429 = vmatpush1.bf16.msra.mxu1 %v11475_v23  ;;  %v8095_v59 = vpop.f32.mrf.mxu0  ;;  %v11517_v23 = vld [vmem:[%s12965_s11 + $0x1b18] ss:$72 sps:$4 sm:$0xff]  }
 0x371   : > { %8460 = vmatprep.mubr.bf16.mxu1 %v13111_v22  ;;  %v8096_v63 = vadd.f32 %v8095_v59, %v8055_v61  ;;  %v8136_v5 = vpop.f32.mrf.mxu1  ;;  %8389 = vmatprep.subr.bf16.mxu0 %v11480_v49  ;;  %v8135_v10 = vadd.f32 %v8134_v54, %v8094_v53  ;;  %v11525_v49 = vld [vmem:[%s12965_s11 + $0x238c] ss:$72 sps:$4 sm:$0xff]   ;;  %v11531_v61 = vld [vmem:[%s12965_s11 + $0x22fc] ss:$72 sps:$4 sm:$0xff]   ;;  %v11526_v53 = vld [vmem:[%s12965_s11 + $0x19f8] ss:$72 sps:$4 sm:$0xff]  }
 0x372   : > { %v8097_v6 = vpop.f32.mrf.mxu0  ;;  %8430 = vmatprep.subr.bf16.mxu1 %v11483_v51  ;;  %v11523_v51 = vld [vmem:[%s12965_s11 + $0x2388] ss:$72 sps:$4 sm:$0xff]   ;;  %v11529_v54 = vld [vmem:[%s12965_s11 + $0x22f8] ss:$72 sps:$4 sm:$0xff]   ;;  %v11537_v59 = vld [vmem:[%s12965_s11 + $0x226c] ss:$72 sps:$4 sm:$0xff]  }
 0x373   : > { %v8137_v11 = vadd.f32 %v8136_v5, %v8096_v63  ;;  %v8138_v12 = vpop.f32.mrf.mxu1  ;;  %8390 = vmatpush1.bf16.msra.mxu0 %v11478_v56  ;;  %v11534_v56 = vld [vmem:[%s12965_s11 + $0x196c] ss:$72 sps:$4 sm:$0xff]   ;;  %v11540_v63 = vld [vmem:[%s12965_s11 + $0x18dc] ss:$72 sps:$4 sm:$0xff]   ;;  %v11541_v6 = vld [vmem:[%s12965_s11 + $0x21d8] ss:$72 sps:$4 sm:$0xff]  }
 0x374   : > { %8431 = vmatpush1.bf16.msra.mxu1 %v11481_v60  ;;  %v8098_v16 = vpop.f32.mrf.mxu0  ;;  %8391 = vmatprep.subr.bf16.mxu0 %v11486_v62  ;;  %v11532_v60 = vld [vmem:[%s12965_s11 + $0x1968] ss:$72 sps:$4 sm:$0xff]   ;;  %v11543_v5 = vld [vmem:[%s12965_s11 + $0x21dc] ss:$72 sps:$4 sm:$0xff]  }
 0x375   : > { %v9308_v19 = vcombine.low %v8135_v10, %v8137_v11  ;;  %v8139_v20 = vpop.f32.mrf.mxu1  ;;  %8432 = vmatprep.subr.bf16.mxu1 %v11489_v0  ;;  %v11535_v62 = vld [vmem:[%s12965_s11 + $0x2268] ss:$72 sps:$4 sm:$0xff]   ;;  %v11538_v0 = vld [vmem:[%s12965_s11 + $0x18d8] ss:$72 sps:$4 sm:$0xff]   ;;  %v11546_v10 = vld [vmem:[%s12965_s11 + $0x184c] ss:$72 sps:$4 sm:$0xff]  }
 0x376   : > { %v11549_v11 = vld [vmem:[%s12965_s11 + $0x214c] ss:$72 sps:$4 sm:$0xff]   ;;  %v11544_v12 = vld [vmem:[%s12965_s11 + $0x1848] ss:$72 sps:$4 sm:$0xff]   ;;  %v11552_v16 = vld [vmem:[%s12965_s11 + $0x17bc] ss:$72 sps:$4 sm:$0xff]  }
 0x377   : > { %v9322_v36 = vrot.slane %v9308_v19, %v13576_v9  ;;  %8392 = vmatpush1.bf16.msra.mxu0 %v11484_v15  ;;  %v11547_v15 = vld [vmem:[%s12965_s11 + $0x2148] ss:$72 sps:$4 sm:$0xff]   ;;  %v11553_v19 = vld [vmem:[%s12965_s11 + $0x20b8] ss:$72 sps:$4 sm:$0xff]   ;;  %v11558_v20 = vld [vmem:[%s12965_s11 + $0x172c] ss:$72 sps:$4 sm:$0xff]  }
 0x378   : > { %8433 = vmatpush1.bf16.msra.mxu1 %v11487_v17  ;;  %8393 = vmatprep.subr.bf16.mxu0 %v11492_v18  ;;  %v11555_v17 = vld [vmem:[%s12965_s11 + $0x20bc] ss:$72 sps:$4 sm:$0xff]   ;;  %v11550_v18 = vld [vmem:[%s12965_s11 + $0x17b8] ss:$72 sps:$4 sm:$0xff]  }
 0x379   : > { %v9323_v29 = vcombine.low %v9315_v24, %v9322_v36  ;;  %8434 = vmatprep.subr.bf16.mxu1 %v11495_v50  ;;  %v11561_v50 = vld [vmem:[%s12965_s11 + $0x202c] ss:$72 sps:$4 sm:$0xff]   ;;  %v11556_v24 = vld [vmem:[%s12965_s11 + $0x1728] ss:$72 sps:$4 sm:$0xff]  }
 0x37a   : > { %v11559_v36 = vld [vmem:[%s12965_s11 + $0x2028] ss:$72 sps:$4 sm:$0xff]  }
 0x37b   : > { %9388 = vst [vmem:[%s13592_s28] sm:$0xff] %v9323_v29  ;;  %8394 = vmatpush1.bf16.msra.mxu0 %v11490_v26  ;;  %v11564_v26 = vld [vmem:[%s12965_s11 + $0x169c] ss:$72 sps:$4 sm:$0xff]   ;;  %v11565_v29 = vld [vmem:[%s12965_s11 + $0x1f98] ss:$72 sps:$4 sm:$0xff]  }
 0x37c   : > { %8435 = vmatpush1.bf16.msra.mxu1 %v11493_v27  ;;  %8395 = vmatprep.subr.bf16.mxu0 %v11498_v28  ;;  %v11567_v27 = vld [vmem:[%s12965_s11 + $0x1f9c] ss:$72 sps:$4 sm:$0xff]   ;;  %v11562_v28 = vld [vmem:[%s12965_s11 + $0x1698] ss:$72 sps:$4 sm:$0xff]  }
 0x37d   : > { %8436 = vmatprep.subr.bf16.mxu1 %v11501_v30  ;;  %v11570_v30 = vld [vmem:[%s12965_s11 + $0x414] ss:$72 sps:$4 sm:$0xff]  }
 0x37f   : > { %8396 = vmatpush1.bf16.msra.mxu0 %v11496_v25  ;;  %v11573_v25 = vld [vmem:[%s12965_s11 + $0xd14] ss:$72 sps:$4 sm:$0xff]  }
 0x380   : > { %8437 = vmatpush1.bf16.msra.mxu1 %v11499_v37  ;;  %8397 = vmatprep.subr.bf16.mxu0 %v11504_v33  ;;  %v13644_v37 = vld [vmem:[%s13321_s27] sm:$0xff] }
 0x381   : > { %8438 = vmatprep.subr.bf16.mxu1 %v11507_v31  ;;  %v1982_v33 = vrot.slane %v13644_v37, %v13156_v13  ;;  %v11568_v31 = vld [vmem:[%s12965_s11 + $0x410] ss:$72 sps:$4 sm:$0xff]  }
 0x383   : > { %8398 = vmatpush1.bf16.msra.mxu0 %v11502_v48  ;;  %v11571_v48 = vld [vmem:[%s12965_s11 + $0xd10] ss:$72 sps:$4 sm:$0xff]  }
 0x384   : > { %8439 = vmatpush1.bf16.msra.mxu1 %v11505_v32  ;;  %8399 = vmatprep.subr.bf16.mxu0 %v11510_v7  ;;  %v1986_v32 = vrot.slane %v13644_v37, %v13074_v57  ;;  %v11576_v7 = vld [vmem:[%s12965_s11 + $0x384] ss:$72 sps:$4 sm:$0xff]  }
 0x385   : > { %8440 = vmatprep.subr.bf16.mxu1 %v11513_v34 }
 0x387   : > { %8400 = vmatpush1.bf16.msra.mxu0 %v11508_v8  ;;  %v11579_v8 = vld [vmem:[%s12965_s11 + $0xc84] ss:$72 sps:$4 sm:$0xff]  }
 0x388   : > { %8441 = vmatpush1.bf16.msra.mxu1 %v11511_v35  ;;  %8401 = vmatprep.subr.bf16.mxu0 %v11516_v43 }
 0x389   : > { %8442 = vmatprep.subr.bf16.mxu1 %v11519_v45  ;;  %v11574_v45 = vld [vmem:[%s12965_s11 + $0x380] ss:$72 sps:$4 sm:$0xff]  }
 0x38b   : > { %8402 = vmatpush1.bf16.msra.mxu0 %v11514_v46 }
 0x38c   : > { %8443 = vmatpush1.bf16.msra.mxu1 %v11517_v23  ;;  %8403 = vmatprep.subr.bf16.mxu0 %v11522_v47  ;;  %v11577_v23 = vld [vmem:[%s12965_s11 + $0xc80] ss:$72 sps:$4 sm:$0xff]   ;;  %v11582_v47 = vld [vmem:[%s12965_s11 + $0x2f4] ss:$72 sps:$4 sm:$0xff]  }
 0x38d   : > { %8444 = vmatprep.subr.bf16.mxu1 %v11525_v49 }
 0x38f   : > { %8404 = vmatpush2.bf16.msra.mxu0 %v11520_v55 }
 0x390   : > { %8445 = vmatpush2.bf16.msra.mxu1 %v11523_v51  ;;  %8405 = vmatprep.subr.bf16.mxu0 %v11528_v52  ;;  %v11585_v52 = vld [vmem:[%s12965_s11 + $0xbf4] ss:$72 sps:$4 sm:$0xff]  }
 0x391   : > { %8446 = vmatprep.subr.bf16.mxu1 %v11531_v61 }
 0x393   : > { %8406 = vmatpush2.bf16.msra.mxu0 %v11526_v53 }
 0x394   : > { %8447 = vmatpush2.bf16.msra.mxu1 %v11529_v54  ;;  %8407 = vmatprep.subr.bf16.mxu0 %v11534_v56  ;;  %v11580_v56 = vld [vmem:[%s12965_s11 + $0x2f0] ss:$72 sps:$4 sm:$0xff]  }
 0x395   : > { %8448 = vmatprep.subr.bf16.mxu1 %v11537_v59 }
 0x397   : > { %8408 = vmatpush2.bf16.msra.mxu0 %v11532_v60  ;;  %v11583_v60 = vld [vmem:[%s12965_s11 + $0xbf0] ss:$72 sps:$4 sm:$0xff]  }
 0x398   : > { %8449 = vmatpush2.bf16.msra.mxu1 %v11535_v62  ;;  %8409 = vmatprep.subr.bf16.mxu0 %v11540_v63  ;;  %v11588_v62 = vld [vmem:[%s12965_s11 + $0x264] ss:$72 sps:$4 sm:$0xff]  }
 0x399   : > { %8450 = vmatprep.subr.bf16.mxu1 %v11543_v5  ;;  %v11591_v5 = vld [vmem:[%s12965_s11 + $0xb64] ss:$72 sps:$4 sm:$0xff]  }
 0x39b   : > { %8410 = vmatpush2.bf16.msra.mxu0 %v11538_v0  ;;  %v11586_v0 = vld [vmem:[%s12965_s11 + $0x260] ss:$72 sps:$4 sm:$0xff]  }
 0x39c   : > { %8451 = vmatpush2.bf16.msra.mxu1 %v11541_v6  ;;  %8411 = vmatprep.subr.bf16.mxu0 %v11546_v10  ;;  %v11589_v6 = vld [vmem:[%s12965_s11 + $0xb60] ss:$72 sps:$4 sm:$0xff]   ;;  %v11594_v10 = vld [vmem:[%s12965_s11 + $0x1d4] ss:$72 sps:$4 sm:$0xff]  }
 0x39d   : > { %8452 = vmatprep.subr.bf16.mxu1 %v11549_v11  ;;  %v11597_v11 = vld [vmem:[%s12965_s11 + $0xad4] ss:$72 sps:$4 sm:$0xff]  }
 0x39f   : > { %8412 = vmatpush2.bf16.msra.mxu0 %v11544_v12  ;;  %v11592_v12 = vld [vmem:[%s12965_s11 + $0x1d0] ss:$72 sps:$4 sm:$0xff]  }
 0x3a0   : > { %8453 = vmatpush2.bf16.msra.mxu1 %v11547_v15  ;;  %8413 = vmatprep.subr.bf16.mxu0 %v11552_v16  ;;  %v11595_v15 = vld [vmem:[%s12965_s11 + $0xad0] ss:$72 sps:$4 sm:$0xff]   ;;  %v11600_v16 = vld [vmem:[%s12965_s11 + $0x144] ss:$72 sps:$4 sm:$0xff]  }
 0x3a1   : > { %8454 = vmatprep.subr.bf16.mxu1 %v11555_v17  ;;  %v11603_v17 = vld [vmem:[%s12965_s11 + $0xa44] ss:$72 sps:$4 sm:$0xff]  }
 0x3a3   : > { %8414 = vmatpush2.bf16.msra.mxu0 %v11550_v18  ;;  %v11598_v18 = vld [vmem:[%s12965_s11 + $0x140] ss:$72 sps:$4 sm:$0xff]  }
 0x3a4   : > { %8455 = vmatpush2.bf16.msra.mxu1 %v11553_v19  ;;  %8415 = vmatprep.subr.bf16.mxu0 %v11558_v20  ;;  %v11601_v19 = vld [vmem:[%s12965_s11 + $0xa40] ss:$72 sps:$4 sm:$0xff]   ;;  %v11606_v20 = vld [vmem:[%s12965_s11 + $0xb4] ss:$72 sps:$4 sm:$0xff]  }
 0x3a5   : > { %8456 = vmatprep.subr.bf16.mxu1 %v11561_v50  ;;  %v11609_v50 = vld [vmem:[%s12965_s11 + $0x9b4] ss:$72 sps:$4 sm:$0xff]  }
 0x3a7   : > { %8416 = vmatpush2.bf16.msra.mxu0 %v11556_v24  ;;  %v11604_v24 = vld [vmem:[%s12965_s11 + $0xb0] ss:$72 sps:$4 sm:$0xff]  }
 0x3a8   : > { %8457 = vmatpush2.bf16.msra.mxu1 %v11559_v36  ;;  %8417 = vmatprep.subr.bf16.mxu0 %v11564_v26  ;;  %v11607_v36 = vld [vmem:[%s12965_s11 + $0x9b0] ss:$72 sps:$4 sm:$0xff]   ;;  %v11612_v26 = vld [vmem:[%s12965_s11 + $0x24] ss:$72 sps:$4 sm:$0xff]  }
 0x3a9   : > { %8458 = vmatprep.subr.bf16.mxu1 %v11567_v27  ;;  %v11615_v27 = vld [vmem:[%s12965_s11 + $0x924] ss:$72 sps:$4 sm:$0xff]  }
 0x3ab   : > { %8418 = vmatpush2.bf16.msra.mxu0 %v11562_v28  ;;  %v11610_v28 = vld [vmem:[%s12965_s11 + $0x20] ss:$72 sps:$4 sm:$0xff]  }
 0x3ac   : > { %8459 = vmatpush2.bf16.msra.mxu1 %v11565_v29  ;;  %8469 = vmatprep.subr.bf16.mxu0 %v11570_v30  ;;  %v11613_v29 = vld [vmem:[%s12965_s11 + $0x920] ss:$72 sps:$4 sm:$0xff]   ;;  %v11618_v30 = vld [vmem:[%s12965_s11 + $0x894] ss:$72 sps:$4 sm:$0xff]  }
 0x3ad   : > { %8510 = vmatprep.subr.bf16.mxu1 %v11573_v25  ;;  %v11621_v25 = vld [vmem:[%s12965_s11 + $0x1194] ss:$72 sps:$4 sm:$0xff]  }
 0x3ae   : > { %v8175_v34 = vpop.f32.mrf.mxu0  ;;  %8420 = vmatmul.mubr.bf16.vlgmr.msra.gmra.mxu0 %v13185_v44 }
 0x3af   : > { %v8176_v35 = vadd.f32 %v8175_v34, %v1982_v33  ;;  %v8216_v43 = vpop.f32.mrf.mxu1  ;;  %8461 = vmatmul.mubr.bf16.vlgmr.msra.gmra.mxu1 %v13187_v42  ;;  %8470 = vmatpush1.bf16.msra.mxu0 %v11568_v31  ;;  %v11616_v33 = vld [vmem:[%s12965_s11 + $0x890] ss:$72 sps:$4 sm:$0xff]   ;;  %v11625_v34 = vld [vmem:[%s12965_s11 + $0x1100] ss:$72 sps:$4 sm:$0xff]  }
 0x3b0   : > { %8501 = vmatprep.mubr.bf16.mxu0 %v13083_v1  ;;  %8511 = vmatpush1.bf16.msra.mxu1 %v11571_v48  ;;  %v8177_v46 = vpop.f32.mrf.mxu0  ;;  %v11619_v31 = vld [vmem:[%s12965_s11 + $0x1190] ss:$72 sps:$4 sm:$0xff]   ;;  %v11624_v48 = vld [vmem:[%s12965_s11 + $0x804] ss:$72 sps:$4 sm:$0xff]  }
 0x3b1   : > { %v13660_v49 = vadd.f32 %v8216_v43, %v8176_v35  ;;  %8542 = vmatprep.mubr.bf16.mxu1 %v13085_v2  ;;  %v8178_v55 = vadd.f32 %v8177_v46, %v1986_v32  ;;  %v8218_v51 = vpop.f32.mrf.mxu1  ;;  %8471 = vmatprep.subr.bf16.mxu0 %v11576_v7  ;;  %v11627_v32 = vld [vmem:[%s12965_s11 + $0x1104] ss:$72 sps:$4 sm:$0xff]   ;;  %v11622_v7 = vld [vmem:[%s12965_s11 + $0x800] ss:$72 sps:$4 sm:$0xff]   ;;  %v11633_v35 = vld [vmem:[%s12965_s11 + $0x1074] ss:$72 sps:$4 sm:$0xff]  }
 0x3b2   : > { %v8179_v61 = vpop.f32.mrf.mxu0  ;;  %8512 = vmatprep.subr.bf16.mxu1 %v11579_v8  ;;  %v11630_v8 = vld [vmem:[%s12965_s11 + $0x774] ss:$72 sps:$4 sm:$0xff]   ;;  %v11628_v43 = vld [vmem:[%s12965_s11 + $0x770] ss:$72 sps:$4 sm:$0xff]   ;;  %v11636_v46 = vld [vmem:[%s12965_s11 + $0x6e4] ss:$72 sps:$4 sm:$0xff]  }
 0x3b3   : > { %v13664_v53 = vadd.f32 %v8218_v51, %v8178_v55  ;;  %v8220_v54 = vpop.f32.mrf.mxu1  ;;  %8472 = vmatpush1.bf16.msra.mxu0 %v11574_v45  ;;  %v11631_v45 = vld [vmem:[%s12965_s11 + $0x1070] ss:$72 sps:$4 sm:$0xff]   ;;  %v11637_v55 = vld [vmem:[%s12965_s11 + $0xfe0] ss:$72 sps:$4 sm:$0xff]   ;;  %v11642_v51 = vld [vmem:[%s12965_s11 + $0x654] ss:$72 sps:$4 sm:$0xff]  }
 0x3b4   : > { %8513 = vmatpush1.bf16.msra.mxu1 %v11577_v23  ;;  %v8180_v59 = vpop.f32.mrf.mxu0  ;;  %8473 = vmatprep.subr.bf16.mxu0 %v11582_v47  ;;  %v11639_v23 = vld [vmem:[%s12965_s11 + $0xfe4] ss:$72 sps:$4 sm:$0xff]   ;;  %v11634_v47 = vld [vmem:[%s12965_s11 + $0x6e0] ss:$72 sps:$4 sm:$0xff]   ;;  %v11640_v61 = vld [vmem:[%s12965_s11 + $0x650] ss:$72 sps:$4 sm:$0xff]  }
 0x3b5   : > { %v8221_v63 = vpop.f32.mrf.mxu1  ;;  %8514 = vmatprep.subr.bf16.mxu1 %v11585_v52  ;;  %v11645_v52 = vld [vmem:[%s12965_s11 + $0xf54] ss:$72 sps:$4 sm:$0xff]   ;;  %v11643_v54 = vld [vmem:[%s12965_s11 + $0xf50] ss:$72 sps:$4 sm:$0xff]   ;;  %v11651_v59 = vld [vmem:[%s12965_s11 + $0xec4] ss:$72 sps:$4 sm:$0xff]  }
 0x3b6   : > { %v11654_v63 = vld [vmem:[%s12965_s11 + $0x534] ss:$72 sps:$4 sm:$0xff]  }
 0x3b7   : > { %8474 = vmatpush1.bf16.msra.mxu0 %v11580_v56  ;;  %v11648_v56 = vld [vmem:[%s12965_s11 + $0x5c4] ss:$72 sps:$4 sm:$0xff]  }
 0x3b8   : > { %8515 = vmatpush1.bf16.msra.mxu1 %v11583_v60  ;;  %8475 = vmatprep.subr.bf16.mxu0 %v11588_v62  ;;  %v11646_v60 = vld [vmem:[%s12965_s11 + $0x5c0] ss:$72 sps:$4 sm:$0xff]  }
 0x3b9   : > { %8516 = vmatprep.subr.bf16.mxu1 %v11591_v5  ;;  %v11649_v62 = vld [vmem:[%s12965_s11 + $0xec0] ss:$72 sps:$4 sm:$0xff]   ;;  %v11657_v5 = vld [vmem:[%s12965_s11 + $0xe34] ss:$72 sps:$4 sm:$0xff]  }
 0x3bb   : > { %8476 = vmatpush1.bf16.msra.mxu0 %v11586_v0  ;;  %v11652_v0 = vld [vmem:[%s12965_s11 + $0x530] ss:$72 sps:$4 sm:$0xff]  }
 0x3bc   : > { %8517 = vmatpush1.bf16.msra.mxu1 %v11589_v6  ;;  %8477 = vmatprep.subr.bf16.mxu0 %v11594_v10  ;;  %v11655_v6 = vld [vmem:[%s12965_s11 + $0xe30] ss:$72 sps:$4 sm:$0xff]   ;;  %v11660_v10 = vld [vmem:[%s12965_s11 + $0x4a4] ss:$72 sps:$4 sm:$0xff]  }
 0x3bd   : > { %8518 = vmatprep.subr.bf16.mxu1 %v11597_v11  ;;  %v11663_v11 = vld [vmem:[%s12965_s11 + $0xda4] ss:$72 sps:$4 sm:$0xff]  }
 0x3bf   : > { %8478 = vmatpush1.bf16.msra.mxu0 %v11592_v12  ;;  %v11658_v12 = vld [vmem:[%s12965_s11 + $0x4a0] ss:$72 sps:$4 sm:$0xff]  }
 0x3c0   : > { %8519 = vmatpush1.bf16.msra.mxu1 %v11595_v15  ;;  %8479 = vmatprep.subr.bf16.mxu0 %v11600_v16  ;;  %v11661_v15 = vld [vmem:[%s12965_s11 + $0xda0] ss:$72 sps:$4 sm:$0xff]   ;;  %v11666_v16 = vld [vmem:[%s12965_s11 + $0x1614] ss:$72 sps:$4 sm:$0xff]  }
 0x3c1   : > { %8520 = vmatprep.subr.bf16.mxu1 %v11603_v17  ;;  %v11669_v17 = vld [vmem:[%s12965_s11 + $0x1f14] ss:$72 sps:$4 sm:$0xff]  }
 0x3c3   : > { %8480 = vmatpush1.bf16.msra.mxu0 %v11598_v18  ;;  %v11664_v18 = vld [vmem:[%s12965_s11 + $0x1610] ss:$72 sps:$4 sm:$0xff]  }
 0x3c4   : > { %8521 = vmatpush1.bf16.msra.mxu1 %v11601_v19  ;;  %8481 = vmatprep.subr.bf16.mxu0 %v11606_v20  ;;  %v11667_v19 = vld [vmem:[%s12965_s11 + $0x1f10] ss:$72 sps:$4 sm:$0xff]   ;;  %v11672_v20 = vld [vmem:[%s12965_s11 + $0x1584] ss:$72 sps:$4 sm:$0xff]  }
 0x3c5   : > { %8522 = vmatprep.subr.bf16.mxu1 %v11609_v50 }
 0x3c7   : > { %8482 = vmatpush1.bf16.msra.mxu0 %v11604_v24  ;;  %v11675_v24 = vld [vmem:[%s12965_s11 + $0x1e84] ss:$72 sps:$4 sm:$0xff]  }
 0x3c8   : > { %8523 = vmatpush1.bf16.msra.mxu1 %v11607_v36  ;;  %8483 = vmatprep.subr.bf16.mxu0 %v11612_v26 }
 0x3c9   : > { %8524 = vmatprep.subr.bf16.mxu1 %v11615_v27  ;;  %v11670_v27 = vld [vmem:[%s12965_s11 + $0x1580] ss:$72 sps:$4 sm:$0xff]  }
 0x3cb   : > { %8484 = vmatpush1.bf16.msra.mxu0 %v11610_v28 }
 0x3cc   : > { %8525 = vmatpush1.bf16.msra.mxu1 %v11613_v29  ;;  %8485 = vmatprep.subr.bf16.mxu0 %v11618_v30  ;;  %v11673_v29 = vld [vmem:[%s12965_s11 + $0x1e80] ss:$72 sps:$4 sm:$0xff]   ;;  %v11678_v30 = vld [vmem:[%s12965_s11 + $0x14f4] ss:$72 sps:$4 sm:$0xff]  }
 0x3cd   : > { %8526 = vmatprep.subr.bf16.mxu1 %v11621_v25 }
 0x3cf   : > { %8486 = vmatpush2.bf16.msra.mxu0 %v11616_v33 }
 0x3d0   : > { %8527 = vmatpush2.bf16.msra.mxu1 %v11619_v31  ;;  %8487 = vmatprep.subr.bf16.mxu0 %v11624_v48  ;;  %v11681_v31 = vld [vmem:[%s12965_s11 + $0x1df4] ss:$72 sps:$4 sm:$0xff]  }
 0x3d1   : > { %8528 = vmatprep.subr.bf16.mxu1 %v11627_v32 }
 0x3d3   : > { %8488 = vmatpush2.bf16.msra.mxu0 %v11622_v7 }
 0x3d4   : > { %8529 = vmatpush2.bf16.msra.mxu1 %v11625_v34  ;;  %8489 = vmatprep.subr.bf16.mxu0 %v11630_v8  ;;  %v11676_v34 = vld [vmem:[%s12965_s11 + $0x14f0] ss:$72 sps:$4 sm:$0xff]  }
 0x3d5   : > { %8530 = vmatprep.subr.bf16.mxu1 %v11633_v35  ;;  %v11684_v35 = vld [vmem:[%s12965_s11 + $0x1464] ss:$72 sps:$4 sm:$0xff]  }
 0x3d7   : > { %8490 = vmatpush2.bf16.msra.mxu0 %v11628_v43 }
 0x3d8   : > { %8531 = vmatpush2.bf16.msra.mxu1 %v11631_v45  ;;  %8491 = vmatprep.subr.bf16.mxu0 %v11636_v46  ;;  %v11687_v46 = vld [vmem:[%s12965_s11 + $0x1d64] ss:$72 sps:$4 sm:$0xff]  }
 0x3d9   : > { %8532 = vmatprep.subr.bf16.mxu1 %v11639_v23  ;;  %v11682_v23 = vld [vmem:[%s12965_s11 + $0x1460] ss:$72 sps:$4 sm:$0xff]  }
 0x3db   : > { %8492 = vmatpush2.bf16.msra.mxu0 %v11634_v47  ;;  %v11685_v47 = vld [vmem:[%s12965_s11 + $0x1d60] ss:$72 sps:$4 sm:$0xff]  }
 0x3dc   : > { %8533 = vmatpush2.bf16.msra.mxu1 %v11637_v55  ;;  %8493 = vmatprep.subr.bf16.mxu0 %v11642_v51  ;;  %v11690_v55 = vld [vmem:[%s12965_s11 + $0x13d4] ss:$72 sps:$4 sm:$0xff]  }
 0x3dd   : > { %8534 = vmatprep.subr.bf16.mxu1 %v11645_v52  ;;  %v11693_v51 = vld [vmem:[%s12965_s11 + $0x1cd4] ss:$72 sps:$4 sm:$0xff]   ;;  %v11688_v52 = vld [vmem:[%s12965_s11 + $0x13d0] ss:$72 sps:$4 sm:$0xff]  }
 0x3df   : > { %8494 = vmatpush2.bf16.msra.mxu0 %v11640_v61  ;;  %v11691_v61 = vld [vmem:[%s12965_s11 + $0x1cd0] ss:$72 sps:$4 sm:$0xff]  }
 0x3e0   : > { %8535 = vmatpush2.bf16.msra.mxu1 %v11643_v54  ;;  %8495 = vmatprep.subr.bf16.mxu0 %v11648_v56  ;;  %v11696_v54 = vld [vmem:[%s12965_s11 + $0x1344] ss:$72 sps:$4 sm:$0xff]  }
 0x3e1   : > { %8536 = vmatprep.subr.bf16.mxu1 %v11651_v59  ;;  %v11699_v56 = vld [vmem:[%s12965_s11 + $0x1c44] ss:$72 sps:$4 sm:$0xff]   ;;  %v11694_v59 = vld [vmem:[%s12965_s11 + $0x1340] ss:$72 sps:$4 sm:$0xff]  }
 0x3e3   : > { %8496 = vmatpush2.bf16.msra.mxu0 %v11646_v60  ;;  %v11697_v60 = vld [vmem:[%s12965_s11 + $0x1c40] ss:$72 sps:$4 sm:$0xff]  }
 0x3e4   : > { %8537 = vmatpush2.bf16.msra.mxu1 %v11649_v62  ;;  %8497 = vmatprep.subr.bf16.mxu0 %v11654_v63  ;;  %v11702_v62 = vld [vmem:[%s12965_s11 + $0x12b4] ss:$72 sps:$4 sm:$0xff]  }
 0x3e5   : > { %8538 = vmatprep.subr.bf16.mxu1 %v11657_v5  ;;  %v11705_v63 = vld [vmem:[%s12965_s11 + $0x1bb4] ss:$72 sps:$4 sm:$0xff]   ;;  %v11700_v5 = vld [vmem:[%s12965_s11 + $0x12b0] ss:$72 sps:$4 sm:$0xff]  }
 0x3e7   : > { %8498 = vmatpush2.bf16.msra.mxu0 %v11652_v0  ;;  %v11703_v0 = vld [vmem:[%s12965_s11 + $0x1bb0] ss:$72 sps:$4 sm:$0xff]  }
 0x3e8   : > { %8539 = vmatpush2.bf16.msra.mxu1 %v11655_v6  ;;  %8499 = vmatprep.subr.bf16.mxu0 %v11660_v10  ;;  %v11708_v6 = vld [vmem:[%s12965_s11 + $0x1224] ss:$72 sps:$4 sm:$0xff]  }
 0x3e9   : > { %8540 = vmatprep.subr.bf16.mxu1 %v11663_v11  ;;  %v11711_v10 = vld [vmem:[%s12965_s11 + $0x1b24] ss:$72 sps:$4 sm:$0xff]   ;;  %v11706_v11 = vld [vmem:[%s12965_s11 + $0x1220] ss:$72 sps:$4 sm:$0xff]  }
 0x3eb   : > { %8500 = vmatpush2.bf16.msra.mxu0 %v11658_v12  ;;  %v11709_v12 = vld [vmem:[%s12965_s11 + $0x1b20] ss:$72 sps:$4 sm:$0xff]  }
 0x3ec   : > { %8541 = vmatpush2.bf16.msra.mxu1 %v11661_v15  ;;  %8551 = vmatprep.subr.bf16.mxu0 %v11666_v16  ;;  %v11714_v15 = vld [vmem:[%s12965_s11 + $0x1a94] ss:$72 sps:$4 sm:$0xff]  }
 0x3ed   : > { %8592 = vmatprep.subr.bf16.mxu1 %v11669_v17  ;;  %v11717_v16 = vld [vmem:[%s12965_s11 + $0x2394] ss:$72 sps:$4 sm:$0xff]   ;;  %v11712_v17 = vld [vmem:[%s12965_s11 + $0x1a90] ss:$72 sps:$4 sm:$0xff]  }
 0x3ee   : > { %v8257_v50 = vpop.f32.mrf.mxu0  ;;  %8502 = vmatmul.mubr.bf16.vlgmr.msra.gmra.mxu0 %v13087_v3 }
 0x3ef   : > { %v8258_v36 = vadd.f32 %v8257_v50, %v13660_v49  ;;  %v8298_v26 = vpop.f32.mrf.mxu1  ;;  %8543 = vmatmul.mubr.bf16.vlgmr.msra.gmra.mxu1 %v13089_v4  ;;  %8552 = vmatpush1.bf16.msra.mxu0 %v11664_v18  ;;  %v11715_v18 = vld [vmem:[%s12965_s11 + $0x2390] ss:$72 sps:$4 sm:$0xff]   ;;  %v11718_v50 = vld [vmem:[%s12965_s11 + $0x1a00] ss:$72 sps:$4 sm:$0xff]  }
 0x3f0   : > { %8583 = vmatprep.mubr.bf16.mxu0 %v13109_v21  ;;  %8593 = vmatpush1.bf16.msra.mxu1 %v11667_v19  ;;  %v8259_v28 = vpop.f32.mrf.mxu0  ;;  %v11720_v19 = vld [vmem:[%s12965_s11 + $0x1a04] ss:$72 sps:$4 sm:$0xff]  }
 0x3f1   : > { %v13733_v25 = vadd.f32 %v8298_v26, %v8258_v36  ;;  %8624 = vmatprep.mubr.bf16.mxu1 %v13111_v22  ;;  %v8260_v49 = vadd.f32 %v8259_v28, %v13664_v53  ;;  %v8300_v33 = vpop.f32.mrf.mxu1  ;;  %8553 = vmatprep.subr.bf16.mxu0 %v11672_v20  ;;  %v11679_v53 = vld [vmem:[%s12965_s11 + $0x1df0] ss:$72 sps:$4 sm:$0xff]   ;;  %v11723_v20 = vld [vmem:[%s12965_s11 + $0x2304] ss:$72 sps:$4 sm:$0xff]   ;;  %v11726_v36 = vld [vmem:[%s12965_s11 + $0x1974] ss:$72 sps:$4 sm:$0xff]  }
 0x3f2   : > { %v8261_v48 = vpop.f32.mrf.mxu0  ;;  %8594 = vmatprep.subr.bf16.mxu1 %v11675_v24  ;;  %v11721_v24 = vld [vmem:[%s12965_s11 + $0x2300] ss:$72 sps:$4 sm:$0xff]   ;;  %v11729_v26 = vld [vmem:[%s12965_s11 + $0x2274] ss:$72 sps:$4 sm:$0xff]   ;;  %v11727_v28 = vld [vmem:[%s12965_s11 + $0x2270] ss:$72 sps:$4 sm:$0xff]  }
 0x3f3   : > { %v13738_v32 = vadd.f32 %v8300_v33, %v8260_v49  ;;  %v8302_v7 = vpop.f32.mrf.mxu1  ;;  %8554 = vmatpush1.bf16.msra.mxu0 %v11670_v27  ;;  %v11724_v27 = vld [vmem:[%s12965_s11 + $0x1970] ss:$72 sps:$4 sm:$0xff]   ;;  %v11730_v49 = vld [vmem:[%s12965_s11 + $0x18e0] ss:$72 sps:$4 sm:$0xff]   ;;  %v11741_v48 = vld [vmem:[%s12965_s11 + $0x2154] ss:$72 sps:$4 sm:$0xff]  }
 0x3f4   : > { %8595 = vmatpush1.bf16.msra.mxu1 %v11673_v29  ;;  %v8262_v8 = vpop.f32.mrf.mxu0  ;;  %8555 = vmatprep.subr.bf16.mxu0 %v11678_v30  ;;  %v11732_v29 = vld [vmem:[%s12965_s11 + $0x18e4] ss:$72 sps:$4 sm:$0xff]   ;;  %v11733_v33 = vld [vmem:[%s12965_s11 + $0x21e0] ss:$72 sps:$4 sm:$0xff]   ;;  %v11736_v7 = vld [vmem:[%s12965_s11 + $0x1850] ss:$72 sps:$4 sm:$0xff]  }
 0x3f5   : > { %v9324_v43 = vcombine.low %v13733_v25, %v13738_v32  ;;  %v8303_v45 = vpop.f32.mrf.mxu1  ;;  %8596 = vmatprep.subr.bf16.mxu1 %v11681_v31  ;;  %v11735_v30 = vld [vmem:[%s12965_s11 + $0x21e4] ss:$72 sps:$4 sm:$0xff]   ;;  %v11738_v31 = vld [vmem:[%s12965_s11 + $0x1854] ss:$72 sps:$4 sm:$0xff]   ;;  %v11880_v25 = vld [vmem:[%s12965_s11 + $0x13d8] ss:$72 sps:$4 sm:$0xff]  }
 0x3f6   : > { %v11744_v8 = vld [vmem:[%s12965_s11 + $0x17c4] ss:$72 sps:$4 sm:$0xff]   ;;  %v11745_v45 = vld [vmem:[%s12965_s11 + $0x20c0] ss:$72 sps:$4 sm:$0xff]  }
 0x3f7   : > { %8556 = vmatpush1.bf16.msra.mxu0 %v11676_v34  ;;  %v11739_v34 = vld [vmem:[%s12965_s11 + $0x2150] ss:$72 sps:$4 sm:$0xff]  }
 0x3f8   : > { %8597 = vmatpush1.bf16.msra.mxu1 %v11679_v53  ;;  %8557 = vmatprep.subr.bf16.mxu0 %v11684_v35  ;;  %v11747_v53 = vld [vmem:[%s12965_s11 + $0x20c4] ss:$72 sps:$4 sm:$0xff]   ;;  %v11742_v35 = vld [vmem:[%s12965_s11 + $0x17c0] ss:$72 sps:$4 sm:$0xff]  }
 0x3f9   : > { %8598 = vmatprep.subr.bf16.mxu1 %v11687_v46  ;;  %v11750_v46 = vld [vmem:[%s12965_s11 + $0x1734] ss:$72 sps:$4 sm:$0xff]   ;;  %v11883_v32 = vld [vmem:[%s12965_s11 + $0x1cd8] ss:$72 sps:$4 sm:$0xff]  }
 0x3fb   : > { %8558 = vmatpush1.bf16.msra.mxu0 %v11682_v23  ;;  %v11753_v23 = vld [vmem:[%s12965_s11 + $0x2034] ss:$72 sps:$4 sm:$0xff]  }
 0x3fc   : > { %8599 = vmatpush1.bf16.msra.mxu1 %v11685_v47  ;;  %8559 = vmatprep.subr.bf16.mxu0 %v11690_v55  ;;  %v11748_v47 = vld [vmem:[%s12965_s11 + $0x1730] ss:$72 sps:$4 sm:$0xff]  }
 0x3fd   : > { %8600 = vmatprep.subr.bf16.mxu1 %v11693_v51  ;;  %v11751_v55 = vld [vmem:[%s12965_s11 + $0x2030] ss:$72 sps:$4 sm:$0xff]   ;;  %v11756_v51 = vld [vmem:[%s12965_s11 + $0x16a4] ss:$72 sps:$4 sm:$0xff]  }
 0x3ff   : > { %8560 = vmatpush1.bf16.msra.mxu0 %v11688_v52  ;;  %v11759_v52 = vld [vmem:[%s12965_s11 + $0x1fa4] ss:$72 sps:$4 sm:$0xff]  }
 0x400   : > { %8601 = vmatpush1.bf16.msra.mxu1 %v11691_v61  ;;  %8561 = vmatprep.subr.bf16.mxu0 %v11696_v54  ;;  %v11754_v61 = vld [vmem:[%s12965_s11 + $0x16a0] ss:$72 sps:$4 sm:$0xff]  }
 0x401   : > { %8602 = vmatprep.subr.bf16.mxu1 %v11699_v56  ;;  %v11757_v54 = vld [vmem:[%s12965_s11 + $0x1fa0] ss:$72 sps:$4 sm:$0xff]   ;;  %v11762_v56 = vld [vmem:[%s12965_s11 + $0x41c] ss:$72 sps:$4 sm:$0xff]  }
 0x403   : > { %8562 = vmatpush1.bf16.msra.mxu0 %v11694_v59  ;;  %v11765_v59 = vld [vmem:[%s12965_s11 + $0xd1c] ss:$72 sps:$4 sm:$0xff]  }
 0x404   : > { %8603 = vmatpush1.bf16.msra.mxu1 %v11697_v60  ;;  %8563 = vmatprep.subr.bf16.mxu0 %v11702_v62  ;;  %v11760_v60 = vld [vmem:[%s12965_s11 + $0x418] ss:$72 sps:$4 sm:$0xff]  }
 0x405   : > { %8604 = vmatprep.subr.bf16.mxu1 %v11705_v63  ;;  %v11763_v62 = vld [vmem:[%s12965_s11 + $0xd18] ss:$72 sps:$4 sm:$0xff]   ;;  %v11768_v63 = vld [vmem:[%s12965_s11 + $0x38c] ss:$72 sps:$4 sm:$0xff]  }
 0x407   : > { %8564 = vmatpush1.bf16.msra.mxu0 %v11700_v5 }
 0x408   : > { %8605 = vmatpush1.bf16.msra.mxu1 %v11703_v0  ;;  %8565 = vmatprep.subr.bf16.mxu0 %v11708_v6  ;;  %v11771_v0 = vld [vmem:[%s12965_s11 + $0xc8c] ss:$72 sps:$4 sm:$0xff]  }
 0x409   : > { %8606 = vmatprep.subr.bf16.mxu1 %v11711_v10  ;;  %v11766_v10 = vld [vmem:[%s12965_s11 + $0x388] ss:$72 sps:$4 sm:$0xff]  }
 0x40b   : > { %8566 = vmatpush1.bf16.msra.mxu0 %v11706_v11 }
 0x40c   : > { %8607 = vmatpush1.bf16.msra.mxu1 %v11709_v12  ;;  %8567 = vmatprep.subr.bf16.mxu0 %v11714_v15  ;;  %v11769_v12 = vld [vmem:[%s12965_s11 + $0xc88] ss:$72 sps:$4 sm:$0xff]   ;;  %v11774_v15 = vld [vmem:[%s12965_s11 + $0x2fc] ss:$72 sps:$4 sm:$0xff]  }
 0x40d   : > { %8608 = vmatprep.subr.bf16.mxu1 %v11717_v16 }
 0x40f   : > { %8568 = vmatpush2.bf16.msra.mxu0 %v11712_v17  ;;  %v11777_v17 = vld [vmem:[%s12965_s11 + $0xbfc] ss:$72 sps:$4 sm:$0xff]  }
 0x410   : > { %8609 = vmatpush2.bf16.msra.mxu1 %v11715_v18  ;;  %8569 = vmatprep.subr.bf16.mxu0 %v11720_v19 }
 0x411   : > { %8610 = vmatprep.subr.bf16.mxu1 %v11723_v20  ;;  %v11772_v20 = vld [vmem:[%s12965_s11 + $0x2f8] ss:$72 sps:$4 sm:$0xff]  }
 0x413   : > { %8570 = vmatpush2.bf16.msra.mxu0 %v11718_v50 }
 0x414   : > { %8611 = vmatpush2.bf16.msra.mxu1 %v11721_v24  ;;  %8571 = vmatprep.subr.bf16.mxu0 %v11726_v36  ;;  %v11775_v24 = vld [vmem:[%s12965_s11 + $0xbf8] ss:$72 sps:$4 sm:$0xff]   ;;  %v11780_v36 = vld [vmem:[%s12965_s11 + $0x26c] ss:$72 sps:$4 sm:$0xff]  }
 0x415   : > { %8612 = vmatprep.subr.bf16.mxu1 %v11729_v26 }
 0x417   : > { %8572 = vmatpush2.bf16.msra.mxu0 %v11724_v27  ;;  %v11783_v27 = vld [vmem:[%s12965_s11 + $0xb6c] ss:$72 sps:$4 sm:$0xff]  }
 0x418   : > { %8613 = vmatpush2.bf16.msra.mxu1 %v11727_v28  ;;  %8573 = vmatprep.subr.bf16.mxu0 %v11732_v29  ;;  %v11778_v28 = vld [vmem:[%s12965_s11 + $0x268] ss:$72 sps:$4 sm:$0xff]  }
 0x419   : > { %8614 = vmatprep.subr.bf16.mxu1 %v11735_v30  ;;  %v11781_v29 = vld [vmem:[%s12965_s11 + $0xb68] ss:$72 sps:$4 sm:$0xff]   ;;  %v11786_v30 = vld [vmem:[%s12965_s11 + $0x1dc] ss:$72 sps:$4 sm:$0xff]  }
 0x41b   : > { %8574 = vmatpush2.bf16.msra.mxu0 %v11730_v49  ;;  %v11789_v49 = vld [vmem:[%s12965_s11 + $0xadc] ss:$72 sps:$4 sm:$0xff]  }
 0x41c   : > { %8615 = vmatpush2.bf16.msra.mxu1 %v11733_v33  ;;  %8575 = vmatprep.subr.bf16.mxu0 %v11738_v31  ;;  %v11784_v33 = vld [vmem:[%s12965_s11 + $0x1d8] ss:$72 sps:$4 sm:$0xff]  }
 0x41d   : > { %8616 = vmatprep.subr.bf16.mxu1 %v11741_v48  ;;  %v11787_v31 = vld [vmem:[%s12965_s11 + $0xad8] ss:$72 sps:$4 sm:$0xff]   ;;  %v11792_v48 = vld [vmem:[%s12965_s11 + $0x14c] ss:$72 sps:$4 sm:$0xff]  }
 0x41f   : > { %8576 = vmatpush2.bf16.msra.mxu0 %v11736_v7  ;;  %v11795_v7 = vld [vmem:[%s12965_s11 + $0xa4c] ss:$72 sps:$4 sm:$0xff]  }
 0x420   : > { %8617 = vmatpush2.bf16.msra.mxu1 %v11739_v34  ;;  %8577 = vmatprep.subr.bf16.mxu0 %v11744_v8  ;;  %v11790_v34 = vld [vmem:[%s12965_s11 + $0x148] ss:$72 sps:$4 sm:$0xff]  }
 0x421   : > { %8618 = vmatprep.subr.bf16.mxu1 %v11747_v53  ;;  %v11793_v8 = vld [vmem:[%s12965_s11 + $0xa48] ss:$72 sps:$4 sm:$0xff]   ;;  %v11798_v53 = vld [vmem:[%s12965_s11 + $0xbc] ss:$72 sps:$4 sm:$0xff]  }
 0x423   : > { %8578 = vmatpush2.bf16.msra.mxu0 %v11742_v35  ;;  %v11801_v35 = vld [vmem:[%s12965_s11 + $0x9bc] ss:$72 sps:$4 sm:$0xff]  }
 0x424   : > { %8619 = vmatpush2.bf16.msra.mxu1 %v11745_v45  ;;  %8579 = vmatprep.subr.bf16.mxu0 %v11750_v46  ;;  %v11796_v45 = vld [vmem:[%s12965_s11 + $0xb8] ss:$72 sps:$4 sm:$0xff]  }
 0x425   : > { %8620 = vmatprep.subr.bf16.mxu1 %v11753_v23  ;;  %v11799_v46 = vld [vmem:[%s12965_s11 + $0x9b8] ss:$72 sps:$4 sm:$0xff]   ;;  %v11804_v23 = vld [vmem:[%s12965_s11 + $0x2c] ss:$72 sps:$4 sm:$0xff]  }
 0x427   : > { %8580 = vmatpush2.bf16.msra.mxu0 %v11748_v47  ;;  %v11807_v47 = vld [vmem:[%s12965_s11 + $0x92c] ss:$72 sps:$4 sm:$0xff]  }
 0x428   : > { %8621 = vmatpush2.bf16.msra.mxu1 %v11751_v55  ;;  %8581 = vmatprep.subr.bf16.mxu0 %v11756_v51  ;;  %v11802_v55 = vld [vmem:[%s12965_s11 + $0x28] ss:$72 sps:$4 sm:$0xff]  }
 0x429   : > { %8622 = vmatprep.subr.bf16.mxu1 %v11759_v52  ;;  %v11805_v51 = vld [vmem:[%s12965_s11 + $0x928] ss:$72 sps:$4 sm:$0xff]   ;;  %v11810_v52 = vld [vmem:[%s12965_s11 + $0x89c] ss:$72 sps:$4 sm:$0xff]  }
 0x42b   : > { %8582 = vmatpush2.bf16.msra.mxu0 %v11754_v61  ;;  %v11813_v61 = vld [vmem:[%s12965_s11 + $0x119c] ss:$72 sps:$4 sm:$0xff]  }
 0x42c   : > { %8623 = vmatpush2.bf16.msra.mxu1 %v11757_v54  ;;  %8633 = vmatprep.subr.bf16.mxu0 %v11762_v56  ;;  %v11808_v54 = vld [vmem:[%s12965_s11 + $0x898] ss:$72 sps:$4 sm:$0xff]  }
 0x42d   : > { %8674 = vmatprep.subr.bf16.mxu1 %v11765_v59  ;;  %v11811_v56 = vld [vmem:[%s12965_s11 + $0x1198] ss:$72 sps:$4 sm:$0xff]   ;;  %v11816_v59 = vld [vmem:[%s12965_s11 + $0x80c] ss:$72 sps:$4 sm:$0xff]  }
 0x42e   : > { %v13801_v5 = vpop.f32.mrf.mxu0  ;;  %8584 = vmatmul.mubr.bf16.vlgmr.msra.gmra.mxu0 %v13185_v44 }
 0x42f   : > { %v13805_v6 = vpop.f32.mrf.mxu1  ;;  %8625 = vmatmul.mubr.bf16.vlgmr.msra.gmra.mxu1 %v13187_v42  ;;  %8634 = vmatpush1.bf16.msra.mxu0 %v11760_v60  ;;  %v11819_v60 = vld [vmem:[%s12965_s11 + $0x110c] ss:$72 sps:$4 sm:$0xff]  }
 0x430   : > { %8665 = vmatprep.mubr.bf16.mxu0 %v13083_v1  ;;  %8675 = vmatpush1.bf16.msra.mxu1 %v11763_v62  ;;  %v13810_v11 = vpop.f32.mrf.mxu0  ;;  %v11814_v62 = vld [vmem:[%s12965_s11 + $0x808] ss:$72 sps:$4 sm:$0xff]  }
 0x431   : > { %8706 = vmatprep.mubr.bf16.mxu1 %v13085_v2  ;;  %v13815_v16 = vpop.f32.mrf.mxu1  ;;  %8635 = vmatprep.subr.bf16.mxu0 %v11768_v63  ;;  %v11817_v63 = vld [vmem:[%s12965_s11 + $0x1108] ss:$72 sps:$4 sm:$0xff]  }
 0x432   : > { %v8343_v18 = vpop.f32.mrf.mxu0  ;;  %8676 = vmatprep.subr.bf16.mxu1 %v11771_v0  ;;  %v11822_v0 = vld [vmem:[%s12965_s11 + $0x77c] ss:$72 sps:$4 sm:$0xff]  }
 0x433   : > { %v8384_v19 = vpop.f32.mrf.mxu1  ;;  %8636 = vmatpush1.bf16.msra.mxu0 %v11766_v10  ;;  %v11825_v10 = vld [vmem:[%s12965_s11 + $0x107c] ss:$72 sps:$4 sm:$0xff]   ;;  %v11831_v18 = vld [vmem:[%s12965_s11 + $0xfec] ss:$72 sps:$4 sm:$0xff]  }
 0x434   : > { %8677 = vmatpush1.bf16.msra.mxu1 %v11769_v12  ;;  %v8344_v50 = vpop.f32.mrf.mxu0  ;;  %8637 = vmatprep.subr.bf16.mxu0 %v11774_v15  ;;  %v11820_v12 = vld [vmem:[%s12965_s11 + $0x778] ss:$72 sps:$4 sm:$0xff]   ;;  %v11826_v19 = vld [vmem:[%s12965_s11 + $0x6e8] ss:$72 sps:$4 sm:$0xff]  }
 0x435   : > { %v8385_v26 = vpop.f32.mrf.mxu1  ;;  %8678 = vmatprep.subr.bf16.mxu1 %v11777_v17  ;;  %v11823_v15 = vld [vmem:[%s12965_s11 + $0x1078] ss:$72 sps:$4 sm:$0xff]   ;;  %v11828_v17 = vld [vmem:[%s12965_s11 + $0x6ec] ss:$72 sps:$4 sm:$0xff]   ;;  %v11834_v50 = vld [vmem:[%s12965_s11 + $0x65c] ss:$72 sps:$4 sm:$0xff]  }
 0x436   : > { %v11835_v26 = vld [vmem:[%s12965_s11 + $0xf58] ss:$72 sps:$4 sm:$0xff]  }
 0x437   : > { %8638 = vmatpush1.bf16.msra.mxu0 %v11772_v20  ;;  %v11829_v20 = vld [vmem:[%s12965_s11 + $0xfe8] ss:$72 sps:$4 sm:$0xff]  }
 0x438   : > { %8679 = vmatpush1.bf16.msra.mxu1 %v11775_v24  ;;  %8639 = vmatprep.subr.bf16.mxu0 %v11780_v36  ;;  %v11837_v24 = vld [vmem:[%s12965_s11 + $0xf5c] ss:$72 sps:$4 sm:$0xff]   ;;  %v11832_v36 = vld [vmem:[%s12965_s11 + $0x658] ss:$72 sps:$4 sm:$0xff]  }
 0x439   : > { %8680 = vmatprep.subr.bf16.mxu1 %v11783_v27  ;;  %v11840_v27 = vld [vmem:[%s12965_s11 + $0x5cc] ss:$72 sps:$4 sm:$0xff]  }
 0x43b   : > { %8640 = vmatpush1.bf16.msra.mxu0 %v11778_v28  ;;  %v11843_v28 = vld [vmem:[%s12965_s11 + $0xecc] ss:$72 sps:$4 sm:$0xff]  }
 0x43c   : > { %8681 = vmatpush1.bf16.msra.mxu1 %v11781_v29  ;;  %8641 = vmatprep.subr.bf16.mxu0 %v11786_v30  ;;  %v11838_v29 = vld [vmem:[%s12965_s11 + $0x5c8] ss:$72 sps:$4 sm:$0xff]  }
 0x43d   : > { %8682 = vmatprep.subr.bf16.mxu1 %v11789_v49  ;;  %v11841_v30 = vld [vmem:[%s12965_s11 + $0xec8] ss:$72 sps:$4 sm:$0xff]   ;;  %v11846_v49 = vld [vmem:[%s12965_s11 + $0x53c] ss:$72 sps:$4 sm:$0xff]  }
 0x43f   : > { %8642 = vmatpush1.bf16.msra.mxu0 %v11784_v33  ;;  %v11849_v33 = vld [vmem:[%s12965_s11 + $0xe3c] ss:$72 sps:$4 sm:$0xff]  }
 0x440   : > { %8683 = vmatpush1.bf16.msra.mxu1 %v11787_v31  ;;  %8643 = vmatprep.subr.bf16.mxu0 %v11792_v48  ;;  %v11844_v31 = vld [vmem:[%s12965_s11 + $0x538] ss:$72 sps:$4 sm:$0xff]  }
 0x441   : > { %8684 = vmatprep.subr.bf16.mxu1 %v11795_v7  ;;  %v11847_v48 = vld [vmem:[%s12965_s11 + $0xe38] ss:$72 sps:$4 sm:$0xff]   ;;  %v11852_v7 = vld [vmem:[%s12965_s11 + $0x4ac] ss:$72 sps:$4 sm:$0xff]  }
 0x443   : > { %8644 = vmatpush1.bf16.msra.mxu0 %v11790_v34  ;;  %v1990_v34 = vrot.slane %v13644_v37, %v13159_v14 }
 0x444   : > { %8685 = vmatpush1.bf16.msra.mxu1 %v11793_v8  ;;  %8645 = vmatprep.subr.bf16.mxu0 %v11798_v53  ;;  %v11855_v8 = vld [vmem:[%s12965_s11 + $0xdac] ss:$72 sps:$4 sm:$0xff]   ;;  %v1994_v53 = vrot.slane %v13644_v37, %v13077_v58  ;;  %v11859_v37 = vld [vmem:[%s12965_s11 + $0x1f18] ss:$72 sps:$4 sm:$0xff]  }
 0x445   : > { %8686 = vmatprep.subr.bf16.mxu1 %v11801_v35  ;;  %v11850_v35 = vld [vmem:[%s12965_s11 + $0x4a8] ss:$72 sps:$4 sm:$0xff]  }
 0x447   : > { %8646 = vmatpush1.bf16.msra.mxu0 %v11796_v45  ;;  %v11853_v45 = vld [vmem:[%s12965_s11 + $0xda8] ss:$72 sps:$4 sm:$0xff]  }
 0x448   : > { %8687 = vmatpush1.bf16.msra.mxu1 %v11799_v46  ;;  %8647 = vmatprep.subr.bf16.mxu0 %v11804_v23  ;;  %v11858_v46 = vld [vmem:[%s12965_s11 + $0x161c] ss:$72 sps:$4 sm:$0xff]   ;;  %v8340_v23 = vadd.f32 %v13801_v5, %v1990_v34  ;;  %v11867_v5 = vld [vmem:[%s12965_s11 + $0x1e8c] ss:$72 sps:$4 sm:$0xff]   ;;  %v11886_v34 = vld [vmem:[%s12965_s11 + $0x1348] ss:$72 sps:$4 sm:$0xff]  }
 0x449   : > { %8688 = vmatprep.subr.bf16.mxu1 %v11807_v47  ;;  %v11861_v47 = vld [vmem:[%s12965_s11 + $0x1f1c] ss:$72 sps:$4 sm:$0xff]  }
 0x44b   : > { %8648 = vmatpush1.bf16.msra.mxu0 %v11802_v55  ;;  %v8342_v55 = vadd.f32 %v13810_v11, %v1994_v53  ;;  %v11894_v53 = vld [vmem:[%s12965_s11 + $0x12bc] ss:$72 sps:$4 sm:$0xff]  }
 0x44c   : > { %8689 = vmatpush1.bf16.msra.mxu1 %v11805_v51  ;;  %8649 = vmatprep.subr.bf16.mxu0 %v11810_v52  ;;  %v11856_v51 = vld [vmem:[%s12965_s11 + $0x1618] ss:$72 sps:$4 sm:$0xff]   ;;  %v8381_v52 = vadd.f32 %v13805_v6, %v8340_v23  ;;  %v11900_v23 = vld [vmem:[%s12965_s11 + $0x122c] ss:$72 sps:$4 sm:$0xff]  }
 0x44d   : > { %8690 = vmatprep.subr.bf16.mxu1 %v11813_v61  ;;  %v11864_v61 = vld [vmem:[%s12965_s11 + $0x158c] ss:$72 sps:$4 sm:$0xff]  }
 0x44f   : > { %8650 = vmatpush2.bf16.msra.mxu0 %v11808_v54 }
 0x450   : > { %8691 = vmatpush2.bf16.msra.mxu1 %v11811_v56  ;;  %8651 = vmatprep.subr.bf16.mxu0 %v11816_v59  ;;  %v8383_v56 = vadd.f32 %v13815_v16, %v8342_v55  ;;  %v11873_v16 = vld [vmem:[%s12965_s11 + $0x1dfc] ss:$72 sps:$4 sm:$0xff]   ;;  %v11898_v55 = vld [vmem:[%s12965_s11 + $0x1228] ss:$72 sps:$4 sm:$0xff]  }
 0x451   : > { %8692 = vmatprep.subr.bf16.mxu1 %v11819_v60  ;;  %v11862_v60 = vld [vmem:[%s12965_s11 + $0x1588] ss:$72 sps:$4 sm:$0xff]  }
 0x453   : > { %8652 = vmatpush2.bf16.msra.mxu0 %v11814_v62  ;;  %v11865_v62 = vld [vmem:[%s12965_s11 + $0x1e88] ss:$72 sps:$4 sm:$0xff]  }
 0x454   : > { %8693 = vmatpush2.bf16.msra.mxu1 %v11817_v63  ;;  %8653 = vmatprep.subr.bf16.mxu0 %v11822_v0  ;;  %v11870_v63 = vld [vmem:[%s12965_s11 + $0x14fc] ss:$72 sps:$4 sm:$0xff]  }
 0x455   : > { %8694 = vmatprep.subr.bf16.mxu1 %v11825_v10 }
 0x457   : > { %8654 = vmatpush2.bf16.msra.mxu0 %v11820_v12 }
 0x458   : > { %8695 = vmatpush2.bf16.msra.mxu1 %v11823_v15  ;;  %8655 = vmatprep.subr.bf16.mxu0 %v11828_v17 }
 0x459   : > { %8696 = vmatprep.subr.bf16.mxu1 %v11831_v18 }
 0x45b   : > { %8656 = vmatpush2.bf16.msra.mxu0 %v11826_v19  ;;  %v11868_v19 = vld [vmem:[%s12965_s11 + $0x14f8] ss:$72 sps:$4 sm:$0xff]  }
 0x45c   : > { %8697 = vmatpush2.bf16.msra.mxu1 %v11829_v20  ;;  %8657 = vmatprep.subr.bf16.mxu0 %v11834_v50  ;;  %v11871_v50 = vld [vmem:[%s12965_s11 + $0x1df8] ss:$72 sps:$4 sm:$0xff]  }
 0x45d   : > { %8698 = vmatprep.subr.bf16.mxu1 %v11837_v24  ;;  %v11876_v24 = vld [vmem:[%s12965_s11 + $0x146c] ss:$72 sps:$4 sm:$0xff]  }
 0x45f   : > { %8658 = vmatpush2.bf16.msra.mxu0 %v11832_v36 }
 0x460   : > { %8699 = vmatpush2.bf16.msra.mxu1 %v11835_v26  ;;  %8659 = vmatprep.subr.bf16.mxu0 %v11840_v27  ;;  %v11879_v27 = vld [vmem:[%s12965_s11 + $0x1d6c] ss:$72 sps:$4 sm:$0xff]  }
 0x461   : > { %8700 = vmatprep.subr.bf16.mxu1 %v11843_v28  ;;  %v9332_v28 = vrot.slane %v9324_v43, %v13576_v9  ;;  %v11888_v43 = vld [vmem:[%s12965_s11 + $0x134c] ss:$72 sps:$4 sm:$0xff]  }
 0x463   : > { %8660 = vmatpush2.bf16.msra.mxu0 %v11838_v29 }
 0x464   : > { %8701 = vmatpush2.bf16.msra.mxu1 %v11841_v30  ;;  %8661 = vmatprep.subr.bf16.mxu0 %v11846_v49  ;;  %v11874_v30 = vld [vmem:[%s12965_s11 + $0x1468] ss:$72 sps:$4 sm:$0xff]  }
 0x465   : > { %8702 = vmatprep.subr.bf16.mxu1 %v11849_v33  ;;  %v11877_v49 = vld [vmem:[%s12965_s11 + $0x1d68] ss:$72 sps:$4 sm:$0xff]   ;;  %v11882_v33 = vld [vmem:[%s12965_s11 + $0x13dc] ss:$72 sps:$4 sm:$0xff]  }
 0x467   : > { %8662 = vmatpush2.bf16.msra.mxu0 %v11844_v31 }
 0x468   : > { %8703 = vmatpush2.bf16.msra.mxu1 %v11847_v48  ;;  %8663 = vmatprep.subr.bf16.mxu0 %v11852_v7  ;;  %v11885_v48 = vld [vmem:[%s12965_s11 + $0x1cdc] ss:$72 sps:$4 sm:$0xff]   ;;  %v11891_v7 = vld [vmem:[%s12965_s11 + $0x1c4c] ss:$72 sps:$4 sm:$0xff]  }
 0x469   : > { %8704 = vmatprep.subr.bf16.mxu1 %v11855_v8  ;;  %v11889_v8 = vld [vmem:[%s12965_s11 + $0x1c48] ss:$72 sps:$4 sm:$0xff]  }
 0x46b   : > { %8664 = vmatpush2.bf16.msra.mxu0 %v11850_v35  ;;  %v11897_v35 = vld [vmem:[%s12965_s11 + $0x1bbc] ss:$72 sps:$4 sm:$0xff]  }
 0x46c   : > { %8705 = vmatpush2.bf16.msra.mxu1 %v11853_v45  ;;  %8715 = vmatprep.subr.bf16.mxu0 %v11858_v46  ;;  %v11892_v45 = vld [vmem:[%s12965_s11 + $0x12b8] ss:$72 sps:$4 sm:$0xff]  }
 0x46d   : > { %8756 = vmatprep.subr.bf16.mxu1 %v11861_v47  ;;  %v11895_v46 = vld [vmem:[%s12965_s11 + $0x1bb8] ss:$72 sps:$4 sm:$0xff]   ;;  %v11903_v47 = vld [vmem:[%s12965_s11 + $0x1b2c] ss:$72 sps:$4 sm:$0xff]  }
 0x46e   : > { %v8421_v54 = vpop.f32.mrf.mxu0  ;;  %8666 = vmatmul.mubr.bf16.vlgmr.msra.gmra.mxu0 %v13087_v3 }
 0x46f   : > { %v8422_v11 = vadd.f32 %v8421_v54, %v8381_v52  ;;  %v8462_v59 = vpop.f32.mrf.mxu1  ;;  %8707 = vmatmul.mubr.bf16.vlgmr.msra.gmra.mxu1 %v13089_v4  ;;  %8716 = vmatpush1.bf16.msra.mxu0 %v11856_v51  ;;  %v11901_v51 = vld [vmem:[%s12965_s11 + $0x1b28] ss:$72 sps:$4 sm:$0xff]   ;;  %v11909_v52 = vld [vmem:[%s12965_s11 + $0x239c] ss:$72 sps:$4 sm:$0xff]   ;;  %v11907_v54 = vld [vmem:[%s12965_s11 + $0x2398] ss:$72 sps:$4 sm:$0xff]  }
 0x470   : > { %8747 = vmatprep.mubr.bf16.mxu0 %v13109_v21  ;;  %8757 = vmatpush1.bf16.msra.mxu1 %v11859_v37  ;;  %v8423_v6 = vpop.f32.mrf.mxu0  ;;  %v11906_v37 = vld [vmem:[%s12965_s11 + $0x1a9c] ss:$72 sps:$4 sm:$0xff]  }
 0x471   : > { %8788 = vmatprep.mubr.bf16.mxu1 %v13111_v22  ;;  %v8424_v0 = vadd.f32 %v8423_v6, %v8383_v56  ;;  %v8464_v10 = vpop.f32.mrf.mxu1  ;;  %8717 = vmatprep.subr.bf16.mxu0 %v11864_v61  ;;  %v8463_v15 = vadd.f32 %v8462_v59, %v8422_v11  ;;  %v11904_v61 = vld [vmem:[%s12965_s11 + $0x1a98] ss:$72 sps:$4 sm:$0xff]   ;;  %v11915_v56 = vld [vmem:[%s12965_s11 + $0x230c] ss:$72 sps:$4 sm:$0xff]   ;;  %v11910_v11 = vld [vmem:[%s12965_s11 + $0x1a08] ss:$72 sps:$4 sm:$0xff]  }
 0x472   : > { %v8425_v12 = vpop.f32.mrf.mxu0  ;;  %8758 = vmatprep.subr.bf16.mxu1 %v11867_v5  ;;  %v11912_v5 = vld [vmem:[%s12965_s11 + $0x1a0c] ss:$72 sps:$4 sm:$0xff]   ;;  %v11913_v59 = vld [vmem:[%s12965_s11 + $0x2308] ss:$72 sps:$4 sm:$0xff]   ;;  %v11921_v6 = vld [vmem:[%s12965_s11 + $0x227c] ss:$72 sps:$4 sm:$0xff]  }
 0x473   : > { %v8465_v17 = vadd.f32 %v8464_v10, %v8424_v0  ;;  %v8466_v18 = vpop.f32.mrf.mxu1  ;;  %8718 = vmatpush1.bf16.msra.mxu0 %v11862_v60  ;;  %v11918_v60 = vld [vmem:[%s12965_s11 + $0x197c] ss:$72 sps:$4 sm:$0xff]   ;;  %v11924_v0 = vld [vmem:[%s12965_s11 + $0x18ec] ss:$72 sps:$4 sm:$0xff]   ;;  %v11925_v12 = vld [vmem:[%s12965_s11 + $0x21e8] ss:$72 sps:$4 sm:$0xff]  }
 0x474   : > { %8759 = vmatpush1.bf16.msra.mxu1 %v11865_v62  ;;  %v8426_v20 = vpop.f32.mrf.mxu0  ;;  %8719 = vmatprep.subr.bf16.mxu0 %v11870_v63  ;;  %v11916_v62 = vld [vmem:[%s12965_s11 + $0x1978] ss:$72 sps:$4 sm:$0xff]   ;;  %v11927_v10 = vld [vmem:[%s12965_s11 + $0x21ec] ss:$72 sps:$4 sm:$0xff]  }
 0x475   : > { %v9325_v36 = vcombine.low %v8463_v15, %v8465_v17  ;;  %v8467_v26 = vpop.f32.mrf.mxu1  ;;  %8760 = vmatprep.subr.bf16.mxu1 %v11873_v16  ;;  %v11919_v63 = vld [vmem:[%s12965_s11 + $0x2278] ss:$72 sps:$4 sm:$0xff]   ;;  %v11922_v16 = vld [vmem:[%s12965_s11 + $0x18e8] ss:$72 sps:$4 sm:$0xff]   ;;  %v11930_v15 = vld [vmem:[%s12965_s11 + $0x185c] ss:$72 sps:$4 sm:$0xff]  }
 0x476   : > { %v11933_v17 = vld [vmem:[%s12965_s11 + $0x215c] ss:$72 sps:$4 sm:$0xff]   ;;  %v11928_v18 = vld [vmem:[%s12965_s11 + $0x1858] ss:$72 sps:$4 sm:$0xff]   ;;  %v11936_v20 = vld [vmem:[%s12965_s11 + $0x17cc] ss:$72 sps:$4 sm:$0xff]  }
 0x477   : > { %v9339_v29 = vrot.slane %v9325_v36, %v13576_v9  ;;  %8720 = vmatpush1.bf16.msra.mxu0 %v11868_v19  ;;  %v11931_v19 = vld [vmem:[%s12965_s11 + $0x2158] ss:$72 sps:$4 sm:$0xff]   ;;  %v11937_v36 = vld [vmem:[%s12965_s11 + $0x20c8] ss:$72 sps:$4 sm:$0xff]   ;;  %v11942_v26 = vld [vmem:[%s12965_s11 + $0x173c] ss:$72 sps:$4 sm:$0xff]  }
 0x478   : > { %8761 = vmatpush1.bf16.msra.mxu1 %v11871_v50  ;;  %8721 = vmatprep.subr.bf16.mxu0 %v11876_v24  ;;  %v11939_v50 = vld [vmem:[%s12965_s11 + $0x20cc] ss:$72 sps:$4 sm:$0xff]   ;;  %v11934_v24 = vld [vmem:[%s12965_s11 + $0x17c8] ss:$72 sps:$4 sm:$0xff]  }
 0x479   : > { %v9340_v31 = vcombine.low %v9332_v28, %v9339_v29  ;;  %8762 = vmatprep.subr.bf16.mxu1 %v11879_v27  ;;  %v11945_v27 = vld [vmem:[%s12965_s11 + $0x203c] ss:$72 sps:$4 sm:$0xff]   ;;  %v11940_v28 = vld [vmem:[%s12965_s11 + $0x1738] ss:$72 sps:$4 sm:$0xff]  }
 0x47a   : > { %v11943_v29 = vld [vmem:[%s12965_s11 + $0x2038] ss:$72 sps:$4 sm:$0xff]  }
 0x47b   : > { %9389 = vst [vmem:[%s13592_s28 + $0x8] sm:$0xff] %v9340_v31  ;;  %8722 = vmatpush1.bf16.msra.mxu0 %v11874_v30  ;;  %v11948_v30 = vld [vmem:[%s12965_s11 + $0x16ac] ss:$72 sps:$4 sm:$0xff]   ;;  %v11949_v31 = vld [vmem:[%s12965_s11 + $0x1fa8] ss:$72 sps:$4 sm:$0xff]  }
 0x47c   : > { %8763 = vmatpush1.bf16.msra.mxu1 %v11877_v49  ;;  %8723 = vmatprep.subr.bf16.mxu0 %v11882_v33  ;;  %v11951_v49 = vld [vmem:[%s12965_s11 + $0x1fac] ss:$72 sps:$4 sm:$0xff]   ;;  %v11946_v33 = vld [vmem:[%s12965_s11 + $0x16a8] ss:$72 sps:$4 sm:$0xff]  }
 0x47d   : > { %8764 = vmatprep.subr.bf16.mxu1 %v11885_v48  ;;  %v13955_v48 = vld [vmem:[%s13321_s27 + $0x8] sm:$0xff] }
 0x47f   : > { %8724 = vmatpush1.bf16.msra.mxu0 %v11880_v25  ;;  %v11954_v25 = vld [vmem:[%s12965_s11 + $0x424] ss:$72 sps:$4 sm:$0xff]  }
 0x480   : > { %8765 = vmatpush1.bf16.msra.mxu1 %v11883_v32  ;;  %8725 = vmatprep.subr.bf16.mxu0 %v11888_v43  ;;  %v11957_v32 = vld [vmem:[%s12965_s11 + $0xd24] ss:$72 sps:$4 sm:$0xff]   ;;  %v1998_v43 = vrot.slane %v13955_v48, %v13054_v38 }
 0x481   : > { %8766 = vmatprep.subr.bf16.mxu1 %v11891_v7  ;;  %v11952_v7 = vld [vmem:[%s12965_s11 + $0x420] ss:$72 sps:$4 sm:$0xff]  }
 0x483   : > { %8726 = vmatpush1.bf16.msra.mxu0 %v11886_v34  ;;  %v11955_v34 = vld [vmem:[%s12965_s11 + $0xd20] ss:$72 sps:$4 sm:$0xff]  }
 0x484   : > { %8767 = vmatpush1.bf16.msra.mxu1 %v11889_v8  ;;  %8727 = vmatprep.subr.bf16.mxu0 %v11894_v53  ;;  %v2002_v8 = vrot.slane %v13955_v48, %v13060_v40  ;;  %v11960_v53 = vld [vmem:[%s12965_s11 + $0x394] ss:$72 sps:$4 sm:$0xff]  }
 0x485   : > { %8768 = vmatprep.subr.bf16.mxu1 %v11897_v35 }
 0x487   : > { %8728 = vmatpush1.bf16.msra.mxu0 %v11892_v45  ;;  %v11963_v45 = vld [vmem:[%s12965_s11 + $0xc94] ss:$72 sps:$4 sm:$0xff]  }
 0x488   : > { %8769 = vmatpush1.bf16.msra.mxu1 %v11895_v46  ;;  %8729 = vmatprep.subr.bf16.mxu0 %v11900_v23 }
 0x489   : > { %8770 = vmatprep.subr.bf16.mxu1 %v11903_v47  ;;  %v11958_v47 = vld [vmem:[%s12965_s11 + $0x390] ss:$72 sps:$4 sm:$0xff]  }
 0x48b   : > { %8730 = vmatpush1.bf16.msra.mxu0 %v11898_v55 }
 0x48c   : > { %8771 = vmatpush1.bf16.msra.mxu1 %v11901_v51  ;;  %8731 = vmatprep.subr.bf16.mxu0 %v11906_v37  ;;  %v11961_v51 = vld [vmem:[%s12965_s11 + $0xc90] ss:$72 sps:$4 sm:$0xff]   ;;  %v11966_v37 = vld [vmem:[%s12965_s11 + $0x304] ss:$72 sps:$4 sm:$0xff]  }
 0x48d   : > { %8772 = vmatprep.subr.bf16.mxu1 %v11909_v52 }
 0x48f   : > { %8732 = vmatpush2.bf16.msra.mxu0 %v11904_v61 }
 0x490   : > { %8773 = vmatpush2.bf16.msra.mxu1 %v11907_v54  ;;  %8733 = vmatprep.subr.bf16.mxu0 %v11912_v5  ;;  %v11969_v5 = vld [vmem:[%s12965_s11 + $0xc04] ss:$72 sps:$4 sm:$0xff]  }
 0x491   : > { %8774 = vmatprep.subr.bf16.mxu1 %v11915_v56 }
 0x493   : > { %8734 = vmatpush2.bf16.msra.mxu0 %v11910_v11 }
 0x494   : > { %8775 = vmatpush2.bf16.msra.mxu1 %v11913_v59  ;;  %8735 = vmatprep.subr.bf16.mxu0 %v11918_v60  ;;  %v11964_v60 = vld [vmem:[%s12965_s11 + $0x300] ss:$72 sps:$4 sm:$0xff]  }
 0x495   : > { %8776 = vmatprep.subr.bf16.mxu1 %v11921_v6 }
 0x497   : > { %8736 = vmatpush2.bf16.msra.mxu0 %v11916_v62  ;;  %v11967_v62 = vld [vmem:[%s12965_s11 + $0xc00] ss:$72 sps:$4 sm:$0xff]  }
 0x498   : > { %8777 = vmatpush2.bf16.msra.mxu1 %v11919_v63  ;;  %8737 = vmatprep.subr.bf16.mxu0 %v11924_v0  ;;  %v11972_v63 = vld [vmem:[%s12965_s11 + $0x274] ss:$72 sps:$4 sm:$0xff]  }
 0x499   : > { %8778 = vmatprep.subr.bf16.mxu1 %v11927_v10  ;;  %v11975_v10 = vld [vmem:[%s12965_s11 + $0xb74] ss:$72 sps:$4 sm:$0xff]  }
 0x49b   : > { %8738 = vmatpush2.bf16.msra.mxu0 %v11922_v16  ;;  %v11970_v16 = vld [vmem:[%s12965_s11 + $0x270] ss:$72 sps:$4 sm:$0xff]  }
 0x49c   : > { %8779 = vmatpush2.bf16.msra.mxu1 %v11925_v12  ;;  %8739 = vmatprep.subr.bf16.mxu0 %v11930_v15  ;;  %v11973_v12 = vld [vmem:[%s12965_s11 + $0xb70] ss:$72 sps:$4 sm:$0xff]   ;;  %v11978_v15 = vld [vmem:[%s12965_s11 + $0x1e4] ss:$72 sps:$4 sm:$0xff]  }
 0x49d   : > { %8780 = vmatprep.subr.bf16.mxu1 %v11933_v17  ;;  %v11981_v17 = vld [vmem:[%s12965_s11 + $0xae4] ss:$72 sps:$4 sm:$0xff]  }
 0x49f   : > { %8740 = vmatpush2.bf16.msra.mxu0 %v11928_v18  ;;  %v11976_v18 = vld [vmem:[%s12965_s11 + $0x1e0] ss:$72 sps:$4 sm:$0xff]  }
 0x4a0   : > { %8781 = vmatpush2.bf16.msra.mxu1 %v11931_v19  ;;  %8741 = vmatprep.subr.bf16.mxu0 %v11936_v20  ;;  %v11979_v19 = vld [vmem:[%s12965_s11 + $0xae0] ss:$72 sps:$4 sm:$0xff]   ;;  %v11984_v20 = vld [vmem:[%s12965_s11 + $0x154] ss:$72 sps:$4 sm:$0xff]  }
 0x4a1   : > { %8782 = vmatprep.subr.bf16.mxu1 %v11939_v50  ;;  %v11987_v50 = vld [vmem:[%s12965_s11 + $0xa54] ss:$72 sps:$4 sm:$0xff]  }
 0x4a3   : > { %8742 = vmatpush2.bf16.msra.mxu0 %v11934_v24  ;;  %v11982_v24 = vld [vmem:[%s12965_s11 + $0x150] ss:$72 sps:$4 sm:$0xff]  }
 0x4a4   : > { %8783 = vmatpush2.bf16.msra.mxu1 %v11937_v36  ;;  %8743 = vmatprep.subr.bf16.mxu0 %v11942_v26  ;;  %v11985_v36 = vld [vmem:[%s12965_s11 + $0xa50] ss:$72 sps:$4 sm:$0xff]   ;;  %v11990_v26 = vld [vmem:[%s12965_s11 + $0xc4] ss:$72 sps:$4 sm:$0xff]  }
 0x4a5   : > { %8784 = vmatprep.subr.bf16.mxu1 %v11945_v27  ;;  %v11993_v27 = vld [vmem:[%s12965_s11 + $0x9c4] ss:$72 sps:$4 sm:$0xff]  }
 0x4a7   : > { %8744 = vmatpush2.bf16.msra.mxu0 %v11940_v28  ;;  %v11988_v28 = vld [vmem:[%s12965_s11 + $0xc0] ss:$72 sps:$4 sm:$0xff]  }
 0x4a8   : > { %8785 = vmatpush2.bf16.msra.mxu1 %v11943_v29  ;;  %8745 = vmatprep.subr.bf16.mxu0 %v11948_v30  ;;  %v11991_v29 = vld [vmem:[%s12965_s11 + $0x9c0] ss:$72 sps:$4 sm:$0xff]   ;;  %v11996_v30 = vld [vmem:[%s12965_s11 + $0x34] ss:$72 sps:$4 sm:$0xff]  }
 0x4a9   : > { %8786 = vmatprep.subr.bf16.mxu1 %v11951_v49  ;;  %v11999_v49 = vld [vmem:[%s12965_s11 + $0x934] ss:$72 sps:$4 sm:$0xff]  }
 0x4ab   : > { %8746 = vmatpush2.bf16.msra.mxu0 %v11946_v33  ;;  %v11994_v33 = vld [vmem:[%s12965_s11 + $0x30] ss:$72 sps:$4 sm:$0xff]  }
 0x4ac   : > { %8787 = vmatpush2.bf16.msra.mxu1 %v11949_v31  ;;  %8797 = vmatprep.subr.bf16.mxu0 %v11954_v25  ;;  %v11997_v31 = vld [vmem:[%s12965_s11 + $0x930] ss:$72 sps:$4 sm:$0xff]   ;;  %v12002_v25 = vld [vmem:[%s12965_s11 + $0x8a4] ss:$72 sps:$4 sm:$0xff]  }
 0x4ad   : > { %8838 = vmatprep.subr.bf16.mxu1 %v11957_v32  ;;  %v12005_v32 = vld [vmem:[%s12965_s11 + $0x11a4] ss:$72 sps:$4 sm:$0xff]  }
 0x4ae   : > { %v8503_v35 = vpop.f32.mrf.mxu0  ;;  %8748 = vmatmul.mubr.bf16.vlgmr.msra.gmra.mxu0 %v13185_v44 }
 0x4af   : > { %v8504_v46 = vadd.f32 %v8503_v35, %v1998_v43  ;;  %v8544_v23 = vpop.f32.mrf.mxu1  ;;  %8789 = vmatmul.mubr.bf16.vlgmr.msra.gmra.mxu1 %v13187_v42  ;;  %8798 = vmatpush1.bf16.msra.mxu0 %v11952_v7  ;;  %v12000_v43 = vld [vmem:[%s12965_s11 + $0x8a0] ss:$72 sps:$4 sm:$0xff]   ;;  %v12009_v35 = vld [vmem:[%s12965_s11 + $0x1110] ss:$72 sps:$4 sm:$0xff]  }
 0x4b0   : > { %8829 = vmatprep.mubr.bf16.mxu0 %v13083_v1  ;;  %8839 = vmatpush1.bf16.msra.mxu1 %v11955_v34  ;;  %v8505_v55 = vpop.f32.mrf.mxu0  ;;  %v12003_v7 = vld [vmem:[%s12965_s11 + $0x11a0] ss:$72 sps:$4 sm:$0xff]   ;;  %v12008_v34 = vld [vmem:[%s12965_s11 + $0x814] ss:$72 sps:$4 sm:$0xff]  }
 0x4b1   : > { %v13973_v52 = vadd.f32 %v8544_v23, %v8504_v46  ;;  %8870 = vmatprep.mubr.bf16.mxu1 %v13085_v2  ;;  %v8506_v61 = vadd.f32 %v8505_v55, %v2002_v8  ;;  %v8546_v54 = vpop.f32.mrf.mxu1  ;;  %8799 = vmatprep.subr.bf16.mxu0 %v11960_v53  ;;  %v12011_v8 = vld [vmem:[%s12965_s11 + $0x1114] ss:$72 sps:$4 sm:$0xff]   ;;  %v12006_v53 = vld [vmem:[%s12965_s11 + $0x810] ss:$72 sps:$4 sm:$0xff]   ;;  %v12017_v46 = vld [vmem:[%s12965_s11 + $0x1084] ss:$72 sps:$4 sm:$0xff]  }
 0x4b2   : > { %v8507_v56 = vpop.f32.mrf.mxu0  ;;  %8840 = vmatprep.subr.bf16.mxu1 %v11963_v45  ;;  %v12014_v45 = vld [vmem:[%s12965_s11 + $0x784] ss:$72 sps:$4 sm:$0xff]   ;;  %v12012_v23 = vld [vmem:[%s12965_s11 + $0x780] ss:$72 sps:$4 sm:$0xff]   ;;  %v12020_v55 = vld [vmem:[%s12965_s11 + $0x6f4] ss:$72 sps:$4 sm:$0xff]  }
 0x4b3   : > { %v13977_v11 = vadd.f32 %v8546_v54, %v8506_v61  ;;  %v8548_v59 = vpop.f32.mrf.mxu1  ;;  %8800 = vmatpush1.bf16.msra.mxu0 %v11958_v47  ;;  %v12015_v47 = vld [vmem:[%s12965_s11 + $0x1080] ss:$72 sps:$4 sm:$0xff]   ;;  %v12021_v61 = vld [vmem:[%s12965_s11 + $0xff0] ss:$72 sps:$4 sm:$0xff]   ;;  %v12026_v54 = vld [vmem:[%s12965_s11 + $0x664] ss:$72 sps:$4 sm:$0xff]  }
 0x4b4   : > { %8841 = vmatpush1.bf16.msra.mxu1 %v11961_v51  ;;  %v8508_v6 = vpop.f32.mrf.mxu0  ;;  %8801 = vmatprep.subr.bf16.mxu0 %v11966_v37  ;;  %v12023_v51 = vld [vmem:[%s12965_s11 + $0xff4] ss:$72 sps:$4 sm:$0xff]   ;;  %v12018_v37 = vld [vmem:[%s12965_s11 + $0x6f0] ss:$72 sps:$4 sm:$0xff]   ;;  %v12024_v56 = vld [vmem:[%s12965_s11 + $0x660] ss:$72 sps:$4 sm:$0xff]  }
 0x4b5   : > { %v8549_v0 = vpop.f32.mrf.mxu1  ;;  %8842 = vmatprep.subr.bf16.mxu1 %v11969_v5  ;;  %v12029_v5 = vld [vmem:[%s12965_s11 + $0xf64] ss:$72 sps:$4 sm:$0xff]   ;;  %v12027_v59 = vld [vmem:[%s12965_s11 + $0xf60] ss:$72 sps:$4 sm:$0xff]   ;;  %v12035_v6 = vld [vmem:[%s12965_s11 + $0xed4] ss:$72 sps:$4 sm:$0xff]  }
 0x4b6   : > { %v12038_v0 = vld [vmem:[%s12965_s11 + $0x544] ss:$72 sps:$4 sm:$0xff]  }
 0x4b7   : > { %8802 = vmatpush1.bf16.msra.mxu0 %v11964_v60  ;;  %v12032_v60 = vld [vmem:[%s12965_s11 + $0x5d4] ss:$72 sps:$4 sm:$0xff]  }
 0x4b8   : > { %8843 = vmatpush1.bf16.msra.mxu1 %v11967_v62  ;;  %8803 = vmatprep.subr.bf16.mxu0 %v11972_v63  ;;  %v12030_v62 = vld [vmem:[%s12965_s11 + $0x5d0] ss:$72 sps:$4 sm:$0xff]  }
 0x4b9   : > { %8844 = vmatprep.subr.bf16.mxu1 %v11975_v10  ;;  %v12033_v63 = vld [vmem:[%s12965_s11 + $0xed0] ss:$72 sps:$4 sm:$0xff]   ;;  %v12041_v10 = vld [vmem:[%s12965_s11 + $0xe44] ss:$72 sps:$4 sm:$0xff]  }
 0x4bb   : > { %8804 = vmatpush1.bf16.msra.mxu0 %v11970_v16  ;;  %v12036_v16 = vld [vmem:[%s12965_s11 + $0x540] ss:$72 sps:$4 sm:$0xff]  }
 0x4bc   : > { %8845 = vmatpush1.bf16.msra.mxu1 %v11973_v12  ;;  %8805 = vmatprep.subr.bf16.mxu0 %v11978_v15  ;;  %v12039_v12 = vld [vmem:[%s12965_s11 + $0xe40] ss:$72 sps:$4 sm:$0xff]   ;;  %v12044_v15 = vld [vmem:[%s12965_s11 + $0x4b4] ss:$72 sps:$4 sm:$0xff]  }
 0x4bd   : > { %8846 = vmatprep.subr.bf16.mxu1 %v11981_v17  ;;  %v12047_v17 = vld [vmem:[%s12965_s11 + $0xdb4] ss:$72 sps:$4 sm:$0xff]  }
 0x4bf   : > { %8806 = vmatpush1.bf16.msra.mxu0 %v11976_v18  ;;  %v12042_v18 = vld [vmem:[%s12965_s11 + $0x4b0] ss:$72 sps:$4 sm:$0xff]  }
 0x4c0   : > { %8847 = vmatpush1.bf16.msra.mxu1 %v11979_v19  ;;  %8807 = vmatprep.subr.bf16.mxu0 %v11984_v20  ;;  %v12045_v19 = vld [vmem:[%s12965_s11 + $0xdb0] ss:$72 sps:$4 sm:$0xff]   ;;  %v12050_v20 = vld [vmem:[%s12965_s11 + $0x1624] ss:$72 sps:$4 sm:$0xff]  }
 0x4c1   : > { %8848 = vmatprep.subr.bf16.mxu1 %v11987_v50  ;;  %v12053_v50 = vld [vmem:[%s12965_s11 + $0x1f24] ss:$72 sps:$4 sm:$0xff]  }
 0x4c3   : > { %8808 = vmatpush1.bf16.msra.mxu0 %v11982_v24  ;;  %v12048_v24 = vld [vmem:[%s12965_s11 + $0x1620] ss:$72 sps:$4 sm:$0xff]  }
 0x4c4   : > { %8849 = vmatpush1.bf16.msra.mxu1 %v11985_v36  ;;  %8809 = vmatprep.subr.bf16.mxu0 %v11990_v26  ;;  %v12051_v36 = vld [vmem:[%s12965_s11 + $0x1f20] ss:$72 sps:$4 sm:$0xff]   ;;  %v12056_v26 = vld [vmem:[%s12965_s11 + $0x1594] ss:$72 sps:$4 sm:$0xff]  }
 0x4c5   : > { %8850 = vmatprep.subr.bf16.mxu1 %v11993_v27 }
 0x4c7   : > { %8810 = vmatpush1.bf16.msra.mxu0 %v11988_v28  ;;  %v12059_v28 = vld [vmem:[%s12965_s11 + $0x1e94] ss:$72 sps:$4 sm:$0xff]  }
 0x4c8   : > { %8851 = vmatpush1.bf16.msra.mxu1 %v11991_v29  ;;  %8811 = vmatprep.subr.bf16.mxu0 %v11996_v30 }
 0x4c9   : > { %8852 = vmatprep.subr.bf16.mxu1 %v11999_v49  ;;  %v12054_v49 = vld [vmem:[%s12965_s11 + $0x1590] ss:$72 sps:$4 sm:$0xff]  }
 0x4cb   : > { %8812 = vmatpush1.bf16.msra.mxu0 %v11994_v33 }
 0x4cc   : > { %8853 = vmatpush1.bf16.msra.mxu1 %v11997_v31  ;;  %8813 = vmatprep.subr.bf16.mxu0 %v12002_v25  ;;  %v12057_v31 = vld [vmem:[%s12965_s11 + $0x1e90] ss:$72 sps:$4 sm:$0xff]   ;;  %v12062_v25 = vld [vmem:[%s12965_s11 + $0x1504] ss:$72 sps:$4 sm:$0xff]  }
 0x4cd   : > { %8854 = vmatprep.subr.bf16.mxu1 %v12005_v32 }
 0x4cf   : > { %8814 = vmatpush2.bf16.msra.mxu0 %v12000_v43 }
 0x4d0   : > { %8855 = vmatpush2.bf16.msra.mxu1 %v12003_v7  ;;  %8815 = vmatprep.subr.bf16.mxu0 %v12008_v34  ;;  %v12065_v7 = vld [vmem:[%s12965_s11 + $0x1e04] ss:$72 sps:$4 sm:$0xff]  }
 0x4d1   : > { %8856 = vmatprep.subr.bf16.mxu1 %v12011_v8 }
 0x4d3   : > { %8816 = vmatpush2.bf16.msra.mxu0 %v12006_v53 }
 0x4d4   : > { %8857 = vmatpush2.bf16.msra.mxu1 %v12009_v35  ;;  %8817 = vmatprep.subr.bf16.mxu0 %v12014_v45  ;;  %v12060_v35 = vld [vmem:[%s12965_s11 + $0x1500] ss:$72 sps:$4 sm:$0xff]  }
 0x4d5   : > { %8858 = vmatprep.subr.bf16.mxu1 %v12017_v46  ;;  %v12068_v46 = vld [vmem:[%s12965_s11 + $0x1474] ss:$72 sps:$4 sm:$0xff]  }
 0x4d7   : > { %8818 = vmatpush2.bf16.msra.mxu0 %v12012_v23 }
 0x4d8   : > { %8859 = vmatpush2.bf16.msra.mxu1 %v12015_v47  ;;  %8819 = vmatprep.subr.bf16.mxu0 %v12020_v55  ;;  %v12071_v55 = vld [vmem:[%s12965_s11 + $0x1d74] ss:$72 sps:$4 sm:$0xff]  }
 0x4d9   : > { %8860 = vmatprep.subr.bf16.mxu1 %v12023_v51  ;;  %v12066_v51 = vld [vmem:[%s12965_s11 + $0x1470] ss:$72 sps:$4 sm:$0xff]  }
 0x4db   : > { %8820 = vmatpush2.bf16.msra.mxu0 %v12018_v37  ;;  %v12069_v37 = vld [vmem:[%s12965_s11 + $0x1d70] ss:$72 sps:$4 sm:$0xff]  }
 0x4dc   : > { %8861 = vmatpush2.bf16.msra.mxu1 %v12021_v61  ;;  %8821 = vmatprep.subr.bf16.mxu0 %v12026_v54  ;;  %v12074_v61 = vld [vmem:[%s12965_s11 + $0x13e4] ss:$72 sps:$4 sm:$0xff]  }
 0x4dd   : > { %8862 = vmatprep.subr.bf16.mxu1 %v12029_v5  ;;  %v12077_v54 = vld [vmem:[%s12965_s11 + $0x1ce4] ss:$72 sps:$4 sm:$0xff]   ;;  %v12072_v5 = vld [vmem:[%s12965_s11 + $0x13e0] ss:$72 sps:$4 sm:$0xff]  }
 0x4df   : > { %8822 = vmatpush2.bf16.msra.mxu0 %v12024_v56  ;;  %v12075_v56 = vld [vmem:[%s12965_s11 + $0x1ce0] ss:$72 sps:$4 sm:$0xff]  }
 0x4e0   : > { %8863 = vmatpush2.bf16.msra.mxu1 %v12027_v59  ;;  %8823 = vmatprep.subr.bf16.mxu0 %v12032_v60  ;;  %v12080_v59 = vld [vmem:[%s12965_s11 + $0x1354] ss:$72 sps:$4 sm:$0xff]  }
 0x4e1   : > { %8864 = vmatprep.subr.bf16.mxu1 %v12035_v6  ;;  %v12083_v60 = vld [vmem:[%s12965_s11 + $0x1c54] ss:$72 sps:$4 sm:$0xff]   ;;  %v12078_v6 = vld [vmem:[%s12965_s11 + $0x1350] ss:$72 sps:$4 sm:$0xff]  }
 0x4e3   : > { %8824 = vmatpush2.bf16.msra.mxu0 %v12030_v62  ;;  %v12081_v62 = vld [vmem:[%s12965_s11 + $0x1c50] ss:$72 sps:$4 sm:$0xff]  }
 0x4e4   : > { %8865 = vmatpush2.bf16.msra.mxu1 %v12033_v63  ;;  %8825 = vmatprep.subr.bf16.mxu0 %v12038_v0  ;;  %v12086_v63 = vld [vmem:[%s12965_s11 + $0x12c4] ss:$72 sps:$4 sm:$0xff]  }
 0x4e5   : > { %8866 = vmatprep.subr.bf16.mxu1 %v12041_v10  ;;  %v12089_v0 = vld [vmem:[%s12965_s11 + $0x1bc4] ss:$72 sps:$4 sm:$0xff]   ;;  %v12084_v10 = vld [vmem:[%s12965_s11 + $0x12c0] ss:$72 sps:$4 sm:$0xff]  }
 0x4e7   : > { %8826 = vmatpush2.bf16.msra.mxu0 %v12036_v16  ;;  %v12087_v16 = vld [vmem:[%s12965_s11 + $0x1bc0] ss:$72 sps:$4 sm:$0xff]  }
 0x4e8   : > { %8867 = vmatpush2.bf16.msra.mxu1 %v12039_v12  ;;  %8827 = vmatprep.subr.bf16.mxu0 %v12044_v15  ;;  %v12092_v12 = vld [vmem:[%s12965_s11 + $0x1234] ss:$72 sps:$4 sm:$0xff]  }
 0x4e9   : > { %8868 = vmatprep.subr.bf16.mxu1 %v12047_v17  ;;  %v12095_v15 = vld [vmem:[%s12965_s11 + $0x1b34] ss:$72 sps:$4 sm:$0xff]   ;;  %v12090_v17 = vld [vmem:[%s12965_s11 + $0x1230] ss:$72 sps:$4 sm:$0xff]  }
 0x4eb   : > { %8828 = vmatpush2.bf16.msra.mxu0 %v12042_v18  ;;  %v12093_v18 = vld [vmem:[%s12965_s11 + $0x1b30] ss:$72 sps:$4 sm:$0xff]  }
 0x4ec   : > { %8869 = vmatpush2.bf16.msra.mxu1 %v12045_v19  ;;  %8879 = vmatprep.subr.bf16.mxu0 %v12050_v20  ;;  %v12098_v19 = vld [vmem:[%s12965_s11 + $0x1aa4] ss:$72 sps:$4 sm:$0xff]  }
 0x4ed   : > { %8920 = vmatprep.subr.bf16.mxu1 %v12053_v50  ;;  %v12101_v20 = vld [vmem:[%s12965_s11 + $0x23a4] ss:$72 sps:$4 sm:$0xff]   ;;  %v12096_v50 = vld [vmem:[%s12965_s11 + $0x1aa0] ss:$72 sps:$4 sm:$0xff]  }
 0x4ee   : > { %v8585_v27 = vpop.f32.mrf.mxu0  ;;  %8830 = vmatmul.mubr.bf16.vlgmr.msra.gmra.mxu0 %v13087_v3 }
 0x4ef   : > { %v8586_v29 = vadd.f32 %v8585_v27, %v13973_v52  ;;  %v8626_v30 = vpop.f32.mrf.mxu1  ;;  %8871 = vmatmul.mubr.bf16.vlgmr.msra.gmra.mxu1 %v13089_v4  ;;  %8880 = vmatpush1.bf16.msra.mxu0 %v12048_v24  ;;  %v12099_v24 = vld [vmem:[%s12965_s11 + $0x23a0] ss:$72 sps:$4 sm:$0xff]   ;;  %v12102_v27 = vld [vmem:[%s12965_s11 + $0x1a10] ss:$72 sps:$4 sm:$0xff]  }
 0x4f0   : > { %8911 = vmatprep.mubr.bf16.mxu0 %v13109_v21  ;;  %8921 = vmatpush1.bf16.msra.mxu1 %v12051_v36  ;;  %v8587_v33 = vpop.f32.mrf.mxu0  ;;  %v12104_v36 = vld [vmem:[%s12965_s11 + $0x1a14] ss:$72 sps:$4 sm:$0xff]  }
 0x4f1   : > { %v14046_v32 = vadd.f32 %v8626_v30, %v8586_v29  ;;  %8952 = vmatprep.mubr.bf16.mxu1 %v13111_v22  ;;  %v8588_v52 = vadd.f32 %v8587_v33, %v13977_v11  ;;  %v8628_v43 = vpop.f32.mrf.mxu1  ;;  %8881 = vmatprep.subr.bf16.mxu0 %v12056_v26  ;;  %v12063_v11 = vld [vmem:[%s12965_s11 + $0x1e00] ss:$72 sps:$4 sm:$0xff]   ;;  %v12107_v26 = vld [vmem:[%s12965_s11 + $0x2314] ss:$72 sps:$4 sm:$0xff]   ;;  %v12110_v29 = vld [vmem:[%s12965_s11 + $0x1984] ss:$72 sps:$4 sm:$0xff]  }
 0x4f2   : > { %v8589_v34 = vpop.f32.mrf.mxu0  ;;  %8922 = vmatprep.subr.bf16.mxu1 %v12059_v28  ;;  %v12105_v28 = vld [vmem:[%s12965_s11 + $0x2310] ss:$72 sps:$4 sm:$0xff]   ;;  %v12113_v30 = vld [vmem:[%s12965_s11 + $0x2284] ss:$72 sps:$4 sm:$0xff]   ;;  %v12111_v33 = vld [vmem:[%s12965_s11 + $0x2280] ss:$72 sps:$4 sm:$0xff]  }
 0x4f3   : > { %v14051_v8 = vadd.f32 %v8628_v43, %v8588_v52  ;;  %v8630_v53 = vpop.f32.mrf.mxu1  ;;  %8882 = vmatpush1.bf16.msra.mxu0 %v12054_v49  ;;  %v12108_v49 = vld [vmem:[%s12965_s11 + $0x1980] ss:$72 sps:$4 sm:$0xff]   ;;  %v12114_v52 = vld [vmem:[%s12965_s11 + $0x18f0] ss:$72 sps:$4 sm:$0xff]   ;;  %v12125_v34 = vld [vmem:[%s12965_s11 + $0x2164] ss:$72 sps:$4 sm:$0xff]  }
 0x4f4   : > { %8923 = vmatpush1.bf16.msra.mxu1 %v12057_v31  ;;  %v8590_v45 = vpop.f32.mrf.mxu0  ;;  %8883 = vmatprep.subr.bf16.mxu0 %v12062_v25  ;;  %v12116_v31 = vld [vmem:[%s12965_s11 + $0x18f4] ss:$72 sps:$4 sm:$0xff]   ;;  %v12117_v43 = vld [vmem:[%s12965_s11 + $0x21f0] ss:$72 sps:$4 sm:$0xff]   ;;  %v12120_v53 = vld [vmem:[%s12965_s11 + $0x1860] ss:$72 sps:$4 sm:$0xff]  }
 0x4f5   : > { %v9341_v23 = vcombine.low %v14046_v32, %v14051_v8  ;;  %v8631_v47 = vpop.f32.mrf.mxu1  ;;  %8924 = vmatprep.subr.bf16.mxu1 %v12065_v7  ;;  %v12119_v25 = vld [vmem:[%s12965_s11 + $0x21f4] ss:$72 sps:$4 sm:$0xff]   ;;  %v12122_v7 = vld [vmem:[%s12965_s11 + $0x1864] ss:$72 sps:$4 sm:$0xff]   ;;  %v12264_v32 = vld [vmem:[%s12965_s11 + $0x13e8] ss:$72 sps:$4 sm:$0xff]  }
 0x4f6   : > { %v12128_v45 = vld [vmem:[%s12965_s11 + $0x17d4] ss:$72 sps:$4 sm:$0xff]   ;;  %v12129_v47 = vld [vmem:[%s12965_s11 + $0x20d0] ss:$72 sps:$4 sm:$0xff]  }
 0x4f7   : > { %8884 = vmatpush1.bf16.msra.mxu0 %v12060_v35  ;;  %v12123_v35 = vld [vmem:[%s12965_s11 + $0x2160] ss:$72 sps:$4 sm:$0xff]  }
 0x4f8   : > { %8925 = vmatpush1.bf16.msra.mxu1 %v12063_v11  ;;  %8885 = vmatprep.subr.bf16.mxu0 %v12068_v46  ;;  %v12131_v11 = vld [vmem:[%s12965_s11 + $0x20d4] ss:$72 sps:$4 sm:$0xff]   ;;  %v12126_v46 = vld [vmem:[%s12965_s11 + $0x17d0] ss:$72 sps:$4 sm:$0xff]  }
 0x4f9   : > { %8926 = vmatprep.subr.bf16.mxu1 %v12071_v55  ;;  %v12134_v55 = vld [vmem:[%s12965_s11 + $0x1744] ss:$72 sps:$4 sm:$0xff]   ;;  %v12267_v8 = vld [vmem:[%s12965_s11 + $0x1ce8] ss:$72 sps:$4 sm:$0xff]  }
 0x4fb   : > { %8886 = vmatpush1.bf16.msra.mxu0 %v12066_v51  ;;  %v12137_v51 = vld [vmem:[%s12965_s11 + $0x2044] ss:$72 sps:$4 sm:$0xff]  }
 0x4fc   : > { %8927 = vmatpush1.bf16.msra.mxu1 %v12069_v37  ;;  %8887 = vmatprep.subr.bf16.mxu0 %v12074_v61  ;;  %v12132_v37 = vld [vmem:[%s12965_s11 + $0x1740] ss:$72 sps:$4 sm:$0xff]  }
 0x4fd   : > { %8928 = vmatprep.subr.bf16.mxu1 %v12077_v54  ;;  %v12135_v61 = vld [vmem:[%s12965_s11 + $0x2040] ss:$72 sps:$4 sm:$0xff]   ;;  %v12140_v54 = vld [vmem:[%s12965_s11 + $0x16b4] ss:$72 sps:$4 sm:$0xff]  }
 0x4ff   : > { %8888 = vmatpush1.bf16.msra.mxu0 %v12072_v5  ;;  %v12143_v5 = vld [vmem:[%s12965_s11 + $0x1fb4] ss:$72 sps:$4 sm:$0xff]  }
 0x500   : > { %8929 = vmatpush1.bf16.msra.mxu1 %v12075_v56  ;;  %8889 = vmatprep.subr.bf16.mxu0 %v12080_v59  ;;  %v12138_v56 = vld [vmem:[%s12965_s11 + $0x16b0] ss:$72 sps:$4 sm:$0xff]  }
 0x501   : > { %8930 = vmatprep.subr.bf16.mxu1 %v12083_v60  ;;  %v12141_v59 = vld [vmem:[%s12965_s11 + $0x1fb0] ss:$72 sps:$4 sm:$0xff]   ;;  %v12146_v60 = vld [vmem:[%s12965_s11 + $0x42c] ss:$72 sps:$4 sm:$0xff]  }
 0x503   : > { %8890 = vmatpush1.bf16.msra.mxu0 %v12078_v6  ;;  %v12149_v6 = vld [vmem:[%s12965_s11 + $0xd2c] ss:$72 sps:$4 sm:$0xff]  }
 0x504   : > { %8931 = vmatpush1.bf16.msra.mxu1 %v12081_v62  ;;  %8891 = vmatprep.subr.bf16.mxu0 %v12086_v63  ;;  %v12144_v62 = vld [vmem:[%s12965_s11 + $0x428] ss:$72 sps:$4 sm:$0xff]  }
 0x505   : > { %8932 = vmatprep.subr.bf16.mxu1 %v12089_v0  ;;  %v12147_v63 = vld [vmem:[%s12965_s11 + $0xd28] ss:$72 sps:$4 sm:$0xff]   ;;  %v12152_v0 = vld [vmem:[%s12965_s11 + $0x39c] ss:$72 sps:$4 sm:$0xff]  }
 0x507   : > { %8892 = vmatpush1.bf16.msra.mxu0 %v12084_v10 }
 0x508   : > { %8933 = vmatpush1.bf16.msra.mxu1 %v12087_v16  ;;  %8893 = vmatprep.subr.bf16.mxu0 %v12092_v12  ;;  %v12155_v16 = vld [vmem:[%s12965_s11 + $0xc9c] ss:$72 sps:$4 sm:$0xff]  }
 0x509   : > { %8934 = vmatprep.subr.bf16.mxu1 %v12095_v15  ;;  %v12150_v15 = vld [vmem:[%s12965_s11 + $0x398] ss:$72 sps:$4 sm:$0xff]  }
 0x50b   : > { %8894 = vmatpush1.bf16.msra.mxu0 %v12090_v17 }
 0x50c   : > { %8935 = vmatpush1.bf16.msra.mxu1 %v12093_v18  ;;  %8895 = vmatprep.subr.bf16.mxu0 %v12098_v19  ;;  %v12153_v18 = vld [vmem:[%s12965_s11 + $0xc98] ss:$72 sps:$4 sm:$0xff]   ;;  %v12158_v19 = vld [vmem:[%s12965_s11 + $0x30c] ss:$72 sps:$4 sm:$0xff]  }
 0x50d   : > { %8936 = vmatprep.subr.bf16.mxu1 %v12101_v20 }
 0x50f   : > { %8896 = vmatpush2.bf16.msra.mxu0 %v12096_v50  ;;  %v12161_v50 = vld [vmem:[%s12965_s11 + $0xc0c] ss:$72 sps:$4 sm:$0xff]  }
 0x510   : > { %8937 = vmatpush2.bf16.msra.mxu1 %v12099_v24  ;;  %8897 = vmatprep.subr.bf16.mxu0 %v12104_v36 }
 0x511   : > { %8938 = vmatprep.subr.bf16.mxu1 %v12107_v26  ;;  %v12156_v26 = vld [vmem:[%s12965_s11 + $0x308] ss:$72 sps:$4 sm:$0xff]  }
 0x513   : > { %8898 = vmatpush2.bf16.msra.mxu0 %v12102_v27 }
 0x514   : > { %8939 = vmatpush2.bf16.msra.mxu1 %v12105_v28  ;;  %8899 = vmatprep.subr.bf16.mxu0 %v12110_v29  ;;  %v12159_v28 = vld [vmem:[%s12965_s11 + $0xc08] ss:$72 sps:$4 sm:$0xff]   ;;  %v12164_v29 = vld [vmem:[%s12965_s11 + $0x27c] ss:$72 sps:$4 sm:$0xff]  }
 0x515   : > { %8940 = vmatprep.subr.bf16.mxu1 %v12113_v30 }
 0x517   : > { %8900 = vmatpush2.bf16.msra.mxu0 %v12108_v49  ;;  %v12167_v49 = vld [vmem:[%s12965_s11 + $0xb7c] ss:$72 sps:$4 sm:$0xff]  }
 0x518   : > { %8941 = vmatpush2.bf16.msra.mxu1 %v12111_v33  ;;  %8901 = vmatprep.subr.bf16.mxu0 %v12116_v31  ;;  %v12162_v33 = vld [vmem:[%s12965_s11 + $0x278] ss:$72 sps:$4 sm:$0xff]  }
 0x519   : > { %8942 = vmatprep.subr.bf16.mxu1 %v12119_v25  ;;  %v12165_v31 = vld [vmem:[%s12965_s11 + $0xb78] ss:$72 sps:$4 sm:$0xff]   ;;  %v12170_v25 = vld [vmem:[%s12965_s11 + $0x1ec] ss:$72 sps:$4 sm:$0xff]  }
 0x51b   : > { %8902 = vmatpush2.bf16.msra.mxu0 %v12114_v52  ;;  %v12173_v52 = vld [vmem:[%s12965_s11 + $0xaec] ss:$72 sps:$4 sm:$0xff]  }
 0x51c   : > { %8943 = vmatpush2.bf16.msra.mxu1 %v12117_v43  ;;  %8903 = vmatprep.subr.bf16.mxu0 %v12122_v7  ;;  %v12168_v43 = vld [vmem:[%s12965_s11 + $0x1e8] ss:$72 sps:$4 sm:$0xff]  }
 0x51d   : > { %8944 = vmatprep.subr.bf16.mxu1 %v12125_v34  ;;  %v12171_v7 = vld [vmem:[%s12965_s11 + $0xae8] ss:$72 sps:$4 sm:$0xff]   ;;  %v12176_v34 = vld [vmem:[%s12965_s11 + $0x15c] ss:$72 sps:$4 sm:$0xff]  }
 0x51f   : > { %8904 = vmatpush2.bf16.msra.mxu0 %v12120_v53  ;;  %v12179_v53 = vld [vmem:[%s12965_s11 + $0xa5c] ss:$72 sps:$4 sm:$0xff]  }
 0x520   : > { %8945 = vmatpush2.bf16.msra.mxu1 %v12123_v35  ;;  %8905 = vmatprep.subr.bf16.mxu0 %v12128_v45  ;;  %v12174_v35 = vld [vmem:[%s12965_s11 + $0x158] ss:$72 sps:$4 sm:$0xff]  }
 0x521   : > { %8946 = vmatprep.subr.bf16.mxu1 %v12131_v11  ;;  %v12177_v45 = vld [vmem:[%s12965_s11 + $0xa58] ss:$72 sps:$4 sm:$0xff]   ;;  %v12182_v11 = vld [vmem:[%s12965_s11 + $0xcc] ss:$72 sps:$4 sm:$0xff]  }
 0x523   : > { %8906 = vmatpush2.bf16.msra.mxu0 %v12126_v46  ;;  %v12185_v46 = vld [vmem:[%s12965_s11 + $0x9cc] ss:$72 sps:$4 sm:$0xff]  }
 0x524   : > { %8947 = vmatpush2.bf16.msra.mxu1 %v12129_v47  ;;  %8907 = vmatprep.subr.bf16.mxu0 %v12134_v55  ;;  %v12180_v47 = vld [vmem:[%s12965_s11 + $0xc8] ss:$72 sps:$4 sm:$0xff]  }
 0x525   : > { %8948 = vmatprep.subr.bf16.mxu1 %v12137_v51  ;;  %v12183_v55 = vld [vmem:[%s12965_s11 + $0x9c8] ss:$72 sps:$4 sm:$0xff]   ;;  %v12188_v51 = vld [vmem:[%s12965_s11 + $0x3c] ss:$72 sps:$4 sm:$0xff]  }
 0x527   : > { %8908 = vmatpush2.bf16.msra.mxu0 %v12132_v37  ;;  %v12191_v37 = vld [vmem:[%s12965_s11 + $0x93c] ss:$72 sps:$4 sm:$0xff]  }
 0x528   : > { %8949 = vmatpush2.bf16.msra.mxu1 %v12135_v61  ;;  %8909 = vmatprep.subr.bf16.mxu0 %v12140_v54  ;;  %v12186_v61 = vld [vmem:[%s12965_s11 + $0x38] ss:$72 sps:$4 sm:$0xff]  }
 0x529   : > { %8950 = vmatprep.subr.bf16.mxu1 %v12143_v5  ;;  %v12189_v54 = vld [vmem:[%s12965_s11 + $0x938] ss:$72 sps:$4 sm:$0xff]   ;;  %v12194_v5 = vld [vmem:[%s12965_s11 + $0x8ac] ss:$72 sps:$4 sm:$0xff]  }
 0x52b   : > { %8910 = vmatpush2.bf16.msra.mxu0 %v12138_v56  ;;  %v12197_v56 = vld [vmem:[%s12965_s11 + $0x11ac] ss:$72 sps:$4 sm:$0xff]  }
 0x52c   : > { %8951 = vmatpush2.bf16.msra.mxu1 %v12141_v59  ;;  %8961 = vmatprep.subr.bf16.mxu0 %v12146_v60  ;;  %v12192_v59 = vld [vmem:[%s12965_s11 + $0x8a8] ss:$72 sps:$4 sm:$0xff]  }
 0x52d   : > { %9002 = vmatprep.subr.bf16.mxu1 %v12149_v6  ;;  %v12195_v60 = vld [vmem:[%s12965_s11 + $0x11a8] ss:$72 sps:$4 sm:$0xff]   ;;  %v12200_v6 = vld [vmem:[%s12965_s11 + $0x81c] ss:$72 sps:$4 sm:$0xff]  }
 0x52e   : > { %v14114_v10 = vpop.f32.mrf.mxu0  ;;  %8912 = vmatmul.mubr.bf16.vlgmr.msra.gmra.mxu0 %v13185_v44 }
 0x52f   : > { %v14118_v12 = vpop.f32.mrf.mxu1  ;;  %8953 = vmatmul.mubr.bf16.vlgmr.msra.gmra.mxu1 %v13187_v42  ;;  %8962 = vmatpush1.bf16.msra.mxu0 %v12144_v62  ;;  %v12203_v62 = vld [vmem:[%s12965_s11 + $0x111c] ss:$72 sps:$4 sm:$0xff]  }
 0x530   : > { %8993 = vmatprep.mubr.bf16.mxu0 %v13083_v1  ;;  %9003 = vmatpush1.bf16.msra.mxu1 %v12147_v63  ;;  %v14123_v17 = vpop.f32.mrf.mxu0  ;;  %v12198_v63 = vld [vmem:[%s12965_s11 + $0x818] ss:$72 sps:$4 sm:$0xff]  }
 0x531   : > { %9034 = vmatprep.mubr.bf16.mxu1 %v13085_v2  ;;  %v14128_v20 = vpop.f32.mrf.mxu1  ;;  %8963 = vmatprep.subr.bf16.mxu0 %v12152_v0  ;;  %v12201_v0 = vld [vmem:[%s12965_s11 + $0x1118] ss:$72 sps:$4 sm:$0xff]  }
 0x532   : > { %v8671_v24 = vpop.f32.mrf.mxu0  ;;  %9004 = vmatprep.subr.bf16.mxu1 %v12155_v16  ;;  %v12206_v16 = vld [vmem:[%s12965_s11 + $0x78c] ss:$72 sps:$4 sm:$0xff]  }
 0x533   : > { %v8712_v36 = vpop.f32.mrf.mxu1  ;;  %8964 = vmatpush1.bf16.msra.mxu0 %v12150_v15  ;;  %v12209_v15 = vld [vmem:[%s12965_s11 + $0x108c] ss:$72 sps:$4 sm:$0xff]   ;;  %v12215_v24 = vld [vmem:[%s12965_s11 + $0xffc] ss:$72 sps:$4 sm:$0xff]  }
 0x534   : > { %9005 = vmatpush1.bf16.msra.mxu1 %v12153_v18  ;;  %v8672_v27 = vpop.f32.mrf.mxu0  ;;  %8965 = vmatprep.subr.bf16.mxu0 %v12158_v19  ;;  %v12204_v18 = vld [vmem:[%s12965_s11 + $0x788] ss:$72 sps:$4 sm:$0xff]   ;;  %v12210_v36 = vld [vmem:[%s12965_s11 + $0x6f8] ss:$72 sps:$4 sm:$0xff]  }
 0x535   : > { %v8713_v30 = vpop.f32.mrf.mxu1  ;;  %9006 = vmatprep.subr.bf16.mxu1 %v12161_v50  ;;  %v12207_v19 = vld [vmem:[%s12965_s11 + $0x1088] ss:$72 sps:$4 sm:$0xff]   ;;  %v12212_v50 = vld [vmem:[%s12965_s11 + $0x6fc] ss:$72 sps:$4 sm:$0xff]   ;;  %v12218_v27 = vld [vmem:[%s12965_s11 + $0x66c] ss:$72 sps:$4 sm:$0xff]  }
 0x536   : > { %v12219_v30 = vld [vmem:[%s12965_s11 + $0xf68] ss:$72 sps:$4 sm:$0xff]  }
 0x537   : > { %8966 = vmatpush1.bf16.msra.mxu0 %v12156_v26  ;;  %v12213_v26 = vld [vmem:[%s12965_s11 + $0xff8] ss:$72 sps:$4 sm:$0xff]  }
 0x538   : > { %9007 = vmatpush1.bf16.msra.mxu1 %v12159_v28  ;;  %8967 = vmatprep.subr.bf16.mxu0 %v12164_v29  ;;  %v12221_v28 = vld [vmem:[%s12965_s11 + $0xf6c] ss:$72 sps:$4 sm:$0xff]   ;;  %v12216_v29 = vld [vmem:[%s12965_s11 + $0x668] ss:$72 sps:$4 sm:$0xff]  }
 0x539   : > { %9008 = vmatprep.subr.bf16.mxu1 %v12167_v49  ;;  %v12224_v49 = vld [vmem:[%s12965_s11 + $0x5dc] ss:$72 sps:$4 sm:$0xff]  }
 0x53b   : > { %8968 = vmatpush1.bf16.msra.mxu0 %v12162_v33  ;;  %v12227_v33 = vld [vmem:[%s12965_s11 + $0xedc] ss:$72 sps:$4 sm:$0xff]  }
 0x53c   : > { %9009 = vmatpush1.bf16.msra.mxu1 %v12165_v31  ;;  %8969 = vmatprep.subr.bf16.mxu0 %v12170_v25  ;;  %v12222_v31 = vld [vmem:[%s12965_s11 + $0x5d8] ss:$72 sps:$4 sm:$0xff]  }
 0x53d   : > { %9010 = vmatprep.subr.bf16.mxu1 %v12173_v52  ;;  %v12225_v25 = vld [vmem:[%s12965_s11 + $0xed8] ss:$72 sps:$4 sm:$0xff]   ;;  %v12230_v52 = vld [vmem:[%s12965_s11 + $0x54c] ss:$72 sps:$4 sm:$0xff]  }
 0x53f   : > { %8970 = vmatpush1.bf16.msra.mxu0 %v12168_v43  ;;  %v12233_v43 = vld [vmem:[%s12965_s11 + $0xe4c] ss:$72 sps:$4 sm:$0xff]  }
 0x540   : > { %9011 = vmatpush1.bf16.msra.mxu1 %v12171_v7  ;;  %8971 = vmatprep.subr.bf16.mxu0 %v12176_v34  ;;  %v12228_v7 = vld [vmem:[%s12965_s11 + $0x548] ss:$72 sps:$4 sm:$0xff]  }
 0x541   : > { %9012 = vmatprep.subr.bf16.mxu1 %v12179_v53  ;;  %v12231_v34 = vld [vmem:[%s12965_s11 + $0xe48] ss:$72 sps:$4 sm:$0xff]   ;;  %v12236_v53 = vld [vmem:[%s12965_s11 + $0x4bc] ss:$72 sps:$4 sm:$0xff]  }
 0x543   : > { %8972 = vmatpush1.bf16.msra.mxu0 %v12174_v35  ;;  %v2006_v35 = vrot.slane %v13955_v48, %v13057_v39 }
 0x544   : > { %9013 = vmatpush1.bf16.msra.mxu1 %v12177_v45  ;;  %8973 = vmatprep.subr.bf16.mxu0 %v12182_v11  ;;  %v12239_v45 = vld [vmem:[%s12965_s11 + $0xdbc] ss:$72 sps:$4 sm:$0xff]   ;;  %v2010_v11 = vrot.slane %v13955_v48, %v13063_v41  ;;  %v12243_v41 = vld [vmem:[%s12965_s11 + $0x1f28] ss:$72 sps:$4 sm:$0xff]  }
 0x545   : > { %9014 = vmatprep.subr.bf16.mxu1 %v12185_v46  ;;  %v12234_v46 = vld [vmem:[%s12965_s11 + $0x4b8] ss:$72 sps:$4 sm:$0xff]  }
 0x546   : > { %v8670_v39 = vadd.f32 %v14123_v17, %v2010_v11  ;;  %v12276_v11 = vld [vmem:[%s12965_s11 + $0x12c8] ss:$72 sps:$4 sm:$0xff]  }
 0x547   : > { %8974 = vmatpush1.bf16.msra.mxu0 %v12180_v47  ;;  %v12237_v47 = vld [vmem:[%s12965_s11 + $0xdb8] ss:$72 sps:$4 sm:$0xff]  }
 0x548   : > { %9015 = vmatpush1.bf16.msra.mxu1 %v12183_v55  ;;  %8975 = vmatprep.subr.bf16.mxu0 %v12188_v51  ;;  %v12242_v55 = vld [vmem:[%s12965_s11 + $0x162c] ss:$72 sps:$4 sm:$0xff]   ;;  %v8668_v51 = vadd.f32 %v14114_v10, %v2006_v35  ;;  %v12251_v10 = vld [vmem:[%s12965_s11 + $0x1e9c] ss:$72 sps:$4 sm:$0xff]  }
 0x549   : > { %9016 = vmatprep.subr.bf16.mxu1 %v12191_v37  ;;  %v12245_v37 = vld [vmem:[%s12965_s11 + $0x1f2c] ss:$72 sps:$4 sm:$0xff]  }
 0x54a   : > { %v8709_v48 = vadd.f32 %v14118_v12, %v8668_v51  ;;  %v12278_v35 = vld [vmem:[%s12965_s11 + $0x12cc] ss:$72 sps:$4 sm:$0xff]   ;;  %v12282_v51 = vld [vmem:[%s12965_s11 + $0x1238] ss:$72 sps:$4 sm:$0xff]  }
 0x54b   : > { %8976 = vmatpush1.bf16.msra.mxu0 %v12186_v61  ;;  %v12240_v61 = vld [vmem:[%s12965_s11 + $0x1628] ss:$72 sps:$4 sm:$0xff]  }
 0x54c   : > { %9017 = vmatpush1.bf16.msra.mxu1 %v12189_v54  ;;  %8977 = vmatprep.subr.bf16.mxu0 %v12194_v5  ;;  %v12248_v54 = vld [vmem:[%s12965_s11 + $0x159c] ss:$72 sps:$4 sm:$0xff]  }
 0x54d   : > { %9018 = vmatprep.subr.bf16.mxu1 %v12197_v56  ;;  %v8711_v56 = vadd.f32 %v14128_v20, %v8670_v39  ;;  %v12257_v20 = vld [vmem:[%s12965_s11 + $0x1e0c] ss:$72 sps:$4 sm:$0xff]  }
 0x54e   : > { %v12290_v39 = vld [vmem:[%s12965_s11 + $0x1aac] ss:$72 sps:$4 sm:$0xff]  }
 0x54f   : > { %8978 = vmatpush2.bf16.msra.mxu0 %v12192_v59 }
 0x550   : > { %9019 = vmatpush2.bf16.msra.mxu1 %v12195_v60  ;;  %8979 = vmatprep.subr.bf16.mxu0 %v12200_v6  ;;  %v12246_v60 = vld [vmem:[%s12965_s11 + $0x1598] ss:$72 sps:$4 sm:$0xff]  }
 0x551   : > { %9020 = vmatprep.subr.bf16.mxu1 %v12203_v62  ;;  %v12249_v6 = vld [vmem:[%s12965_s11 + $0x1e98] ss:$72 sps:$4 sm:$0xff]   ;;  %v12254_v62 = vld [vmem:[%s12965_s11 + $0x150c] ss:$72 sps:$4 sm:$0xff]  }
 0x553   : > { %8980 = vmatpush2.bf16.msra.mxu0 %v12198_v63 }
 0x554   : > { %9021 = vmatpush2.bf16.msra.mxu1 %v12201_v0  ;;  %8981 = vmatprep.subr.bf16.mxu0 %v12206_v16 }
 0x555   : > { %9022 = vmatprep.subr.bf16.mxu1 %v12209_v15 }
 0x557   : > { %8982 = vmatpush2.bf16.msra.mxu0 %v12204_v18 }
 0x558   : > { %9023 = vmatpush2.bf16.msra.mxu1 %v12207_v19  ;;  %8983 = vmatprep.subr.bf16.mxu0 %v12212_v50  ;;  %v12252_v50 = vld [vmem:[%s12965_s11 + $0x1508] ss:$72 sps:$4 sm:$0xff]  }
 0x559   : > { %9024 = vmatprep.subr.bf16.mxu1 %v12215_v24 }
 0x55b   : > { %8984 = vmatpush2.bf16.msra.mxu0 %v12210_v36  ;;  %v12255_v36 = vld [vmem:[%s12965_s11 + $0x1e08] ss:$72 sps:$4 sm:$0xff]  }
 0x55c   : > { %9025 = vmatpush2.bf16.msra.mxu1 %v12213_v26  ;;  %8985 = vmatprep.subr.bf16.mxu0 %v12218_v27  ;;  %v12260_v26 = vld [vmem:[%s12965_s11 + $0x147c] ss:$72 sps:$4 sm:$0xff]  }
 0x55d   : > { %9026 = vmatprep.subr.bf16.mxu1 %v12221_v28 }
 0x55f   : > { %8986 = vmatpush2.bf16.msra.mxu0 %v12216_v29  ;;  %v12263_v29 = vld [vmem:[%s12965_s11 + $0x1d7c] ss:$72 sps:$4 sm:$0xff]  }
 0x560   : > { %9027 = vmatpush2.bf16.msra.mxu1 %v12219_v30  ;;  %8987 = vmatprep.subr.bf16.mxu0 %v12224_v49  ;;  %v9349_v30 = vrot.slane %v9341_v23, %v13576_v9  ;;  %v12272_v23 = vld [vmem:[%s12965_s11 + $0x135c] ss:$72 sps:$4 sm:$0xff]  }
 0x561   : > { %9028 = vmatprep.subr.bf16.mxu1 %v12227_v33  ;;  %v12258_v33 = vld [vmem:[%s12965_s11 + $0x1478] ss:$72 sps:$4 sm:$0xff]  }
 0x563   : > { %8988 = vmatpush2.bf16.msra.mxu0 %v12222_v31  ;;  %v12261_v31 = vld [vmem:[%s12965_s11 + $0x1d78] ss:$72 sps:$4 sm:$0xff]  }
 0x564   : > { %9029 = vmatpush2.bf16.msra.mxu1 %v12225_v25  ;;  %8989 = vmatprep.subr.bf16.mxu0 %v12230_v52  ;;  %v12266_v25 = vld [vmem:[%s12965_s11 + $0x13ec] ss:$72 sps:$4 sm:$0xff]  }
 0x565   : > { %9030 = vmatprep.subr.bf16.mxu1 %v12233_v43  ;;  %v12269_v43 = vld [vmem:[%s12965_s11 + $0x1cec] ss:$72 sps:$4 sm:$0xff]  }
 0x567   : > { %8990 = vmatpush2.bf16.msra.mxu0 %v12228_v7  ;;  %v12275_v7 = vld [vmem:[%s12965_s11 + $0x1c5c] ss:$72 sps:$4 sm:$0xff]  }
 0x568   : > { %9031 = vmatpush2.bf16.msra.mxu1 %v12231_v34  ;;  %8991 = vmatprep.subr.bf16.mxu0 %v12236_v53  ;;  %v12270_v34 = vld [vmem:[%s12965_s11 + $0x1358] ss:$72 sps:$4 sm:$0xff]  }
 0x569   : > { %9032 = vmatprep.subr.bf16.mxu1 %v12239_v45  ;;  %v12273_v53 = vld [vmem:[%s12965_s11 + $0x1c58] ss:$72 sps:$4 sm:$0xff]   ;;  %v12281_v45 = vld [vmem:[%s12965_s11 + $0x1bcc] ss:$72 sps:$4 sm:$0xff]  }
 0x56b   : > { %8992 = vmatpush2.bf16.msra.mxu0 %v12234_v46  ;;  %v12279_v46 = vld [vmem:[%s12965_s11 + $0x1bc8] ss:$72 sps:$4 sm:$0xff]  }
 0x56c   : > { %9033 = vmatpush2.bf16.msra.mxu1 %v12237_v47  ;;  %9043 = vmatprep.subr.bf16.mxu0 %v12242_v55  ;;  %v12284_v47 = vld [vmem:[%s12965_s11 + $0x123c] ss:$72 sps:$4 sm:$0xff]  }
 0x56d   : > { %9084 = vmatprep.subr.bf16.mxu1 %v12245_v37  ;;  %v12287_v55 = vld [vmem:[%s12965_s11 + $0x1b3c] ss:$72 sps:$4 sm:$0xff]   ;;  %v12285_v37 = vld [vmem:[%s12965_s11 + $0x1b38] ss:$72 sps:$4 sm:$0xff]  }
 0x56e   : > { %v8749_v5 = vpop.f32.mrf.mxu0  ;;  %8994 = vmatmul.mubr.bf16.vlgmr.msra.gmra.mxu0 %v13087_v3 }
 0x56f   : > { %v8750_v17 = vadd.f32 %v8749_v5, %v8709_v48  ;;  %v8790_v59 = vpop.f32.mrf.mxu1  ;;  %9035 = vmatmul.mubr.bf16.vlgmr.msra.gmra.mxu1 %v13089_v4  ;;  %9044 = vmatpush1.bf16.msra.mxu0 %v12240_v61  ;;  %v12293_v61 = vld [vmem:[%s12965_s11 + $0x23ac] ss:$72 sps:$4 sm:$0xff]   ;;  %v12291_v48 = vld [vmem:[%s12965_s11 + $0x23a8] ss:$72 sps:$4 sm:$0xff]   ;;  %v12299_v5 = vld [vmem:[%s12965_s11 + $0x231c] ss:$72 sps:$4 sm:$0xff]  }
 0x570   : > { %9075 = vmatprep.mubr.bf16.mxu0 %v13109_v21  ;;  %9085 = vmatpush1.bf16.msra.mxu1 %v12243_v41  ;;  %v8751_v12 = vpop.f32.mrf.mxu0  ;;  %v12288_v41 = vld [vmem:[%s12965_s11 + $0x1aa8] ss:$72 sps:$4 sm:$0xff]  }
 0x571   : > { %9116 = vmatprep.mubr.bf16.mxu1 %v13111_v22  ;;  %v8752_v63 = vadd.f32 %v8751_v12, %v8711_v56  ;;  %v8792_v0 = vpop.f32.mrf.mxu1  ;;  %9045 = vmatprep.subr.bf16.mxu0 %v12248_v54  ;;  %v8791_v15 = vadd.f32 %v8790_v59, %v8750_v17  ;;  %v12296_v54 = vld [vmem:[%s12965_s11 + $0x1a1c] ss:$72 sps:$4 sm:$0xff]   ;;  %v12297_v56 = vld [vmem:[%s12965_s11 + $0x2318] ss:$72 sps:$4 sm:$0xff]   ;;  %v12302_v17 = vld [vmem:[%s12965_s11 + $0x198c] ss:$72 sps:$4 sm:$0xff]  }
 0x572   : > { %v8753_v16 = vpop.f32.mrf.mxu0  ;;  %9086 = vmatprep.subr.bf16.mxu1 %v12251_v10  ;;  %v12294_v10 = vld [vmem:[%s12965_s11 + $0x1a18] ss:$72 sps:$4 sm:$0xff]   ;;  %v12305_v59 = vld [vmem:[%s12965_s11 + $0x228c] ss:$72 sps:$4 sm:$0xff]   ;;  %v12303_v12 = vld [vmem:[%s12965_s11 + $0x2288] ss:$72 sps:$4 sm:$0xff]  }
 0x573   : > { %v8793_v18 = vadd.f32 %v8792_v0, %v8752_v63  ;;  %v8794_v19 = vpop.f32.mrf.mxu1  ;;  %9046 = vmatpush1.bf16.msra.mxu0 %v12246_v60  ;;  %v12300_v60 = vld [vmem:[%s12965_s11 + $0x1988] ss:$72 sps:$4 sm:$0xff]   ;;  %v12306_v63 = vld [vmem:[%s12965_s11 + $0x18f8] ss:$72 sps:$4 sm:$0xff]   ;;  %v12317_v16 = vld [vmem:[%s12965_s11 + $0x216c] ss:$72 sps:$4 sm:$0xff]  }
 0x574   : > { %9087 = vmatpush1.bf16.msra.mxu1 %v12249_v6  ;;  %v8754_v24 = vpop.f32.mrf.mxu0  ;;  %9047 = vmatprep.subr.bf16.mxu0 %v12254_v62  ;;  %v12308_v6 = vld [vmem:[%s12965_s11 + $0x18fc] ss:$72 sps:$4 sm:$0xff]   ;;  %v12309_v0 = vld [vmem:[%s12965_s11 + $0x21f8] ss:$72 sps:$4 sm:$0xff]  }
 0x575   : > { %v9342_v27 = vcombine.low %v8791_v15, %v8793_v18  ;;  %v8795_v28 = vpop.f32.mrf.mxu1  ;;  %9088 = vmatprep.subr.bf16.mxu1 %v12257_v20  ;;  %v12311_v62 = vld [vmem:[%s12965_s11 + $0x21fc] ss:$72 sps:$4 sm:$0xff]   ;;  %v12314_v20 = vld [vmem:[%s12965_s11 + $0x186c] ss:$72 sps:$4 sm:$0xff]   ;;  %v12312_v15 = vld [vmem:[%s12965_s11 + $0x1868] ss:$72 sps:$4 sm:$0xff]  }
 0x576   : > { %v12315_v18 = vld [vmem:[%s12965_s11 + $0x2168] ss:$72 sps:$4 sm:$0xff]   ;;  %v12320_v19 = vld [vmem:[%s12965_s11 + $0x17dc] ss:$72 sps:$4 sm:$0xff]   ;;  %v12318_v24 = vld [vmem:[%s12965_s11 + $0x17d8] ss:$72 sps:$4 sm:$0xff]  }
 0x577   : > { %v9356_v49 = vrot.slane %v9342_v27, %v13576_v9  ;;  %9048 = vmatpush1.bf16.msra.mxu0 %v12252_v50  ;;  %v12323_v50 = vld [vmem:[%s12965_s11 + $0x20dc] ss:$72 sps:$4 sm:$0xff]   ;;  %v12329_v27 = vld [vmem:[%s12965_s11 + $0x204c] ss:$72 sps:$4 sm:$0xff]   ;;  %v12324_v28 = vld [vmem:[%s12965_s11 + $0x1748] ss:$72 sps:$4 sm:$0xff]  }
 0x578   : > { %9089 = vmatpush1.bf16.msra.mxu1 %v12255_v36  ;;  %9049 = vmatprep.subr.bf16.mxu0 %v12260_v26  ;;  %v12321_v36 = vld [vmem:[%s12965_s11 + $0x20d8] ss:$72 sps:$4 sm:$0xff]   ;;  %v12326_v26 = vld [vmem:[%s12965_s11 + $0x174c] ss:$72 sps:$4 sm:$0xff]  }
 0x579   : > { %v9357_v52 = vcombine.low %v9349_v30, %v9356_v49  ;;  %9090 = vmatprep.subr.bf16.mxu1 %v12263_v29  ;;  %v12327_v29 = vld [vmem:[%s12965_s11 + $0x2048] ss:$72 sps:$4 sm:$0xff]   ;;  %v12332_v30 = vld [vmem:[%s12965_s11 + $0x16bc] ss:$72 sps:$4 sm:$0xff]  }
 0x57a   : > { %v12335_v49 = vld [vmem:[%s12965_s11 + $0x1fbc] ss:$72 sps:$4 sm:$0xff]  }
 0x57b   : > { %9390 = vst [vmem:[%s13592_s28 + $0x10] sm:$0xff] %v9357_v52  ;;  %9050 = vmatpush1.bf16.msra.mxu0 %v12258_v33  ;;  %v12330_v33 = vld [vmem:[%s12965_s11 + $0x16b8] ss:$72 sps:$4 sm:$0xff]   ;;  %v12341_v52 = vld [vmem:[%s12965_s11 + $0xd34] ss:$72 sps:$4 sm:$0xff]  }
 0x57c   : > { %9091 = vmatpush1.bf16.msra.mxu1 %v12261_v31  ;;  %9051 = vmatprep.subr.bf16.mxu0 %v12266_v25  ;;  %v12333_v31 = vld [vmem:[%s12965_s11 + $0x1fb8] ss:$72 sps:$4 sm:$0xff]   ;;  %v12338_v25 = vld [vmem:[%s12965_s11 + $0x434] ss:$72 sps:$4 sm:$0xff]  }
 0x57d   : > { %9092 = vmatprep.subr.bf16.mxu1 %v12269_v43  ;;  %v14270_v43 = vld [vmem:[%s13321_s27 + $0x8] sm:$0xff] }
 0x57f   : > { %9052 = vmatpush1.bf16.msra.mxu0 %v12264_v32  ;;  %v2014_v32 = vrot.slane %v14270_v43, %v13156_v13  ;;  %v12342_v13 = vld [vmem:[%s12965_s11 + $0x3a0] ss:$72 sps:$4 sm:$0xff]  }
 0x580   : > { %9093 = vmatpush1.bf16.msra.mxu1 %v12267_v8  ;;  %9053 = vmatprep.subr.bf16.mxu0 %v12272_v23  ;;  %v12336_v8 = vld [vmem:[%s12965_s11 + $0x430] ss:$72 sps:$4 sm:$0xff]  }
 0x581   : > { %9094 = vmatprep.subr.bf16.mxu1 %v12275_v7  ;;  %v12339_v23 = vld [vmem:[%s12965_s11 + $0xd30] ss:$72 sps:$4 sm:$0xff]   ;;  %v2018_v7 = vrot.slane %v14270_v43, %v13074_v57 }
 0x583   : > { %9054 = vmatpush1.bf16.msra.mxu0 %v12270_v34  ;;  %v12344_v34 = vld [vmem:[%s12965_s11 + $0x3a4] ss:$72 sps:$4 sm:$0xff]  }
 0x584   : > { %9095 = vmatpush1.bf16.msra.mxu1 %v12273_v53  ;;  %9055 = vmatprep.subr.bf16.mxu0 %v12278_v35  ;;  %v12347_v35 = vld [vmem:[%s12965_s11 + $0xca4] ss:$72 sps:$4 sm:$0xff]  }
 0x585   : > { %9096 = vmatprep.subr.bf16.mxu1 %v12281_v45 }
 0x587   : > { %9056 = vmatpush1.bf16.msra.mxu0 %v12276_v11 }
 0x588   : > { %9097 = vmatpush1.bf16.msra.mxu1 %v12279_v46  ;;  %9057 = vmatprep.subr.bf16.mxu0 %v12284_v47  ;;  %v12345_v47 = vld [vmem:[%s12965_s11 + $0xca0] ss:$72 sps:$4 sm:$0xff]  }
 0x589   : > { %9098 = vmatprep.subr.bf16.mxu1 %v12287_v55  ;;  %v12350_v55 = vld [vmem:[%s12965_s11 + $0x314] ss:$72 sps:$4 sm:$0xff]  }
 0x58b   : > { %9058 = vmatpush1.bf16.msra.mxu0 %v12282_v51 }
 0x58c   : > { %9099 = vmatpush1.bf16.msra.mxu1 %v12285_v37  ;;  %9059 = vmatprep.subr.bf16.mxu0 %v12290_v39  ;;  %v12353_v39 = vld [vmem:[%s12965_s11 + $0xc14] ss:$72 sps:$4 sm:$0xff]  }
 0x58d   : > { %9100 = vmatprep.subr.bf16.mxu1 %v12293_v61 }
 0x58f   : > { %9060 = vmatpush2.bf16.msra.mxu0 %v12288_v41 }
 0x590   : > { %9101 = vmatpush2.bf16.msra.mxu1 %v12291_v48  ;;  %9061 = vmatprep.subr.bf16.mxu0 %v12296_v54  ;;  %v12348_v48 = vld [vmem:[%s12965_s11 + $0x310] ss:$72 sps:$4 sm:$0xff]  }
 0x591   : > { %9102 = vmatprep.subr.bf16.mxu1 %v12299_v5  ;;  %v12356_v5 = vld [vmem:[%s12965_s11 + $0x284] ss:$72 sps:$4 sm:$0xff]  }
 0x593   : > { %9062 = vmatpush2.bf16.msra.mxu0 %v12294_v10 }
 0x594   : > { %9103 = vmatpush2.bf16.msra.mxu1 %v12297_v56  ;;  %9063 = vmatprep.subr.bf16.mxu0 %v12302_v17  ;;  %v12359_v56 = vld [vmem:[%s12965_s11 + $0xb84] ss:$72 sps:$4 sm:$0xff]   ;;  %v12354_v17 = vld [vmem:[%s12965_s11 + $0x280] ss:$72 sps:$4 sm:$0xff]  }
 0x595   : > { %9104 = vmatprep.subr.bf16.mxu1 %v12305_v59  ;;  %v12357_v59 = vld [vmem:[%s12965_s11 + $0xb80] ss:$72 sps:$4 sm:$0xff]  }
 0x597   : > { %9064 = vmatpush2.bf16.msra.mxu0 %v12300_v60  ;;  %v12362_v60 = vld [vmem:[%s12965_s11 + $0x1f4] ss:$72 sps:$4 sm:$0xff]  }
 0x598   : > { %9105 = vmatpush2.bf16.msra.mxu1 %v12303_v12  ;;  %9065 = vmatprep.subr.bf16.mxu0 %v12308_v6  ;;  %v12365_v12 = vld [vmem:[%s12965_s11 + $0xaf4] ss:$72 sps:$4 sm:$0xff]   ;;  %v12360_v6 = vld [vmem:[%s12965_s11 + $0x1f0] ss:$72 sps:$4 sm:$0xff]  }
 0x599   : > { %9106 = vmatprep.subr.bf16.mxu1 %v12311_v62  ;;  %v12363_v62 = vld [vmem:[%s12965_s11 + $0xaf0] ss:$72 sps:$4 sm:$0xff]  }
 0x59b   : > { %9066 = vmatpush2.bf16.msra.mxu0 %v12306_v63  ;;  %v12368_v63 = vld [vmem:[%s12965_s11 + $0x164] ss:$72 sps:$4 sm:$0xff]  }
 0x59c   : > { %9107 = vmatpush2.bf16.msra.mxu1 %v12309_v0  ;;  %9067 = vmatprep.subr.bf16.mxu0 %v12314_v20  ;;  %v12371_v0 = vld [vmem:[%s12965_s11 + $0xa64] ss:$72 sps:$4 sm:$0xff]   ;;  %v12366_v20 = vld [vmem:[%s12965_s11 + $0x160] ss:$72 sps:$4 sm:$0xff]  }
 0x59d   : > { %9108 = vmatprep.subr.bf16.mxu1 %v12317_v16  ;;  %v12369_v16 = vld [vmem:[%s12965_s11 + $0xa60] ss:$72 sps:$4 sm:$0xff]  }
 0x59f   : > { %9068 = vmatpush2.bf16.msra.mxu0 %v12312_v15  ;;  %v12374_v15 = vld [vmem:[%s12965_s11 + $0xd4] ss:$72 sps:$4 sm:$0xff]  }
 0x5a0   : > { %9109 = vmatpush2.bf16.msra.mxu1 %v12315_v18  ;;  %9069 = vmatprep.subr.bf16.mxu0 %v12320_v19  ;;  %v12377_v18 = vld [vmem:[%s12965_s11 + $0x9d4] ss:$72 sps:$4 sm:$0xff]   ;;  %v12372_v19 = vld [vmem:[%s12965_s11 + $0xd0] ss:$72 sps:$4 sm:$0xff]  }
 0x5a1   : > { %9110 = vmatprep.subr.bf16.mxu1 %v12323_v50  ;;  %v12375_v50 = vld [vmem:[%s12965_s11 + $0x9d0] ss:$72 sps:$4 sm:$0xff]  }
 0x5a3   : > { %9070 = vmatpush2.bf16.msra.mxu0 %v12318_v24  ;;  %v12380_v24 = vld [vmem:[%s12965_s11 + $0x44] ss:$72 sps:$4 sm:$0xff]  }
 0x5a4   : > { %9111 = vmatpush2.bf16.msra.mxu1 %v12321_v36  ;;  %9071 = vmatprep.subr.bf16.mxu0 %v12326_v26  ;;  %v12383_v36 = vld [vmem:[%s12965_s11 + $0x944] ss:$72 sps:$4 sm:$0xff]   ;;  %v12378_v26 = vld [vmem:[%s12965_s11 + $0x40] ss:$72 sps:$4 sm:$0xff]  }
 0x5a5   : > { %9112 = vmatprep.subr.bf16.mxu1 %v12329_v27  ;;  %v12381_v27 = vld [vmem:[%s12965_s11 + $0x940] ss:$72 sps:$4 sm:$0xff]  }
 0x5a7   : > { %9072 = vmatpush2.bf16.msra.mxu0 %v12324_v28  ;;  %v12386_v28 = vld [vmem:[%s12965_s11 + $0x8b4] ss:$72 sps:$4 sm:$0xff]  }
 0x5a8   : > { %9113 = vmatpush2.bf16.msra.mxu1 %v12327_v29  ;;  %9073 = vmatprep.subr.bf16.mxu0 %v12332_v30  ;;  %v12389_v29 = vld [vmem:[%s12965_s11 + $0x11b4] ss:$72 sps:$4 sm:$0xff]   ;;  %v12384_v30 = vld [vmem:[%s12965_s11 + $0x8b0] ss:$72 sps:$4 sm:$0xff]  }
 0x5a9   : > { %9114 = vmatprep.subr.bf16.mxu1 %v12335_v49  ;;  %v12387_v49 = vld [vmem:[%s12965_s11 + $0x11b0] ss:$72 sps:$4 sm:$0xff]  }
 0x5ab   : > { %9074 = vmatpush2.bf16.msra.mxu0 %v12330_v33  ;;  %v12392_v33 = vld [vmem:[%s12965_s11 + $0x824] ss:$72 sps:$4 sm:$0xff]  }
 0x5ac   : > { %9115 = vmatpush2.bf16.msra.mxu1 %v12333_v31  ;;  %9125 = vmatprep.subr.bf16.mxu0 %v12338_v25  ;;  %v12395_v31 = vld [vmem:[%s12965_s11 + $0x1124] ss:$72 sps:$4 sm:$0xff]   ;;  %v12390_v25 = vld [vmem:[%s12965_s11 + $0x820] ss:$72 sps:$4 sm:$0xff]  }
 0x5ad   : > { %9166 = vmatprep.subr.bf16.mxu1 %v12341_v52  ;;  %v12393_v52 = vld [vmem:[%s12965_s11 + $0x1120] ss:$72 sps:$4 sm:$0xff]  }
 0x5ae   : > { %v8831_v53 = vpop.f32.mrf.mxu0  ;;  %9076 = vmatmul.mubr.bf16.vlgmr.msra.gmra.mxu0 %v13185_v44 }
 0x5af   : > { %v8832_v45 = vadd.f32 %v8831_v53, %v2014_v32  ;;  %v8872_v11 = vpop.f32.mrf.mxu1  ;;  %9117 = vmatmul.mubr.bf16.vlgmr.msra.gmra.mxu1 %v13187_v42  ;;  %9126 = vmatpush1.bf16.msra.mxu0 %v12336_v8  ;;  %v12398_v32 = vld [vmem:[%s12965_s11 + $0x794] ss:$72 sps:$4 sm:$0xff]   ;;  %v12407_v53 = vld [vmem:[%s12965_s11 + $0x1004] ss:$72 sps:$4 sm:$0xff]  }
 0x5b0   : > { %9157 = vmatprep.mubr.bf16.mxu0 %v13083_v1  ;;  %9167 = vmatpush1.bf16.msra.mxu1 %v12339_v23  ;;  %v8833_v46 = vpop.f32.mrf.mxu0  ;;  %v12401_v8 = vld [vmem:[%s12965_s11 + $0x1094] ss:$72 sps:$4 sm:$0xff]   ;;  %v12396_v23 = vld [vmem:[%s12965_s11 + $0x790] ss:$72 sps:$4 sm:$0xff]  }
 0x5b1   : > { %v14286_v57 = vadd.f32 %v8872_v11, %v8832_v45  ;;  %9198 = vmatprep.mubr.bf16.mxu1 %v13085_v2  ;;  %v8834_v51 = vadd.f32 %v8833_v46, %v2018_v7  ;;  %v8874_v37 = vpop.f32.mrf.mxu1  ;;  %9127 = vmatprep.subr.bf16.mxu0 %v12344_v34  ;;  %v12351_v2 = vld [vmem:[%s12965_s11 + $0xc10] ss:$72 sps:$4 sm:$0xff]   ;;  %v12404_v34 = vld [vmem:[%s12965_s11 + $0x704] ss:$72 sps:$4 sm:$0xff]   ;;  %v12405_v45 = vld [vmem:[%s12965_s11 + $0x1000] ss:$72 sps:$4 sm:$0xff]  }
 0x5b2   : > { %v8835_v61 = vpop.f32.mrf.mxu0  ;;  %9168 = vmatprep.subr.bf16.mxu1 %v12347_v35  ;;  %v12399_v7 = vld [vmem:[%s12965_s11 + $0x1090] ss:$72 sps:$4 sm:$0xff]   ;;  %v12402_v35 = vld [vmem:[%s12965_s11 + $0x700] ss:$72 sps:$4 sm:$0xff]   ;;  %v12410_v11 = vld [vmem:[%s12965_s11 + $0x674] ss:$72 sps:$4 sm:$0xff]  }
 0x5b3   : > { %v14290_v1 = vadd.f32 %v8874_v37, %v8834_v51  ;;  %v8876_v41 = vpop.f32.mrf.mxu1  ;;  %9128 = vmatpush1.bf16.msra.mxu0 %v12342_v13  ;;  %v12413_v13 = vld [vmem:[%s12965_s11 + $0xf74] ss:$72 sps:$4 sm:$0xff]   ;;  %v12408_v46 = vld [vmem:[%s12965_s11 + $0x670] ss:$72 sps:$4 sm:$0xff]   ;;  %v12419_v51 = vld [vmem:[%s12965_s11 + $0xee4] ss:$72 sps:$4 sm:$0xff]  }
 0x5b4   : > { %9169 = vmatpush1.bf16.msra.mxu1 %v12345_v47  ;;  %v8836_v54 = vpop.f32.mrf.mxu0  ;;  %9129 = vmatprep.subr.bf16.mxu0 %v12350_v55  ;;  %v12411_v47 = vld [vmem:[%s12965_s11 + $0xf70] ss:$72 sps:$4 sm:$0xff]   ;;  %v12416_v55 = vld [vmem:[%s12965_s11 + $0x5e4] ss:$72 sps:$4 sm:$0xff]   ;;  %v12414_v37 = vld [vmem:[%s12965_s11 + $0x5e0] ss:$72 sps:$4 sm:$0xff]  }
 0x5b5   : > { %v8877_v10 = vpop.f32.mrf.mxu1  ;;  %9170 = vmatprep.subr.bf16.mxu1 %v12353_v39  ;;  %v12417_v39 = vld [vmem:[%s12965_s11 + $0xee0] ss:$72 sps:$4 sm:$0xff]   ;;  %v12422_v61 = vld [vmem:[%s12965_s11 + $0x554] ss:$72 sps:$4 sm:$0xff]   ;;  %v12423_v54 = vld [vmem:[%s12965_s11 + $0xe50] ss:$72 sps:$4 sm:$0xff]  }
 0x5b6   : > { %v12425_v41 = vld [vmem:[%s12965_s11 + $0xe54] ss:$72 sps:$4 sm:$0xff]   ;;  %v12426_v10 = vld [vmem:[%s12965_s11 + $0x4c0] ss:$72 sps:$4 sm:$0xff]  }
 0x5b7   : > { %9130 = vmatpush1.bf16.msra.mxu0 %v12348_v48  ;;  %v12420_v48 = vld [vmem:[%s12965_s11 + $0x550] ss:$72 sps:$4 sm:$0xff]  }
 0x5b8   : > { %9171 = vmatpush1.bf16.msra.mxu1 %v12351_v2  ;;  %9131 = vmatprep.subr.bf16.mxu0 %v12356_v5  ;;  %v12428_v2 = vld [vmem:[%s12965_s11 + $0x4c4] ss:$72 sps:$4 sm:$0xff]  }
 0x5b9   : > { %9172 = vmatprep.subr.bf16.mxu1 %v12359_v56  ;;  %v12431_v5 = vld [vmem:[%s12965_s11 + $0xdc4] ss:$72 sps:$4 sm:$0xff]   ;;  %v12429_v56 = vld [vmem:[%s12965_s11 + $0xdc0] ss:$72 sps:$4 sm:$0xff]  }
 0x5bb   : > { %9132 = vmatpush1.bf16.msra.mxu0 %v12354_v17  ;;  %v12434_v17 = vld [vmem:[%s12965_s11 + $0x1634] ss:$72 sps:$4 sm:$0xff]  }
 0x5bc   : > { %9173 = vmatpush1.bf16.msra.mxu1 %v12357_v59  ;;  %9133 = vmatprep.subr.bf16.mxu0 %v12362_v60  ;;  %v12437_v59 = vld [vmem:[%s12965_s11 + $0x1f34] ss:$72 sps:$4 sm:$0xff]   ;;  %v12432_v60 = vld [vmem:[%s12965_s11 + $0x1630] ss:$72 sps:$4 sm:$0xff]  }
 0x5bd   : > { %9174 = vmatprep.subr.bf16.mxu1 %v12365_v12  ;;  %v12435_v12 = vld [vmem:[%s12965_s11 + $0x1f30] ss:$72 sps:$4 sm:$0xff]  }
 0x5bf   : > { %9134 = vmatpush1.bf16.msra.mxu0 %v12360_v6  ;;  %v12440_v6 = vld [vmem:[%s12965_s11 + $0x15a4] ss:$72 sps:$4 sm:$0xff]  }
 0x5c0   : > { %9175 = vmatpush1.bf16.msra.mxu1 %v12363_v62  ;;  %9135 = vmatprep.subr.bf16.mxu0 %v12368_v63  ;;  %v12443_v63 = vld [vmem:[%s12965_s11 + $0x1ea4] ss:$72 sps:$4 sm:$0xff]  }
 0x5c1   : > { %9176 = vmatprep.subr.bf16.mxu1 %v12371_v0 }
 0x5c3   : > { %9136 = vmatpush1.bf16.msra.mxu0 %v12366_v20 }
 0x5c4   : > { %9177 = vmatpush1.bf16.msra.mxu1 %v12369_v16  ;;  %9137 = vmatprep.subr.bf16.mxu0 %v12374_v15  ;;  %v12438_v16 = vld [vmem:[%s12965_s11 + $0x15a0] ss:$72 sps:$4 sm:$0xff]  }
 0x5c5   : > { %9178 = vmatprep.subr.bf16.mxu1 %v12377_v18  ;;  %v12441_v18 = vld [vmem:[%s12965_s11 + $0x1ea0] ss:$72 sps:$4 sm:$0xff]  }
 0x5c7   : > { %9138 = vmatpush1.bf16.msra.mxu0 %v12372_v19  ;;  %v12446_v19 = vld [vmem:[%s12965_s11 + $0x1514] ss:$72 sps:$4 sm:$0xff]  }
 0x5c8   : > { %9179 = vmatpush1.bf16.msra.mxu1 %v12375_v50  ;;  %9139 = vmatprep.subr.bf16.mxu0 %v12380_v24 }
 0x5c9   : > { %9180 = vmatprep.subr.bf16.mxu1 %v12383_v36 }
 0x5cb   : > { %9140 = vmatpush1.bf16.msra.mxu0 %v12378_v26  ;;  %v12444_v26 = vld [vmem:[%s12965_s11 + $0x1510] ss:$72 sps:$4 sm:$0xff]  }
 0x5cc   : > { %9181 = vmatpush1.bf16.msra.mxu1 %v12381_v27  ;;  %9141 = vmatprep.subr.bf16.mxu0 %v12386_v28 }
 0x5cd   : > { %9182 = vmatprep.subr.bf16.mxu1 %v12389_v29 }
 0x5cf   : > { %9142 = vmatpush2.bf16.msra.mxu0 %v12384_v30  ;;  %v12455_v30 = vld [vmem:[%s12965_s11 + $0x1d84] ss:$72 sps:$4 sm:$0xff]  }
 0x5d0   : > { %9183 = vmatpush2.bf16.msra.mxu1 %v12387_v49  ;;  %9143 = vmatprep.subr.bf16.mxu0 %v12392_v33  ;;  %v12450_v49 = vld [vmem:[%s12965_s11 + $0x1480] ss:$72 sps:$4 sm:$0xff]  }
 0x5d1   : > { %9184 = vmatprep.subr.bf16.mxu1 %v12395_v31  ;;  %v12453_v33 = vld [vmem:[%s12965_s11 + $0x1d80] ss:$72 sps:$4 sm:$0xff]   ;;  %v12458_v31 = vld [vmem:[%s12965_s11 + $0x13f4] ss:$72 sps:$4 sm:$0xff]  }
 0x5d3   : > { %9144 = vmatpush2.bf16.msra.mxu0 %v12390_v25  ;;  %v12461_v25 = vld [vmem:[%s12965_s11 + $0x1cf4] ss:$72 sps:$4 sm:$0xff]  }
 0x5d4   : > { %9185 = vmatpush2.bf16.msra.mxu1 %v12393_v52  ;;  %9145 = vmatprep.subr.bf16.mxu0 %v12398_v32  ;;  %v12456_v52 = vld [vmem:[%s12965_s11 + $0x13f0] ss:$72 sps:$4 sm:$0xff]  }
 0x5d5   : > { %9186 = vmatprep.subr.bf16.mxu1 %v12401_v8  ;;  %v12459_v32 = vld [vmem:[%s12965_s11 + $0x1cf0] ss:$72 sps:$4 sm:$0xff]   ;;  %v12464_v8 = vld [vmem:[%s12965_s11 + $0x1364] ss:$72 sps:$4 sm:$0xff]  }
 0x5d7   : > { %9146 = vmatpush2.bf16.msra.mxu0 %v12396_v23  ;;  %v12467_v23 = vld [vmem:[%s12965_s11 + $0x1c64] ss:$72 sps:$4 sm:$0xff]  }
 0x5d8   : > { %9187 = vmatpush2.bf16.msra.mxu1 %v12399_v7  ;;  %9147 = vmatprep.subr.bf16.mxu0 %v12404_v34  ;;  %v12462_v7 = vld [vmem:[%s12965_s11 + $0x1360] ss:$72 sps:$4 sm:$0xff]  }
 0x5d9   : > { %9188 = vmatprep.subr.bf16.mxu1 %v12407_v53  ;;  %v12465_v34 = vld [vmem:[%s12965_s11 + $0x1c60] ss:$72 sps:$4 sm:$0xff]   ;;  %v12470_v53 = vld [vmem:[%s12965_s11 + $0x12d4] ss:$72 sps:$4 sm:$0xff]  }
 0x5db   : > { %9148 = vmatpush2.bf16.msra.mxu0 %v12402_v35  ;;  %v12473_v35 = vld [vmem:[%s12965_s11 + $0x1bd4] ss:$72 sps:$4 sm:$0xff]  }
 0x5dc   : > { %9189 = vmatpush2.bf16.msra.mxu1 %v12405_v45  ;;  %9149 = vmatprep.subr.bf16.mxu0 %v12410_v11  ;;  %v12468_v45 = vld [vmem:[%s12965_s11 + $0x12d0] ss:$72 sps:$4 sm:$0xff]  }
 0x5dd   : > { %9190 = vmatprep.subr.bf16.mxu1 %v12413_v13  ;;  %v12471_v11 = vld [vmem:[%s12965_s11 + $0x1bd0] ss:$72 sps:$4 sm:$0xff]   ;;  %v12476_v13 = vld [vmem:[%s12965_s11 + $0x1244] ss:$72 sps:$4 sm:$0xff]  }
 0x5df   : > { %9150 = vmatpush2.bf16.msra.mxu0 %v12408_v46  ;;  %v12479_v46 = vld [vmem:[%s12965_s11 + $0x1b44] ss:$72 sps:$4 sm:$0xff]  }
 0x5e0   : > { %9191 = vmatpush2.bf16.msra.mxu1 %v12411_v47  ;;  %9151 = vmatprep.subr.bf16.mxu0 %v12416_v55  ;;  %v12474_v47 = vld [vmem:[%s12965_s11 + $0x1240] ss:$72 sps:$4 sm:$0xff]  }
 0x5e1   : > { %9192 = vmatprep.subr.bf16.mxu1 %v12419_v51  ;;  %v12477_v55 = vld [vmem:[%s12965_s11 + $0x1b40] ss:$72 sps:$4 sm:$0xff]   ;;  %v12482_v51 = vld [vmem:[%s12965_s11 + $0x1ab4] ss:$72 sps:$4 sm:$0xff]  }
 0x5e3   : > { %9152 = vmatpush2.bf16.msra.mxu0 %v12414_v37  ;;  %v12485_v37 = vld [vmem:[%s12965_s11 + $0x23b4] ss:$72 sps:$4 sm:$0xff]  }
 0x5e4   : > { %9193 = vmatpush2.bf16.msra.mxu1 %v12417_v39  ;;  %9153 = vmatprep.subr.bf16.mxu0 %v12422_v61  ;;  %v12480_v39 = vld [vmem:[%s12965_s11 + $0x1ab0] ss:$72 sps:$4 sm:$0xff]  }
 0x5e5   : > { %9194 = vmatprep.subr.bf16.mxu1 %v12425_v41  ;;  %v12483_v61 = vld [vmem:[%s12965_s11 + $0x23b0] ss:$72 sps:$4 sm:$0xff]   ;;  %v12488_v41 = vld [vmem:[%s12965_s11 + $0x1a24] ss:$72 sps:$4 sm:$0xff]  }
 0x5e7   : > { %9154 = vmatpush2.bf16.msra.mxu0 %v12420_v48  ;;  %v12491_v48 = vld [vmem:[%s12965_s11 + $0x2324] ss:$72 sps:$4 sm:$0xff]  }
 0x5e8   : > { %9195 = vmatpush2.bf16.msra.mxu1 %v12423_v54  ;;  %9155 = vmatprep.subr.bf16.mxu0 %v12428_v2  ;;  %v12486_v54 = vld [vmem:[%s12965_s11 + $0x1a20] ss:$72 sps:$4 sm:$0xff]  }
 0x5e9   : > { %9196 = vmatprep.subr.bf16.mxu1 %v12431_v5  ;;  %v12489_v2 = vld [vmem:[%s12965_s11 + $0x2320] ss:$72 sps:$4 sm:$0xff]   ;;  %v12494_v5 = vld [vmem:[%s12965_s11 + $0x1994] ss:$72 sps:$4 sm:$0xff]  }
 0x5eb   : > { %9156 = vmatpush2.bf16.msra.mxu0 %v12426_v10  ;;  %v12497_v10 = vld [vmem:[%s12965_s11 + $0x2294] ss:$72 sps:$4 sm:$0xff]  }
 0x5ec   : > { %9197 = vmatpush2.bf16.msra.mxu1 %v12429_v56  ;;  %9207 = vmatprep.subr.bf16.mxu0 %v12434_v17  ;;  %v12492_v56 = vld [vmem:[%s12965_s11 + $0x1990] ss:$72 sps:$4 sm:$0xff]  }
 0x5ed   : > { %9248 = vmatprep.subr.bf16.mxu1 %v12437_v59  ;;  %v12495_v17 = vld [vmem:[%s12965_s11 + $0x2290] ss:$72 sps:$4 sm:$0xff]   ;;  %v12500_v59 = vld [vmem:[%s12965_s11 + $0x1904] ss:$72 sps:$4 sm:$0xff]  }
 0x5ee   : > { %v8913_v62 = vpop.f32.mrf.mxu0  ;;  %9158 = vmatmul.mubr.bf16.vlgmr.msra.gmra.mxu0 %v13087_v3 }
 0x5ef   : > { %v8914_v0 = vadd.f32 %v8913_v62, %v14286_v57  ;;  %v8954_v20 = vpop.f32.mrf.mxu1  ;;  %9199 = vmatmul.mubr.bf16.vlgmr.msra.gmra.mxu1 %v13089_v4  ;;  %9208 = vmatpush1.bf16.msra.mxu0 %v12432_v60  ;;  %v12449_v4 = vld [vmem:[%s12965_s11 + $0x1e14] ss:$72 sps:$4 sm:$0xff]   ;;  %v12503_v60 = vld [vmem:[%s12965_s11 + $0x2204] ss:$72 sps:$4 sm:$0xff]  }
 0x5f0   : > { %9239 = vmatprep.mubr.bf16.mxu0 %v13109_v21  ;;  %9249 = vmatpush1.bf16.msra.mxu1 %v12435_v12  ;;  %v8915_v15 = vpop.f32.mrf.mxu0  ;;  %v12498_v12 = vld [vmem:[%s12965_s11 + $0x1900] ss:$72 sps:$4 sm:$0xff]   ;;  %v12506_v62 = vld [vmem:[%s12965_s11 + $0x1874] ss:$72 sps:$4 sm:$0xff]  }
 0x5f1   : > { %v14359_v50 = vadd.f32 %v8954_v20, %v8914_v0  ;;  %9280 = vmatprep.mubr.bf16.mxu1 %v13111_v22  ;;  %v8916_v3 = vadd.f32 %v8915_v15, %v14290_v1  ;;  %v8956_v57 = vpop.f32.mrf.mxu1  ;;  %9209 = vmatprep.subr.bf16.mxu0 %v12440_v6  ;;  %v12447_v22 = vld [vmem:[%s12965_s11 + $0x1e10] ss:$72 sps:$4 sm:$0xff]   ;;  %v12452_v1 = vld [vmem:[%s12965_s11 + $0x1484] ss:$72 sps:$4 sm:$0xff]   ;;  %v12501_v6 = vld [vmem:[%s12965_s11 + $0x2200] ss:$72 sps:$4 sm:$0xff]  }
 0x5f2   : > { %v8917_v24 = vpop.f32.mrf.mxu0  ;;  %9250 = vmatprep.subr.bf16.mxu1 %v12443_v63  ;;  %v12509_v63 = vld [vmem:[%s12965_s11 + $0x2174] ss:$72 sps:$4 sm:$0xff]   ;;  %v12504_v0 = vld [vmem:[%s12965_s11 + $0x1870] ss:$72 sps:$4 sm:$0xff]   ;;  %v12515_v15 = vld [vmem:[%s12965_s11 + $0x20e4] ss:$72 sps:$4 sm:$0xff]  }
 0x5f3   : > { %v14364_v21 = vadd.f32 %v8956_v57, %v8916_v3  ;;  %v8958_v36 = vpop.f32.mrf.mxu1  ;;  %9210 = vmatpush1.bf16.msra.mxu0 %v12438_v16  ;;  %v12507_v20 = vld [vmem:[%s12965_s11 + $0x2170] ss:$72 sps:$4 sm:$0xff]   ;;  %v12512_v16 = vld [vmem:[%s12965_s11 + $0x17e4] ss:$72 sps:$4 sm:$0xff]   ;;  %v12518_v3 = vld [vmem:[%s12965_s11 + $0x1754] ss:$72 sps:$4 sm:$0xff]  }
 0x5f4   : > { %9251 = vmatpush1.bf16.msra.mxu1 %v12441_v18  ;;  %v8918_v27 = vpop.f32.mrf.mxu0  ;;  %9211 = vmatprep.subr.bf16.mxu0 %v12446_v19  ;;  %v12510_v18 = vld [vmem:[%s12965_s11 + $0x17e0] ss:$72 sps:$4 sm:$0xff]   ;;  %v12521_v57 = vld [vmem:[%s12965_s11 + $0x2054] ss:$72 sps:$4 sm:$0xff]   ;;  %v12519_v24 = vld [vmem:[%s12965_s11 + $0x2050] ss:$72 sps:$4 sm:$0xff]  }
 0x5f5   : > { %v9358_v28 = vcombine.low %v14359_v50, %v14364_v21  ;;  %v8959_v29 = vpop.f32.mrf.mxu1  ;;  %9252 = vmatprep.subr.bf16.mxu1 %v12449_v4  ;;  %v12513_v19 = vld [vmem:[%s12965_s11 + $0x20e0] ss:$72 sps:$4 sm:$0xff]   ;;  %v12516_v4 = vld [vmem:[%s12965_s11 + $0x1750] ss:$72 sps:$4 sm:$0xff]   ;;  %v12524_v36 = vld [vmem:[%s12965_s11 + $0x16c4] ss:$72 sps:$4 sm:$0xff]  }
 0x5f6   : > { %v12522_v27 = vld [vmem:[%s12965_s11 + $0x16c0] ss:$72 sps:$4 sm:$0xff]  }
 0x5f7   : > { %9212 = vmatpush1.bf16.msra.mxu0 %v12444_v26  ;;  %v12527_v26 = vld [vmem:[%s12965_s11 + $0x1fc4] ss:$72 sps:$4 sm:$0xff]  }
 0x5f8   : > { %9253 = vmatpush1.bf16.msra.mxu1 %v12447_v22  ;;  %9213 = vmatprep.subr.bf16.mxu0 %v12452_v1  ;;  %v12525_v22 = vld [vmem:[%s12965_s11 + $0x1fc0] ss:$72 sps:$4 sm:$0xff]  }
 0x5f9   : > { %9254 = vmatprep.subr.bf16.mxu1 %v12455_v30 }
 0x5fb   : > { %9214 = vmatpush1.bf16.msra.mxu0 %v12450_v49 }
 0x5fc   : > { %9255 = vmatpush1.bf16.msra.mxu1 %v12453_v33  ;;  %9215 = vmatprep.subr.bf16.mxu0 %v12458_v31 }
 0x5fd   : > { %9256 = vmatprep.subr.bf16.mxu1 %v12461_v25 }
 0x5ff   : > { %9216 = vmatpush1.bf16.msra.mxu0 %v12456_v52 }
 0x600   : > { %9257 = vmatpush1.bf16.msra.mxu1 %v12459_v32  ;;  %9217 = vmatprep.subr.bf16.mxu0 %v12464_v8  ;;  %v2022_v32 = vrot.slane %v14270_v43, %v13159_v14  ;;  %v2026_v8 = vrot.slane %v14270_v43, %v13077_v58  ;;  %v9366_v58 = vrot.slane %v9358_v28, %v13576_v9 }
 0x601   : > { %9258 = vmatprep.subr.bf16.mxu1 %v12467_v23 }
 0x603   : > { %9218 = vmatpush1.bf16.msra.mxu0 %v12462_v7 }
 0x604   : > { %9259 = vmatpush1.bf16.msra.mxu1 %v12465_v34  ;;  %9219 = vmatprep.subr.bf16.mxu0 %v12470_v53 }
 0x605   : > { %9260 = vmatprep.subr.bf16.mxu1 %v12473_v35 }
 0x607   : > { %9220 = vmatpush1.bf16.msra.mxu0 %v12468_v45 }
 0x608   : > { %9261 = vmatpush1.bf16.msra.mxu1 %v12471_v11  ;;  %9221 = vmatprep.subr.bf16.mxu0 %v12476_v13 }
 0x609   : > { %9262 = vmatprep.subr.bf16.mxu1 %v12479_v46 }
 0x60b   : > { %9222 = vmatpush1.bf16.msra.mxu0 %v12474_v47 }
 0x60c   : > { %9263 = vmatpush1.bf16.msra.mxu1 %v12477_v55  ;;  %9223 = vmatprep.subr.bf16.mxu0 %v12482_v51 }
 0x60d   : > { %9264 = vmatprep.subr.bf16.mxu1 %v12485_v37 }
 0x60f   : > { %9224 = vmatpush2.bf16.msra.mxu0 %v12480_v39 }
 0x610   : > { %9265 = vmatpush2.bf16.msra.mxu1 %v12483_v61  ;;  %9225 = vmatprep.subr.bf16.mxu0 %v12488_v41 }
 0x611   : > { %9266 = vmatprep.subr.bf16.mxu1 %v12491_v48 }
 0x613   : > { %9226 = vmatpush2.bf16.msra.mxu0 %v12486_v54 }
 0x614   : > { %9267 = vmatpush2.bf16.msra.mxu1 %v12489_v2  ;;  %9227 = vmatprep.subr.bf16.mxu0 %v12494_v5 }
 0x615   : > { %9268 = vmatprep.subr.bf16.mxu1 %v12497_v10 }
 0x617   : > { %9228 = vmatpush2.bf16.msra.mxu0 %v12492_v56 }
 0x618   : > { %9269 = vmatpush2.bf16.msra.mxu1 %v12495_v17  ;;  %9229 = vmatprep.subr.bf16.mxu0 %v12500_v59  ;;  %v1959_v59 = vld [vmem:[%s13321_s27 + $0x10] sm:$0x3] }
 0x619   : > { %9270 = vmatprep.subr.bf16.mxu1 %v12503_v60  ;;  %v2030_v60 = vrot.slane %v1959_v59, %v13054_v38  ;;  %v2034_v50 = vrot.slane %v1959_v59, %v13060_v40 }
 0x61b   : > { %9230 = vmatpush2.bf16.msra.mxu0 %v12498_v12 }
 0x61c   : > { %9271 = vmatpush2.bf16.msra.mxu1 %v12501_v6  ;;  %9231 = vmatprep.subr.bf16.mxu0 %v12506_v62 }
 0x61d   : > { %9272 = vmatprep.subr.bf16.mxu1 %v12509_v63 }
 0x61f   : > { %9232 = vmatpush2.bf16.msra.mxu0 %v12504_v0 }
 0x620   : > { %9273 = vmatpush2.bf16.msra.mxu1 %v12507_v20  ;;  %9233 = vmatprep.subr.bf16.mxu0 %v12512_v16 }
 0x621   : > { %9274 = vmatprep.subr.bf16.mxu1 %v12515_v15 }
 0x623   : > { %9234 = vmatpush2.bf16.msra.mxu0 %v12510_v18 }
 0x624   : > { %9275 = vmatpush2.bf16.msra.mxu1 %v12513_v19  ;;  %9235 = vmatprep.subr.bf16.mxu0 %v12518_v3 }
 0x625   : > { %9276 = vmatprep.subr.bf16.mxu1 %v12521_v57 }
 0x627   : > { %9236 = vmatpush2.bf16.msra.mxu0 %v12516_v4 }
 0x628   : > { %9277 = vmatpush2.bf16.msra.mxu1 %v12519_v24  ;;  %9237 = vmatprep.subr.bf16.mxu0 %v12524_v36 }
 0x629   : > { %9278 = vmatprep.subr.bf16.mxu1 %v12527_v26 }
 0x62b   : > { %9238 = vmatpush2.bf16.msra.mxu0 %v12522_v27 }
 0x62c   : > { %9279 = vmatpush2.bf16.msra.mxu1 %v12525_v22 }
 0x62e   : > { %v8995_v1 = vpop.f32.mrf.mxu0  ;;  %9240 = vmatmul.mubr.bf16.vlgmr.msra.gmra.mxu0 %v13185_v44 }
 0x62f   : > { %v9036_v29 = vpop.f32.mrf.mxu1  ;;  %9281 = vmatmul.mubr.bf16.vlgmr.msra.gmra.mxu1 %v13187_v42  ;;  %v8996_v23 = vadd.f32 %v8995_v1, %v2022_v32 }
 0x630   : > { %v8997_v30 = vpop.f32.mrf.mxu0 }
 0x631   : > { %v9038_v49 = vpop.f32.mrf.mxu1  ;;  %v8998_v7 = vadd.f32 %v8997_v30, %v2026_v8  ;;  %v9037_v34 = vadd.f32 %v9036_v29, %v8996_v23 }
 0x632   : > { %v8999_v33 = vpop.f32.mrf.mxu0 }
 0x633   : > { %v9040_v31 = vpop.f32.mrf.mxu1  ;;  %v9039_v44 = vadd.f32 %v9038_v49, %v8998_v7 }
 0x634   : > { %v9000_v25 = vpop.f32.mrf.mxu0 }
 0x635   : > { %v9041_v52 = vpop.f32.mrf.mxu1 }
 0x66e   : > { %v9077_v53 = vpop.f32.mrf.mxu0 }
 0x66f   : > { %v9078_v35 = vadd.f32 %v9077_v53, %v9037_v34  ;;  %v9118_v42 = vpop.f32.mrf.mxu1 }
 0x670   : > { %v9079_v45 = vpop.f32.mrf.mxu0 }
 0x671   : > { %v9080_v11 = vadd.f32 %v9079_v45, %v9039_v44  ;;  %v9120_v13 = vpop.f32.mrf.mxu1  ;;  %v9119_v47 = vadd.f32 %v9118_v42, %v9078_v35 }
 0x672   : > { %v9081_v46 = vpop.f32.mrf.mxu0 }
 0x673   : > { %v9121_v55 = vadd.f32 %v9120_v13, %v9080_v11  ;;  %v9122_v51 = vpop.f32.mrf.mxu1 }
 0x674   : > { %v9082_v14 = vpop.f32.mrf.mxu0 }
 0x675   : > { %v9359_v37 = vcombine.low %v9119_v47, %v9121_v55  ;;  %v9123_v39 = vpop.f32.mrf.mxu1 }
 0x677   : > { %v9373_v43 = vrot.slane %v9359_v37, %v13576_v9 }
 0x679   : > { %v9374_v61 = vcombine.low %v9366_v58, %v9373_v43 }
 0x67b   : > { %9391 = vst [vmem:[%s13592_s28 + $0x18] sm:$0xff] %v9374_v61 }
 0x6ae   : > { %v9159_v41 = vpop.f32.mrf.mxu0 }
 0x6af   : > { %v9200_v48 = vpop.f32.mrf.mxu1  ;;  %v9160_v21 = vadd.f32 %v9159_v41, %v2030_v60 }
 0x6b0   : > { %v9161_v54 = vpop.f32.mrf.mxu0 }
 0x6b1   : > { %v9202_v2 = vpop.f32.mrf.mxu1  ;;  %v9162_v28 = vadd.f32 %v9161_v54, %v2034_v50  ;;  %v9201_v9 = vadd.f32 %v9200_v48, %v9160_v21 }
 0x6b2   : > { %v9163_v5 = vpop.f32.mrf.mxu0 }
 0x6b3   : > { %v9204_v10 = vpop.f32.mrf.mxu1  ;;  %v9203_v6 = vadd.f32 %v9202_v2, %v9162_v28 }
 0x6b4   : > { %v9164_v56 = vpop.f32.mrf.mxu0 }
 0x6b5   : > { %v9205_v17 = vpop.f32.mrf.mxu1 }
 0x6ee   : > { %v9241_v12 = vpop.f32.mrf.mxu0 }
 0x6ef   : > { %v9242_v62 = vadd.f32 %v9241_v12, %v9201_v9  ;;  %v9282_v63 = vpop.f32.mrf.mxu1 }
 0x6f0   : > { %v9243_v0 = vpop.f32.mrf.mxu0 }
 0x6f1   : > { %v9244_v20 = vadd.f32 %v9243_v0, %v9203_v6  ;;  %v9284_v16 = vpop.f32.mrf.mxu1  ;;  %v9283_v18 = vadd.f32 %v9282_v63, %v9242_v62 }
 0x6f2   : > { %v9245_v15 = vpop.f32.mrf.mxu0 }
 0x6f3   : > { %v9285_v38 = vadd.f32 %v9284_v16, %v9244_v20  ;;  %v9286_v19 = vpop.f32.mrf.mxu1 }
 0x6f4   : > { %v9246_v40 = vpop.f32.mrf.mxu0 }
 0x6f5   : > { %v9375_v3 = vcombine.low %v9283_v18, %v9285_v38  ;;  %v9287_v57 = vpop.f32.mrf.mxu1 }
 0x6f7   : > { %10697 = vst.sshfl [vmem:[%s13592_s28 + $0x20] sm:$0x33 pattern:$0x76325410] %v9375_v3 }
 0x6f8   : > { %12677 = shalt.err (!%p12674_p9)
}
 0x6f9   : > { %s12678_s0 = scalar_lea.hbm %s9406_s25, 576  ;;  %s12682_s13 = scalar_lea.hbm %s14478_s5, 2304 }
 0x6fa   : > { %p12679_p10 = scmp.ne.s32.totalorder %s9406_s25, %s12678_s0  ;;  %p12683_p5 = scmp.lt.s32.totalorder %s9406_s25, %s14478_s5 }
 0x6fb   : > { %p12684_p11 = scmp.lt.s32.totalorder %s12682_s13, %s12678_s0 }
 0x6fc   : > { %p12680_p2 = pnand %p12679_p10, %p14502_p12 }
 0x6fd   : > { %p12685_p1 = por %p12684_p11, %p12683_p5 }
 0x6fe   : > { %p12681_p6 = pneg %p12680_p2 }
 0x700   : > { %p12686_p0 = pnand %p12685_p1, %p12681_p6 }
 0x702   : > { %12689 = shalt.err (!%p12686_p0)
}
 0x703   : > { %10725 = dma.vmem_to_hbm [thread:$0]  (%p14502_p12), %s9409_s8, 576, %s9406_s25, %s9394_s14  }
 0x704 PF: > { %p10755_p7 = scmp.ge.s32.totalorder %s12736_s21, 2  ;;  %s9420_s27 = sand.u32 1, %s12724_s18  }
 0x705   : > { %p14503_p4 = scmp.ne.s32.totalorder %s14489_s6, 0  ;;  %s9421_s9 = scalar_lea.sflag [#allocation4], %s9420_s27 }
 0x707   : > { %p10745_p13 = pnand %p10755_p7, %p14503_p4 }
 0x709   : > { %p10746_p3 = pneg %p10745_p13 }
 0x70b   : > { %12719 = dma.done.wait (%p10746_p3), %s9421_s9, 576  }
 0x70c   : > { %12721 = vsyncadd (%p10746_p3), %s9421_s9, 4294966720  ;;  %s14504_s28 = sld [smem:[#allocation16_spill]]  ;;  %p20_p8 = scmp.ge.s32.totalorder %s12808_s24, 6  }
 0x70d   : > { %s14505_s18 = smov %s12728_s19  ;;  %s14506_s19 = smov %s12732_s20 }
 0x70e   : > { %s14508_s21 = smov %s12808_s24  ;;  %22 = sbr.rel (!%p20_p8) target bundleno = 9 (0x9), region = 109 }
 0x712   : > { %s14507_s20 = smov %s14504_s28 }
 0x713   :  { %9426 = vsyncpa [#allocation3], 1 }
 0x714   :  { %9428 = vsyncpa [#allocation3 + $0x1], 1 }
 0x715   :  { %9429 = vsyncpa [#allocation6], 1 }
 0x716   :  { %9430 = vsyncpa [#allocation9], 1 }
 0x717   :  { %9432 = vsyncpa [#allocation9 + $0x1], 1 }
 0x718   :  { %9433 = vsyncpa [#allocation4], 1 }
 0x719   :  { %9435 = vsyncpa [#allocation4 + $0x1], 1 }

</bundles_post_ra>
